<compile_context>
chip_gen: v7x
topology: tpu7x:2x2x1
jax: 0.10.0
libtpu: 0.0.40
codegen_flags: <defaults>
</compile_context>

<pallas_src>
import functools

import jax
import jax.numpy as jnp
from jax.experimental import pallas as pl
from jax.experimental.pallas import tpu as pltpu


# ----------------------------- fused Pallas kernel -----------------------------

def _decoder_block_kernel(
    x_ref, enc_ref, am_ref, kpm_ref, ekpm_ref,
    a1_w_ref, a1_b_ref, a1_ow_ref, a1_ob_ref,
    ln1_w_ref, ln1_b_ref,
    a2_w_ref, a2_b_ref, a2_ow_ref, a2_ob_ref,
    ln2_w_ref, ln2_b_ref,
    w1_ref, b1_ref, w2_ref, b2_ref,
    ln3_w_ref, ln3_b_ref,
    o_ref, *, num_heads, batch, q_len, kv_len, eps,
):
    """Whole TransformerDecoderBlock forward on one TensorCore, all in VMEM.

    x_ref:   (N*L, E)  decoder tokens, batch-major flat
    enc_ref: (N*S, E)  encoder tokens, batch-major flat
    am_ref:  (L, L)    int32 attn mask   (nonzero = disallowed)
    kpm_ref: (N, L)    int32 key padding (nonzero = pad)
    ekpm_ref:(N, S)    int32 enc key padding
    Weights arrive pre-transposed: in_w (E,3E), out_w (E,E), w1 (E,Hf), w2 (Hf,E).
    """
    N, L, S = batch, q_len, kv_len
    E = x_ref.shape[-1]
    Dh = E // num_heads
    scale = jnp.float32(1.0 / (Dh ** 0.5))
    neg = jnp.float32(-1e30)   # finite "minus infinity": no NaN on all-masked rows

    x = x_ref[...]             # (N*L, E)
    enc = enc_ref[...]         # (N*S, E)

    # ---- additive attention biases, materialized ONCE per attention ----
    am_bias = jnp.where(am_ref[...] != 0, neg, 0.0)       # (L, L)
    kpm_bias = jnp.where(kpm_ref[...] != 0, neg, 0.0)     # (N, L)
    ekpm_bias = jnp.where(ekpm_ref[...] != 0, neg, 0.0)   # (N, S)
    bias_self = (jnp.broadcast_to(am_bias[None, :, :], (N, L, L))
                 + jnp.broadcast_to(kpm_bias[:, None, :], (N, L, L)))   # (N, L, L)
    bias_cross = jnp.broadcast_to(ekpm_bias[:, None, :], (N, L, S))     # (N, L, S)

    def mm(a, b):
        return jnp.dot(a, b, preferred_element_type=jnp.float32)

    def softmax(s):
        s = s - jnp.max(s, axis=-1, keepdims=True)
        p = jnp.exp(s)
        return p / jnp.sum(p, axis=-1, keepdims=True)   # exact (parity with torch)

    def mha(xq, xkv, bias, in_w, in_b, out_w, out_b, Lk, self_attn):
        """torch.nn.MultiheadAttention forward (eval), projections fused over
        all tokens, score/context matmuls batched over the batch dimension."""
        if self_attn:
            # one fused (N*L, E) @ (E, 3E) projection
            qkv = mm(xq, in_w) + in_b                       # (N*L, 3E)
            q, k, v = qkv[:, :E], qkv[:, E:2 * E], qkv[:, 2 * E:]
        else:
            q = mm(xq, in_w[:, :E]) + in_b[:, :E]           # (N*L, E)
            kv = mm(xkv, in_w[:, E:]) + in_b[:, E:]         # fused K/V (N*Lk, 2E)
            k, v = kv[:, :E], kv[:, E:]
        q = (q * scale).reshape(N, L, E)                    # scale q once (torch order)
        k = k.reshape(N, Lk, E)
        v = v.reshape(N, Lk, E)
        ctx_heads = []
        for h in range(num_heads):                          # small static unroll
            sl = slice(h * Dh, (h + 1) * Dh)
            s = jnp.einsum('nld,nkd->nlk', q[..., sl], k[..., sl],
                           preferred_element_type=jnp.float32) + bias   # (N, L, Lk)
            p = softmax(s)
            ctx_heads.append(jnp.einsum('nlk,nkd->nld', p, v[..., sl],
                                        preferred_element_type=jnp.float32))
        ctx = jnp.concatenate(ctx_heads, axis=-1).reshape(N * L, E)
        return mm(ctx, out_w) + out_b                       # single output projection

    def add_ln(xa, ya, w, b):
        # LayerNorm over the ENTIRE tensor (normalized_shape == (L, N, E)),
        # one-pass statistics: var = E[z^2] - mean^2.
        z = xa + ya
        inv_n = jnp.float32(1.0 / z.size)
        mean = jnp.sum(z) * inv_n
        mean_sq = jnp.sum(z * z) * inv_n
        var = mean_sq - mean * mean
        return (z - mean) * jax.lax.rsqrt(var + eps) * w + b

    # --- 1) masked self-attention + Add&Norm ---
    attn1 = mha(x, x, bias_self, a1_w_ref[...], a1_b_ref[...],
                a1_ow_ref[...], a1_ob_ref[...], L, True)
    x2 = add_ln(x, attn1, ln1_w_ref[...], ln1_b_ref[...])

    # --- 2) encoder-decoder cross-attention + Add&Norm ---
    attn2 = mha(x2, enc, bias_cross, a2_w_ref[...], a2_b_ref[...],
                a2_ow_ref[...], a2_ob_ref[...], S, False)
    x3 = add_ln(x2, attn2, ln2_w_ref[...], ln2_b_ref[...])

    # --- 3) position-wise FFN over all N*L tokens at once + Add&Norm ---
    hdn = jnp.maximum(mm(x3, w1_ref[...]) + b1_ref[...], 0.0)   # (N*L, Hf)
    ffn = mm(hdn, w2_ref[...]) + b2_ref[...]                    # (N*L, E)
    o_ref[...] = add_ln(x3, ffn, ln3_w_ref[...], ln3_b_ref[...]).astype(o_ref.dtype)


# ----------------------------- JAX wrapper -----------------------------

@functools.partial(jax.jit, static_argnames=("num_heads", "eps"))
def transformer_decoder_block(params, X, encoder_state, key_padding_mask,
                              attn_mask, num_heads=8, eps=1e-5):
    """X: (L, N, E); encoder_state = (encoder_output (S, N, E), enc_kpm (N, S))."""
    encoder_output, encoder_key_padding_mask = encoder_state
    L, N, E = X.shape
    S = encoder_output.shape[0]

    if attn_mask is None:
        attn_mask = jnp.zeros((L, L), bool)
    if key_padding_mask is None:
        key_padding_mask = jnp.zeros((N, L), bool)
    if encoder_key_padding_mask is None:
        encoder_key_padding_mask = jnp.zeros((N, S), bool)

    # one-time tiny relayouts outside the kernel: (L, N, E) -> (N*L, E)
    to_flat = lambda a: a.transpose(1, 0, 2).reshape(-1, a.shape[-1])
    f32 = jnp.float32

    args = [
        to_flat(X).astype(f32),
        to_flat(encoder_output).astype(f32),
        attn_mask.astype(jnp.int32),
        key_padding_mask.astype(jnp.int32),
        encoder_key_padding_mask.astype(jnp.int32),
        # weights pre-transposed (one-off XLA op) so the kernel does plain a @ b
        params["attn1"]["in_proj_weight"].T.astype(f32),      # (E, 3E)
        params["attn1"]["in_proj_bias"].reshape(1, -1).astype(f32),
        params["attn1"]["out_proj_weight"].T.astype(f32),     # (E, E)
        params["attn1"]["out_proj_bias"].reshape(1, -1).astype(f32),
        to_flat(params["ln1_w"]).astype(f32), to_flat(params["ln1_b"]).astype(f32),
        params["attn2"]["in_proj_weight"].T.astype(f32),
        params["attn2"]["in_proj_bias"].reshape(1, -1).astype(f32),
        params["attn2"]["out_proj_weight"].T.astype(f32),
        params["attn2"]["out_proj_bias"].reshape(1, -1).astype(f32),
        to_flat(params["ln2_w"]).astype(f32), to_flat(params["ln2_b"]).astype(f32),
        params["ffn"]["w1"].T.astype(f32),                    # (E, Hf)
        params["ffn"]["b1"].reshape(1, -1).astype(f32),
        params["ffn"]["w2"].T.astype(f32),                    # (Hf, E)
        params["ffn"]["b2"].reshape(1, -1).astype(f32),
        to_flat(params["ln3_w"]).astype(f32), to_flat(params["ln3_b"]).astype(f32),
    ]

    out_flat = pl.pallas_call(
        functools.partial(_decoder_block_kernel, num_heads=num_heads,
                          batch=N, q_len=L, kv_len=S, eps=eps),
        out_shape=jax.ShapeDtypeStruct((N * L, E), jnp.float32),
        in_specs=[pl.BlockSpec(memory_space=pltpu.MemorySpace.VMEM)] * len(args),
        out_specs=pl.BlockSpec(memory_space=pltpu.MemorySpace.VMEM),
        compiler_params=pltpu.CompilerParams(vmem_limit_bytes=32 * 1024 * 1024),
    )(*args)

    return out_flat.reshape(N, L, E).transpose(1, 0, 2)          # back to (L, N, E)


# ----------------------------- params / demo -----------------------------

def init_params(key, E, ffn_hidden, L, N):
    ks = iter(jax.random.split(key, 32))

    def w(shape, scale=0.05):
        return scale * jax.random.normal(next(ks), shape, jnp.float32)

    def attn_params():
        return {
            "in_proj_weight": w((3 * E, E)),     # torch layout; wrapper transposes
            "in_proj_bias": w((3 * E,)),
            "out_proj_weight": w((E, E)),
            "out_proj_bias": w((E,)),
        }

    return {
        "attn1": attn_params(),
        "ln1_w": 1.0 + w((L, N, E)),
        "ln1_b": w((L, N, E)),
        "attn2": attn_params(),
        "ln2_w": 1.0 + w((L, N, E)),
        "ln2_b": w((L, N, E)),
        "ffn": {"w1": w((ffn_hidden, E)), "b1": w((ffn_hidden,)),
                "w2": w((E, ffn_hidden)), "b2": w((E,))},
        "ln3_w": 1.0 + w((L, N, E)),
        "ln3_b": w((L, N, E)),
    }


if __name__ == "__main__":
    # Small shapes consistent with the module's forward:
    #   X: (L, N, E) decoder input, encoder_output: (S, N, E)
    # (L and S chosen as multiples of 8 so in-kernel reshapes stay sublane-aligned.)
    E, num_heads = 32, 8
    L, N, S = 8, 2, 16
    FFN_HIDDEN = 64

    key = jax.random.PRNGKey(0)
    k_param, k_x, k_enc = jax.random.split(key, 3)

    params = init_params(k_param, E, FFN_HIDDEN, L, N)
    X = jax.random.normal(k_x, (L, N, E), jnp.float32)
    encoder_output = jax.random.normal(k_enc, (S, N, E), jnp.float32)

    # True = position is masked / padded (PyTorch convention)
    key_padding_mask = jnp.zeros((N, L), bool).at[1, L - 1].set(True)
    encoder_key_padding_mask = jnp.zeros((N, S), bool).at[1, S - 2:].set(True)
    attn_mask = jnp.triu(jnp.ones((L, L), bool), k=1)   # causal decoder mask

    out = transformer_decoder_block(
        params, X, (encoder_output, encoder_key_padding_mask),
        key_padding_mask, attn_mask, num_heads=num_heads)
    out = jax.block_until_ready(out)

    assert out.shape == (L, N, E)
    assert bool(jnp.all(jnp.isfinite(out)))
    print("KERNEL_OK")
</pallas_src>

<mosaic_0001>
module attributes {stable_mosaic.version = 11 : i64} {
  func.func @_decoder_block_kernel(%arg0: memref<16x32xf32, #tpu.memory_space<vmem>>, %arg1: memref<32x32xf32, #tpu.memory_space<vmem>>, %arg2: memref<8x8xi32, #tpu.memory_space<vmem>>, %arg3: memref<2x8xi32, #tpu.memory_space<vmem>>, %arg4: memref<2x16xi32, #tpu.memory_space<vmem>>, %arg5: memref<32x96xf32, #tpu.memory_space<vmem>>, %arg6: memref<1x96xf32, #tpu.memory_space<vmem>>, %arg7: memref<32x32xf32, #tpu.memory_space<vmem>>, %arg8: memref<1x32xf32, #tpu.memory_space<vmem>>, %arg9: memref<16x32xf32, #tpu.memory_space<vmem>>, %arg10: memref<16x32xf32, #tpu.memory_space<vmem>>, %arg11: memref<32x96xf32, #tpu.memory_space<vmem>>, %arg12: memref<1x96xf32, #tpu.memory_space<vmem>>, %arg13: memref<32x32xf32, #tpu.memory_space<vmem>>, %arg14: memref<1x32xf32, #tpu.memory_space<vmem>>, %arg15: memref<16x32xf32, #tpu.memory_space<vmem>>, %arg16: memref<16x32xf32, #tpu.memory_space<vmem>>, %arg17: memref<32x64xf32, #tpu.memory_space<vmem>>, %arg18: memref<1x64xf32, #tpu.memory_space<vmem>>, %arg19: memref<64x32xf32, #tpu.memory_space<vmem>>, %arg20: memref<1x32xf32, #tpu.memory_space<vmem>>, %arg21: memref<16x32xf32, #tpu.memory_space<vmem>>, %arg22: memref<16x32xf32, #tpu.memory_space<vmem>>, %arg23: memref<16x32xf32, #tpu.memory_space<vmem>>) attributes {dimension_semantics = [], scalar_prefetch = 0 : i64, scratch_operands = 0 : i64, tpu.core_type = #tpu.core_type<tc>} {
    %c0 = arith.constant 0 : index
    %c0_0 = arith.constant 0 : index
    %0 = vector.load %arg0[%c0, %c0_0] : memref<16x32xf32, #tpu.memory_space<vmem>>, vector<16x32xf32>
    %c0_1 = arith.constant 0 : index
    %c0_2 = arith.constant 0 : index
    %1 = vector.load %arg1[%c0_1, %c0_2] : memref<32x32xf32, #tpu.memory_space<vmem>>, vector<32x32xf32>
    %c0_3 = arith.constant 0 : index
    %c0_4 = arith.constant 0 : index
    %2 = vector.load %arg2[%c0_3, %c0_4] : memref<8x8xi32, #tpu.memory_space<vmem>>, vector<8x8xi32>
    %c0_i32 = arith.constant 0 : i32
    %3 = vector.broadcast %c0_i32 : i32 to vector<8x8xi32>
    %4 = arith.cmpi ne, %2, %3 : vector<8x8xi32>
    %cst = arith.constant -1.000000e+30 : f32
    %cst_5 = arith.constant 0.000000e+00 : f32
    %5 = vector.broadcast %cst : f32 to vector<8x8xf32>
    %6 = vector.broadcast %cst_5 : f32 to vector<8x8xf32>
    %7 = arith.select %4, %5, %6 : vector<8x8xi1>, vector<8x8xf32>
    %c0_6 = arith.constant 0 : index
    %c0_7 = arith.constant 0 : index
    %8 = vector.load %arg3[%c0_6, %c0_7] : memref<2x8xi32, #tpu.memory_space<vmem>>, vector<2x8xi32>
    %c0_i32_8 = arith.constant 0 : i32
    %9 = vector.broadcast %c0_i32_8 : i32 to vector<2x8xi32>
    %10 = arith.cmpi ne, %8, %9 : vector<2x8xi32>
    %cst_9 = arith.constant -1.000000e+30 : f32
    %cst_10 = arith.constant 0.000000e+00 : f32
    %11 = vector.broadcast %cst_9 : f32 to vector<2x8xf32>
    %12 = vector.broadcast %cst_10 : f32 to vector<2x8xf32>
    %13 = arith.select %10, %11, %12 : vector<2x8xi1>, vector<2x8xf32>
    %c0_11 = arith.constant 0 : index
    %c0_12 = arith.constant 0 : index
    %14 = vector.load %arg4[%c0_11, %c0_12] : memref<2x16xi32, #tpu.memory_space<vmem>>, vector<2x16xi32>
    %c0_i32_13 = arith.constant 0 : i32
    %15 = vector.broadcast %c0_i32_13 : i32 to vector<2x16xi32>
    %16 = arith.cmpi ne, %14, %15 : vector<2x16xi32>
    %cst_14 = arith.constant -1.000000e+30 : f32
    %cst_15 = arith.constant 0.000000e+00 : f32
    %17 = vector.broadcast %cst_14 : f32 to vector<2x16xf32>
    %18 = vector.broadcast %cst_15 : f32 to vector<2x16xf32>
    %19 = arith.select %16, %17, %18 : vector<2x16xi1>, vector<2x16xf32>
    %20 = vector.shape_cast %7 : vector<8x8xf32> to vector<1x8x8xf32>
    %21 = vector.shape_cast %20 : vector<1x8x8xf32> to vector<1x8x8xf32>
    %22 = vector.broadcast %21 : vector<1x8x8xf32> to vector<2x8x8xf32>
    %23 = vector.shape_cast %13 : vector<2x8xf32> to vector<2x1x8xf32>
    %24 = vector.shape_cast %23 : vector<2x1x8xf32> to vector<2x1x8xf32>
    %25 = vector.broadcast %24 : vector<2x1x8xf32> to vector<2x8x8xf32>
    %26 = arith.addf %22, %25 : vector<2x8x8xf32>
    %27 = vector.shape_cast %19 : vector<2x16xf32> to vector<2x1x16xf32>
    %28 = vector.shape_cast %27 : vector<2x1x16xf32> to vector<2x1x16xf32>
    %29 = vector.broadcast %28 : vector<2x1x16xf32> to vector<2x8x16xf32>
    %c0_16 = arith.constant 0 : index
    %c0_17 = arith.constant 0 : index
    %30 = vector.load %arg5[%c0_16, %c0_17] : memref<32x96xf32, #tpu.memory_space<vmem>>, vector<32x96xf32>
    %c0_18 = arith.constant 0 : index
    %c0_19 = arith.constant 0 : index
    %31 = vector.load %arg6[%c0_18, %c0_19] : memref<1x96xf32, #tpu.memory_space<vmem>>, vector<1x96xf32>
    %c0_20 = arith.constant 0 : index
    %c0_21 = arith.constant 0 : index
    %32 = vector.load %arg7[%c0_20, %c0_21] : memref<32x32xf32, #tpu.memory_space<vmem>>, vector<32x32xf32>
    %c0_22 = arith.constant 0 : index
    %c0_23 = arith.constant 0 : index
    %33 = vector.load %arg8[%c0_22, %c0_23] : memref<1x32xf32, #tpu.memory_space<vmem>>, vector<1x32xf32>
    %cst_24 = arith.constant dense<0.000000e+00> : vector<16x96xf32>
    %34 = tpu.matmul %0, %30, %cst_24 {dimension_numbers = #tpu.dot_dimension_numbers<[1], [0], [0], [1], [0, 0, 1, 1], [], []>} : vector<16x32xf32>, vector<32x96xf32>, vector<16x96xf32> -> vector<16x96xf32>
    %35 = vector.broadcast %31 : vector<1x96xf32> to vector<16x96xf32>
    %36 = arith.addf %34, %35 : vector<16x96xf32>
    %37 = vector.extract_strided_slice %36 {offsets = [0, 0], sizes = [16, 32], strides = [1, 1]} : vector<16x96xf32> to vector<16x32xf32>
    %38 = vector.extract_strided_slice %36 {offsets = [0, 32], sizes = [16, 32], strides = [1, 1]} : vector<16x96xf32> to vector<16x32xf32>
    %39 = vector.extract_strided_slice %36 {offsets = [0, 64], sizes = [16, 32], strides = [1, 1]} : vector<16x96xf32> to vector<16x32xf32>
    %cst_25 = arith.constant 5.000000e-01 : f32
    %40 = vector.broadcast %cst_25 : f32 to vector<16x32xf32>
    %41 = arith.mulf %37, %40 : vector<16x32xf32>
    %42 = vector.shape_cast %41 : vector<16x32xf32> to vector<2x8x32xf32>
    %43 = vector.shape_cast %38 : vector<16x32xf32> to vector<2x8x32xf32>
    %44 = vector.shape_cast %39 : vector<16x32xf32> to vector<2x8x32xf32>
    %45 = vector.extract_strided_slice %42 {offsets = [0, 0, 0], sizes = [2, 8, 4], strides = [1, 1, 1]} : vector<2x8x32xf32> to vector<2x8x4xf32>
    %46 = vector.extract_strided_slice %43 {offsets = [0, 0, 0], sizes = [2, 8, 4], strides = [1, 1, 1]} : vector<2x8x32xf32> to vector<2x8x4xf32>
    "tpu.trace_start"() <{level = 10 : i32, message = "nld,nkd->nlk"}> : () -> ()
    %cst_26 = arith.constant dense<0.000000e+00> : vector<2x8x8xf32>
    %47 = tpu.matmul %45, %46, %cst_26 {dimension_numbers = #tpu.dot_dimension_numbers<[2], [2], [1], [1], [0, 0, 0, 1, 1, 1], [0], [0]>} : vector<2x8x4xf32>, vector<2x8x4xf32>, vector<2x8x8xf32> -> vector<2x8x8xf32>
    "tpu.trace_stop"() : () -> ()
    %48 = arith.addf %47, %26 : vector<2x8x8xf32>
    %cst_27 = arith.constant dense<0xFF800000> : vector<2x8xf32>
    %49 = vector.multi_reduction <maximumf>, %48, %cst_27 [2] : vector<2x8x8xf32> to vector<2x8xf32>
    %50 = vector.shape_cast %49 : vector<2x8xf32> to vector<2x8x1xf32>
    %51 = vector.broadcast %50 : vector<2x8x1xf32> to vector<2x8x8xf32>
    %52 = arith.subf %48, %51 : vector<2x8x8xf32>
    %53 = math.exp %52 : vector<2x8x8xf32>
    %cst_28 = arith.constant dense<0.000000e+00> : vector<2x8xf32>
    %54 = vector.multi_reduction <add>, %53, %cst_28 [2] : vector<2x8x8xf32> to vector<2x8xf32>
    %55 = vector.shape_cast %54 : vector<2x8xf32> to vector<2x8x1xf32>
    %56 = vector.broadcast %55 : vector<2x8x1xf32> to vector<2x8x8xf32>
    %57 = arith.divf %53, %56 : vector<2x8x8xf32>
    %58 = vector.extract_strided_slice %44 {offsets = [0, 0, 0], sizes = [2, 8, 4], strides = [1, 1, 1]} : vector<2x8x32xf32> to vector<2x8x4xf32>
    "tpu.trace_start"() <{level = 10 : i32, message = "nlk,nkd->nld"}> : () -> ()
    %cst_29 = arith.constant dense<0.000000e+00> : vector<2x8x4xf32>
    %59 = tpu.matmul %57, %58, %cst_29 {dimension_numbers = #tpu.dot_dimension_numbers<[2], [1], [1], [2], [0, 0, 0, 1, 1, 2], [0], [0]>} : vector<2x8x8xf32>, vector<2x8x4xf32>, vector<2x8x4xf32> -> vector<2x8x4xf32>
    "tpu.trace_stop"() : () -> ()
    %60 = vector.extract_strided_slice %42 {offsets = [0, 0, 4], sizes = [2, 8, 4], strides = [1, 1, 1]} : vector<2x8x32xf32> to vector<2x8x4xf32>
    %61 = vector.extract_strided_slice %43 {offsets = [0, 0, 4], sizes = [2, 8, 4], strides = [1, 1, 1]} : vector<2x8x32xf32> to vector<2x8x4xf32>
    "tpu.trace_start"() <{level = 10 : i32, message = "nld,nkd->nlk"}> : () -> ()
    %cst_30 = arith.constant dense<0.000000e+00> : vector<2x8x8xf32>
    %62 = tpu.matmul %60, %61, %cst_30 {dimension_numbers = #tpu.dot_dimension_numbers<[2], [2], [1], [1], [0, 0, 0, 1, 1, 1], [0], [0]>} : vector<2x8x4xf32>, vector<2x8x4xf32>, vector<2x8x8xf32> -> vector<2x8x8xf32>
    "tpu.trace_stop"() : () -> ()
    %63 = arith.addf %62, %26 : vector<2x8x8xf32>
    %cst_31 = arith.constant dense<0xFF800000> : vector<2x8xf32>
    %64 = vector.multi_reduction <maximumf>, %63, %cst_31 [2] : vector<2x8x8xf32> to vector<2x8xf32>
    %65 = vector.shape_cast %64 : vector<2x8xf32> to vector<2x8x1xf32>
    %66 = vector.broadcast %65 : vector<2x8x1xf32> to vector<2x8x8xf32>
    %67 = arith.subf %63, %66 : vector<2x8x8xf32>
    %68 = math.exp %67 : vector<2x8x8xf32>
    %cst_32 = arith.constant dense<0.000000e+00> : vector<2x8xf32>
    %69 = vector.multi_reduction <add>, %68, %cst_32 [2] : vector<2x8x8xf32> to vector<2x8xf32>
    %70 = vector.shape_cast %69 : vector<2x8xf32> to vector<2x8x1xf32>
    %71 = vector.broadcast %70 : vector<2x8x1xf32> to vector<2x8x8xf32>
    %72 = arith.divf %68, %71 : vector<2x8x8xf32>
    %73 = vector.extract_strided_slice %44 {offsets = [0, 0, 4], sizes = [2, 8, 4], strides = [1, 1, 1]} : vector<2x8x32xf32> to vector<2x8x4xf32>
    "tpu.trace_start"() <{level = 10 : i32, message = "nlk,nkd->nld"}> : () -> ()
    %cst_33 = arith.constant dense<0.000000e+00> : vector<2x8x4xf32>
    %74 = tpu.matmul %72, %73, %cst_33 {dimension_numbers = #tpu.dot_dimension_numbers<[2], [1], [1], [2], [0, 0, 0, 1, 1, 2], [0], [0]>} : vector<2x8x8xf32>, vector<2x8x4xf32>, vector<2x8x4xf32> -> vector<2x8x4xf32>
    "tpu.trace_stop"() : () -> ()
    %75 = vector.extract_strided_slice %42 {offsets = [0, 0, 8], sizes = [2, 8, 4], strides = [1, 1, 1]} : vector<2x8x32xf32> to vector<2x8x4xf32>
    %76 = vector.extract_strided_slice %43 {offsets = [0, 0, 8], sizes = [2, 8, 4], strides = [1, 1, 1]} : vector<2x8x32xf32> to vector<2x8x4xf32>
    "tpu.trace_start"() <{level = 10 : i32, message = "nld,nkd->nlk"}> : () -> ()
    %cst_34 = arith.constant dense<0.000000e+00> : vector<2x8x8xf32>
    %77 = tpu.matmul %75, %76, %cst_34 {dimension_numbers = #tpu.dot_dimension_numbers<[2], [2], [1], [1], [0, 0, 0, 1, 1, 1], [0], [0]>} : vector<2x8x4xf32>, vector<2x8x4xf32>, vector<2x8x8xf32> -> vector<2x8x8xf32>
    "tpu.trace_stop"() : () -> ()
    %78 = arith.addf %77, %26 : vector<2x8x8xf32>
    %cst_35 = arith.constant dense<0xFF800000> : vector<2x8xf32>
    %79 = vector.multi_reduction <maximumf>, %78, %cst_35 [2] : vector<2x8x8xf32> to vector<2x8xf32>
    %80 = vector.shape_cast %79 : vector<2x8xf32> to vector<2x8x1xf32>
    %81 = vector.broadcast %80 : vector<2x8x1xf32> to vector<2x8x8xf32>
    %82 = arith.subf %78, %81 : vector<2x8x8xf32>
    %83 = math.exp %82 : vector<2x8x8xf32>
    %cst_36 = arith.constant dense<0.000000e+00> : vector<2x8xf32>
    %84 = vector.multi_reduction <add>, %83, %cst_36 [2] : vector<2x8x8xf32> to vector<2x8xf32>
    %85 = vector.shape_cast %84 : vector<2x8xf32> to vector<2x8x1xf32>
    %86 = vector.broadcast %85 : vector<2x8x1xf32> to vector<2x8x8xf32>
    %87 = arith.divf %83, %86 : vector<2x8x8xf32>
    %88 = vector.extract_strided_slice %44 {offsets = [0, 0, 8], sizes = [2, 8, 4], strides = [1, 1, 1]} : vector<2x8x32xf32> to vector<2x8x4xf32>
    "tpu.trace_start"() <{level = 10 : i32, message = "nlk,nkd->nld"}> : () -> ()
    %cst_37 = arith.constant dense<0.000000e+00> : vector<2x8x4xf32>
    %89 = tpu.matmul %87, %88, %cst_37 {dimension_numbers = #tpu.dot_dimension_numbers<[2], [1], [1], [2], [0, 0, 0, 1, 1, 2], [0], [0]>} : vector<2x8x8xf32>, vector<2x8x4xf32>, vector<2x8x4xf32> -> vector<2x8x4xf32>
    "tpu.trace_stop"() : () -> ()
    %90 = vector.extract_strided_slice %42 {offsets = [0, 0, 12], sizes = [2, 8, 4], strides = [1, 1, 1]} : vector<2x8x32xf32> to vector<2x8x4xf32>
    %91 = vector.extract_strided_slice %43 {offsets = [0, 0, 12], sizes = [2, 8, 4], strides = [1, 1, 1]} : vector<2x8x32xf32> to vector<2x8x4xf32>
    "tpu.trace_start"() <{level = 10 : i32, message = "nld,nkd->nlk"}> : () -> ()
    %cst_38 = arith.constant dense<0.000000e+00> : vector<2x8x8xf32>
    %92 = tpu.matmul %90, %91, %cst_38 {dimension_numbers = #tpu.dot_dimension_numbers<[2], [2], [1], [1], [0, 0, 0, 1, 1, 1], [0], [0]>} : vector<2x8x4xf32>, vector<2x8x4xf32>, vector<2x8x8xf32> -> vector<2x8x8xf32>
    "tpu.trace_stop"() : () -> ()
    %93 = arith.addf %92, %26 : vector<2x8x8xf32>
    %cst_39 = arith.constant dense<0xFF800000> : vector<2x8xf32>
    %94 = vector.multi_reduction <maximumf>, %93, %cst_39 [2] : vector<2x8x8xf32> to vector<2x8xf32>
    %95 = vector.shape_cast %94 : vector<2x8xf32> to vector<2x8x1xf32>
    %96 = vector.broadcast %95 : vector<2x8x1xf32> to vector<2x8x8xf32>
    %97 = arith.subf %93, %96 : vector<2x8x8xf32>
    %98 = math.exp %97 : vector<2x8x8xf32>
    %cst_40 = arith.constant dense<0.000000e+00> : vector<2x8xf32>
    %99 = vector.multi_reduction <add>, %98, %cst_40 [2] : vector<2x8x8xf32> to vector<2x8xf32>
    %100 = vector.shape_cast %99 : vector<2x8xf32> to vector<2x8x1xf32>
    %101 = vector.broadcast %100 : vector<2x8x1xf32> to vector<2x8x8xf32>
    %102 = arith.divf %98, %101 : vector<2x8x8xf32>
    %103 = vector.extract_strided_slice %44 {offsets = [0, 0, 12], sizes = [2, 8, 4], strides = [1, 1, 1]} : vector<2x8x32xf32> to vector<2x8x4xf32>
    "tpu.trace_start"() <{level = 10 : i32, message = "nlk,nkd->nld"}> : () -> ()
    %cst_41 = arith.constant dense<0.000000e+00> : vector<2x8x4xf32>
    %104 = tpu.matmul %102, %103, %cst_41 {dimension_numbers = #tpu.dot_dimension_numbers<[2], [1], [1], [2], [0, 0, 0, 1, 1, 2], [0], [0]>} : vector<2x8x8xf32>, vector<2x8x4xf32>, vector<2x8x4xf32> -> vector<2x8x4xf32>
    "tpu.trace_stop"() : () -> ()
    %105 = vector.extract_strided_slice %42 {offsets = [0, 0, 16], sizes = [2, 8, 4], strides = [1, 1, 1]} : vector<2x8x32xf32> to vector<2x8x4xf32>
    %106 = vector.extract_strided_slice %43 {offsets = [0, 0, 16], sizes = [2, 8, 4], strides = [1, 1, 1]} : vector<2x8x32xf32> to vector<2x8x4xf32>
    "tpu.trace_start"() <{level = 10 : i32, message = "nld,nkd->nlk"}> : () -> ()
    %cst_42 = arith.constant dense<0.000000e+00> : vector<2x8x8xf32>
    %107 = tpu.matmul %105, %106, %cst_42 {dimension_numbers = #tpu.dot_dimension_numbers<[2], [2], [1], [1], [0, 0, 0, 1, 1, 1], [0], [0]>} : vector<2x8x4xf32>, vector<2x8x4xf32>, vector<2x8x8xf32> -> vector<2x8x8xf32>
    "tpu.trace_stop"() : () -> ()
    %108 = arith.addf %107, %26 : vector<2x8x8xf32>
    %cst_43 = arith.constant dense<0xFF800000> : vector<2x8xf32>
    %109 = vector.multi_reduction <maximumf>, %108, %cst_43 [2] : vector<2x8x8xf32> to vector<2x8xf32>
    %110 = vector.shape_cast %109 : vector<2x8xf32> to vector<2x8x1xf32>
    %111 = vector.broadcast %110 : vector<2x8x1xf32> to vector<2x8x8xf32>
    %112 = arith.subf %108, %111 : vector<2x8x8xf32>
    %113 = math.exp %112 : vector<2x8x8xf32>
    %cst_44 = arith.constant dense<0.000000e+00> : vector<2x8xf32>
    %114 = vector.multi_reduction <add>, %113, %cst_44 [2] : vector<2x8x8xf32> to vector<2x8xf32>
    %115 = vector.shape_cast %114 : vector<2x8xf32> to vector<2x8x1xf32>
    %116 = vector.broadcast %115 : vector<2x8x1xf32> to vector<2x8x8xf32>
    %117 = arith.divf %113, %116 : vector<2x8x8xf32>
    %118 = vector.extract_strided_slice %44 {offsets = [0, 0, 16], sizes = [2, 8, 4], strides = [1, 1, 1]} : vector<2x8x32xf32> to vector<2x8x4xf32>
    "tpu.trace_start"() <{level = 10 : i32, message = "nlk,nkd->nld"}> : () -> ()
    %cst_45 = arith.constant dense<0.000000e+00> : vector<2x8x4xf32>
    %119 = tpu.matmul %117, %118, %cst_45 {dimension_numbers = #tpu.dot_dimension_numbers<[2], [1], [1], [2], [0, 0, 0, 1, 1, 2], [0], [0]>} : vector<2x8x8xf32>, vector<2x8x4xf32>, vector<2x8x4xf32> -> vector<2x8x4xf32>
    "tpu.trace_stop"() : () -> ()
    %120 = vector.extract_strided_slice %42 {offsets = [0, 0, 20], sizes = [2, 8, 4], strides = [1, 1, 1]} : vector<2x8x32xf32> to vector<2x8x4xf32>
    %121 = vector.extract_strided_slice %43 {offsets = [0, 0, 20], sizes = [2, 8, 4], strides = [1, 1, 1]} : vector<2x8x32xf32> to vector<2x8x4xf32>
    "tpu.trace_start"() <{level = 10 : i32, message = "nld,nkd->nlk"}> : () -> ()
    %cst_46 = arith.constant dense<0.000000e+00> : vector<2x8x8xf32>
    %122 = tpu.matmul %120, %121, %cst_46 {dimension_numbers = #tpu.dot_dimension_numbers<[2], [2], [1], [1], [0, 0, 0, 1, 1, 1], [0], [0]>} : vector<2x8x4xf32>, vector<2x8x4xf32>, vector<2x8x8xf32> -> vector<2x8x8xf32>
    "tpu.trace_stop"() : () -> ()
    %123 = arith.addf %122, %26 : vector<2x8x8xf32>
    %cst_47 = arith.constant dense<0xFF800000> : vector<2x8xf32>
    %124 = vector.multi_reduction <maximumf>, %123, %cst_47 [2] : vector<2x8x8xf32> to vector<2x8xf32>
    %125 = vector.shape_cast %124 : vector<2x8xf32> to vector<2x8x1xf32>
    %126 = vector.broadcast %125 : vector<2x8x1xf32> to vector<2x8x8xf32>
    %127 = arith.subf %123, %126 : vector<2x8x8xf32>
    %128 = math.exp %127 : vector<2x8x8xf32>
    %cst_48 = arith.constant dense<0.000000e+00> : vector<2x8xf32>
    %129 = vector.multi_reduction <add>, %128, %cst_48 [2] : vector<2x8x8xf32> to vector<2x8xf32>
    %130 = vector.shape_cast %129 : vector<2x8xf32> to vector<2x8x1xf32>
    %131 = vector.broadcast %130 : vector<2x8x1xf32> to vector<2x8x8xf32>
    %132 = arith.divf %128, %131 : vector<2x8x8xf32>
    %133 = vector.extract_strided_slice %44 {offsets = [0, 0, 20], sizes = [2, 8, 4], strides = [1, 1, 1]} : vector<2x8x32xf32> to vector<2x8x4xf32>
    "tpu.trace_start"() <{level = 10 : i32, message = "nlk,nkd->nld"}> : () -> ()
    %cst_49 = arith.constant dense<0.000000e+00> : vector<2x8x4xf32>
    %134 = tpu.matmul %132, %133, %cst_49 {dimension_numbers = #tpu.dot_dimension_numbers<[2], [1], [1], [2], [0, 0, 0, 1, 1, 2], [0], [0]>} : vector<2x8x8xf32>, vector<2x8x4xf32>, vector<2x8x4xf32> -> vector<2x8x4xf32>
    "tpu.trace_stop"() : () -> ()
    %135 = vector.extract_strided_slice %42 {offsets = [0, 0, 24], sizes = [2, 8, 4], strides = [1, 1, 1]} : vector<2x8x32xf32> to vector<2x8x4xf32>
    %136 = vector.extract_strided_slice %43 {offsets = [0, 0, 24], sizes = [2, 8, 4], strides = [1, 1, 1]} : vector<2x8x32xf32> to vector<2x8x4xf32>
    "tpu.trace_start"() <{level = 10 : i32, message = "nld,nkd->nlk"}> : () -> ()
    %cst_50 = arith.constant dense<0.000000e+00> : vector<2x8x8xf32>
    %137 = tpu.matmul %135, %136, %cst_50 {dimension_numbers = #tpu.dot_dimension_numbers<[2], [2], [1], [1], [0, 0, 0, 1, 1, 1], [0], [0]>} : vector<2x8x4xf32>, vector<2x8x4xf32>, vector<2x8x8xf32> -> vector<2x8x8xf32>
    "tpu.trace_stop"() : () -> ()
    %138 = arith.addf %137, %26 : vector<2x8x8xf32>
    %cst_51 = arith.constant dense<0xFF800000> : vector<2x8xf32>
    %139 = vector.multi_reduction <maximumf>, %138, %cst_51 [2] : vector<2x8x8xf32> to vector<2x8xf32>
    %140 = vector.shape_cast %139 : vector<2x8xf32> to vector<2x8x1xf32>
    %141 = vector.broadcast %140 : vector<2x8x1xf32> to vector<2x8x8xf32>
    %142 = arith.subf %138, %141 : vector<2x8x8xf32>
    %143 = math.exp %142 : vector<2x8x8xf32>
    %cst_52 = arith.constant dense<0.000000e+00> : vector<2x8xf32>
    %144 = vector.multi_reduction <add>, %143, %cst_52 [2] : vector<2x8x8xf32> to vector<2x8xf32>
    %145 = vector.shape_cast %144 : vector<2x8xf32> to vector<2x8x1xf32>
    %146 = vector.broadcast %145 : vector<2x8x1xf32> to vector<2x8x8xf32>
    %147 = arith.divf %143, %146 : vector<2x8x8xf32>
    %148 = vector.extract_strided_slice %44 {offsets = [0, 0, 24], sizes = [2, 8, 4], strides = [1, 1, 1]} : vector<2x8x32xf32> to vector<2x8x4xf32>
    "tpu.trace_start"() <{level = 10 : i32, message = "nlk,nkd->nld"}> : () -> ()
    %cst_53 = arith.constant dense<0.000000e+00> : vector<2x8x4xf32>
    %149 = tpu.matmul %147, %148, %cst_53 {dimension_numbers = #tpu.dot_dimension_numbers<[2], [1], [1], [2], [0, 0, 0, 1, 1, 2], [0], [0]>} : vector<2x8x8xf32>, vector<2x8x4xf32>, vector<2x8x4xf32> -> vector<2x8x4xf32>
    "tpu.trace_stop"() : () -> ()
    %150 = vector.extract_strided_slice %42 {offsets = [0, 0, 28], sizes = [2, 8, 4], strides = [1, 1, 1]} : vector<2x8x32xf32> to vector<2x8x4xf32>
    %151 = vector.extract_strided_slice %43 {offsets = [0, 0, 28], sizes = [2, 8, 4], strides = [1, 1, 1]} : vector<2x8x32xf32> to vector<2x8x4xf32>
    "tpu.trace_start"() <{level = 10 : i32, message = "nld,nkd->nlk"}> : () -> ()
    %cst_54 = arith.constant dense<0.000000e+00> : vector<2x8x8xf32>
    %152 = tpu.matmul %150, %151, %cst_54 {dimension_numbers = #tpu.dot_dimension_numbers<[2], [2], [1], [1], [0, 0, 0, 1, 1, 1], [0], [0]>} : vector<2x8x4xf32>, vector<2x8x4xf32>, vector<2x8x8xf32> -> vector<2x8x8xf32>
    "tpu.trace_stop"() : () -> ()
    %153 = arith.addf %152, %26 : vector<2x8x8xf32>
    %cst_55 = arith.constant dense<0xFF800000> : vector<2x8xf32>
    %154 = vector.multi_reduction <maximumf>, %153, %cst_55 [2] : vector<2x8x8xf32> to vector<2x8xf32>
    %155 = vector.shape_cast %154 : vector<2x8xf32> to vector<2x8x1xf32>
    %156 = vector.broadcast %155 : vector<2x8x1xf32> to vector<2x8x8xf32>
    %157 = arith.subf %153, %156 : vector<2x8x8xf32>
    %158 = math.exp %157 : vector<2x8x8xf32>
    %cst_56 = arith.constant dense<0.000000e+00> : vector<2x8xf32>
    %159 = vector.multi_reduction <add>, %158, %cst_56 [2] : vector<2x8x8xf32> to vector<2x8xf32>
    %160 = vector.shape_cast %159 : vector<2x8xf32> to vector<2x8x1xf32>
    %161 = vector.broadcast %160 : vector<2x8x1xf32> to vector<2x8x8xf32>
    %162 = arith.divf %158, %161 : vector<2x8x8xf32>
    %163 = vector.extract_strided_slice %44 {offsets = [0, 0, 28], sizes = [2, 8, 4], strides = [1, 1, 1]} : vector<2x8x32xf32> to vector<2x8x4xf32>
    "tpu.trace_start"() <{level = 10 : i32, message = "nlk,nkd->nld"}> : () -> ()
    %cst_57 = arith.constant dense<0.000000e+00> : vector<2x8x4xf32>
    %164 = tpu.matmul %162, %163, %cst_57 {dimension_numbers = #tpu.dot_dimension_numbers<[2], [1], [1], [2], [0, 0, 0, 1, 1, 2], [0], [0]>} : vector<2x8x8xf32>, vector<2x8x4xf32>, vector<2x8x4xf32> -> vector<2x8x4xf32>
    "tpu.trace_stop"() : () -> ()
    %165 = tpu.concatenate %59, %74, %89, %104, %119, %134, %149, %164 in 2 : vector<2x8x4xf32>, vector<2x8x4xf32>, vector<2x8x4xf32>, vector<2x8x4xf32>, vector<2x8x4xf32>, vector<2x8x4xf32>, vector<2x8x4xf32>, vector<2x8x4xf32> -> vector<2x8x32xf32>
    %166 = vector.shape_cast %165 : vector<2x8x32xf32> to vector<16x32xf32>
    %cst_58 = arith.constant dense<0.000000e+00> : vector<16x32xf32>
    %167 = tpu.matmul %166, %32, %cst_58 {dimension_numbers = #tpu.dot_dimension_numbers<[1], [0], [0], [1], [0, 0, 1, 1], [], []>} : vector<16x32xf32>, vector<32x32xf32>, vector<16x32xf32> -> vector<16x32xf32>
    %168 = vector.broadcast %33 : vector<1x32xf32> to vector<16x32xf32>
    %169 = arith.addf %167, %168 : vector<16x32xf32>
    %c0_59 = arith.constant 0 : index
    %c0_60 = arith.constant 0 : index
    %170 = vector.load %arg9[%c0_59, %c0_60] : memref<16x32xf32, #tpu.memory_space<vmem>>, vector<16x32xf32>
    %c0_61 = arith.constant 0 : index
    %c0_62 = arith.constant 0 : index
    %171 = vector.load %arg10[%c0_61, %c0_62] : memref<16x32xf32, #tpu.memory_space<vmem>>, vector<16x32xf32>
    %172 = arith.addf %0, %169 : vector<16x32xf32>
    %173 = vector.shape_cast %172 : vector<16x32xf32> to vector<1x16x32xf32>
    %cst_63 = arith.constant dense<0.000000e+00> : vector<1xf32>
    %174 = vector.multi_reduction <add>, %173, %cst_63 [1, 2] : vector<1x16x32xf32> to vector<1xf32>
    %175 = vector.shape_cast %174 : vector<1xf32> to vector<1x1x1xf32>
    %176 = vector.extract %175[0, 0, 0] : f32 from vector<1x1x1xf32>
    %cst_64 = arith.constant 0.001953125 : f32
    %177 = arith.mulf %176, %cst_64 : f32
    %178 = arith.mulf %172, %172 : vector<16x32xf32>
    %179 = vector.shape_cast %178 : vector<16x32xf32> to vector<1x16x32xf32>
    %cst_65 = arith.constant dense<0.000000e+00> : vector<1xf32>
    %180 = vector.multi_reduction <add>, %179, %cst_65 [1, 2] : vector<1x16x32xf32> to vector<1xf32>
    %181 = vector.shape_cast %180 : vector<1xf32> to vector<1x1x1xf32>
    %182 = vector.extract %181[0, 0, 0] : f32 from vector<1x1x1xf32>
    %cst_66 = arith.constant 0.001953125 : f32
    %183 = arith.mulf %182, %cst_66 : f32
    %184 = arith.mulf %177, %177 : f32
    %185 = arith.subf %183, %184 : f32
    %186 = vector.broadcast %177 : f32 to vector<16x32xf32>
    %187 = arith.subf %172, %186 : vector<16x32xf32>
    %cst_67 = arith.constant 9.99999974E-6 : f32
    %188 = arith.addf %185, %cst_67 : f32
    %189 = math.rsqrt %188 : f32
    %190 = vector.broadcast %189 : f32 to vector<16x32xf32>
    %191 = arith.mulf %187, %190 : vector<16x32xf32>
    %192 = arith.mulf %191, %170 : vector<16x32xf32>
    %193 = arith.addf %192, %171 : vector<16x32xf32>
    %c0_68 = arith.constant 0 : index
    %c0_69 = arith.constant 0 : index
    %194 = vector.load %arg11[%c0_68, %c0_69] : memref<32x96xf32, #tpu.memory_space<vmem>>, vector<32x96xf32>
    %c0_70 = arith.constant 0 : index
    %c0_71 = arith.constant 0 : index
    %195 = vector.load %arg12[%c0_70, %c0_71] : memref<1x96xf32, #tpu.memory_space<vmem>>, vector<1x96xf32>
    %c0_72 = arith.constant 0 : index
    %c0_73 = arith.constant 0 : index
    %196 = vector.load %arg13[%c0_72, %c0_73] : memref<32x32xf32, #tpu.memory_space<vmem>>, vector<32x32xf32>
    %c0_74 = arith.constant 0 : index
    %c0_75 = arith.constant 0 : index
    %197 = vector.load %arg14[%c0_74, %c0_75] : memref<1x32xf32, #tpu.memory_space<vmem>>, vector<1x32xf32>
    %198 = vector.extract_strided_slice %194 {offsets = [0, 0], sizes = [32, 32], strides = [1, 1]} : vector<32x96xf32> to vector<32x32xf32>
    %cst_76 = arith.constant dense<0.000000e+00> : vector<16x32xf32>
    %199 = tpu.matmul %193, %198, %cst_76 {dimension_numbers = #tpu.dot_dimension_numbers<[1], [0], [0], [1], [0, 0, 1, 1], [], []>} : vector<16x32xf32>, vector<32x32xf32>, vector<16x32xf32> -> vector<16x32xf32>
    %200 = vector.extract_strided_slice %195 {offsets = [0, 0], sizes = [1, 32], strides = [1, 1]} : vector<1x96xf32> to vector<1x32xf32>
    %201 = vector.broadcast %200 : vector<1x32xf32> to vector<16x32xf32>
    %202 = arith.addf %199, %201 : vector<16x32xf32>
    %203 = vector.extract_strided_slice %194 {offsets = [0, 32], sizes = [32, 64], strides = [1, 1]} : vector<32x96xf32> to vector<32x64xf32>
    %cst_77 = arith.constant dense<0.000000e+00> : vector<32x64xf32>
    %204 = tpu.matmul %1, %203, %cst_77 {dimension_numbers = #tpu.dot_dimension_numbers<[1], [0], [0], [1], [0, 0, 1, 1], [], []>} : vector<32x32xf32>, vector<32x64xf32>, vector<32x64xf32> -> vector<32x64xf32>
    %205 = vector.extract_strided_slice %195 {offsets = [0, 32], sizes = [1, 64], strides = [1, 1]} : vector<1x96xf32> to vector<1x64xf32>
    %206 = vector.broadcast %205 : vector<1x64xf32> to vector<32x64xf32>
    %207 = arith.addf %204, %206 : vector<32x64xf32>
    %208 = vector.extract_strided_slice %207 {offsets = [0, 0], sizes = [32, 32], strides = [1, 1]} : vector<32x64xf32> to vector<32x32xf32>
    %209 = vector.extract_strided_slice %207 {offsets = [0, 32], sizes = [32, 32], strides = [1, 1]} : vector<32x64xf32> to vector<32x32xf32>
    %cst_78 = arith.constant 5.000000e-01 : f32
    %210 = vector.broadcast %cst_78 : f32 to vector<16x32xf32>
    %211 = arith.mulf %202, %210 : vector<16x32xf32>
    %212 = vector.shape_cast %211 : vector<16x32xf32> to vector<2x8x32xf32>
    %213 = vector.shape_cast %208 : vector<32x32xf32> to vector<2x16x32xf32>
    %214 = vector.shape_cast %209 : vector<32x32xf32> to vector<2x16x32xf32>
    %215 = vector.extract_strided_slice %212 {offsets = [0, 0, 0], sizes = [2, 8, 4], strides = [1, 1, 1]} : vector<2x8x32xf32> to vector<2x8x4xf32>
    %216 = vector.extract_strided_slice %213 {offsets = [0, 0, 0], sizes = [2, 16, 4], strides = [1, 1, 1]} : vector<2x16x32xf32> to vector<2x16x4xf32>
    "tpu.trace_start"() <{level = 10 : i32, message = "nld,nkd->nlk"}> : () -> ()
    %cst_79 = arith.constant dense<0.000000e+00> : vector<2x8x16xf32>
    %217 = tpu.matmul %215, %216, %cst_79 {dimension_numbers = #tpu.dot_dimension_numbers<[2], [2], [1], [1], [0, 0, 0, 1, 1, 1], [0], [0]>} : vector<2x8x4xf32>, vector<2x16x4xf32>, vector<2x8x16xf32> -> vector<2x8x16xf32>
    "tpu.trace_stop"() : () -> ()
    %218 = arith.addf %217, %29 : vector<2x8x16xf32>
    %cst_80 = arith.constant dense<0xFF800000> : vector<2x8xf32>
    %219 = vector.multi_reduction <maximumf>, %218, %cst_80 [2] : vector<2x8x16xf32> to vector<2x8xf32>
    %220 = vector.shape_cast %219 : vector<2x8xf32> to vector<2x8x1xf32>
    %221 = vector.broadcast %220 : vector<2x8x1xf32> to vector<2x8x16xf32>
    %222 = arith.subf %218, %221 : vector<2x8x16xf32>
    %223 = math.exp %222 : vector<2x8x16xf32>
    %cst_81 = arith.constant dense<0.000000e+00> : vector<2x8xf32>
    %224 = vector.multi_reduction <add>, %223, %cst_81 [2] : vector<2x8x16xf32> to vector<2x8xf32>
    %225 = vector.shape_cast %224 : vector<2x8xf32> to vector<2x8x1xf32>
    %226 = vector.broadcast %225 : vector<2x8x1xf32> to vector<2x8x16xf32>
    %227 = arith.divf %223, %226 : vector<2x8x16xf32>
    %228 = vector.extract_strided_slice %214 {offsets = [0, 0, 0], sizes = [2, 16, 4], strides = [1, 1, 1]} : vector<2x16x32xf32> to vector<2x16x4xf32>
    "tpu.trace_start"() <{level = 10 : i32, message = "nlk,nkd->nld"}> : () -> ()
    %cst_82 = arith.constant dense<0.000000e+00> : vector<2x8x4xf32>
    %229 = tpu.matmul %227, %228, %cst_82 {dimension_numbers = #tpu.dot_dimension_numbers<[2], [1], [1], [2], [0, 0, 0, 1, 1, 2], [0], [0]>} : vector<2x8x16xf32>, vector<2x16x4xf32>, vector<2x8x4xf32> -> vector<2x8x4xf32>
    "tpu.trace_stop"() : () -> ()
    %230 = vector.extract_strided_slice %212 {offsets = [0, 0, 4], sizes = [2, 8, 4], strides = [1, 1, 1]} : vector<2x8x32xf32> to vector<2x8x4xf32>
    %231 = vector.extract_strided_slice %213 {offsets = [0, 0, 4], sizes = [2, 16, 4], strides = [1, 1, 1]} : vector<2x16x32xf32> to vector<2x16x4xf32>
    "tpu.trace_start"() <{level = 10 : i32, message = "nld,nkd->nlk"}> : () -> ()
    %cst_83 = arith.constant dense<0.000000e+00> : vector<2x8x16xf32>
    %232 = tpu.matmul %230, %231, %cst_83 {dimension_numbers = #tpu.dot_dimension_numbers<[2], [2], [1], [1], [0, 0, 0, 1, 1, 1], [0], [0]>} : vector<2x8x4xf32>, vector<2x16x4xf32>, vector<2x8x16xf32> -> vector<2x8x16xf32>
    "tpu.trace_stop"() : () -> ()
    %233 = arith.addf %232, %29 : vector<2x8x16xf32>
    %cst_84 = arith.constant dense<0xFF800000> : vector<2x8xf32>
    %234 = vector.multi_reduction <maximumf>, %233, %cst_84 [2] : vector<2x8x16xf32> to vector<2x8xf32>
    %235 = vector.shape_cast %234 : vector<2x8xf32> to vector<2x8x1xf32>
    %236 = vector.broadcast %235 : vector<2x8x1xf32> to vector<2x8x16xf32>
    %237 = arith.subf %233, %236 : vector<2x8x16xf32>
    %238 = math.exp %237 : vector<2x8x16xf32>
    %cst_85 = arith.constant dense<0.000000e+00> : vector<2x8xf32>
    %239 = vector.multi_reduction <add>, %238, %cst_85 [2] : vector<2x8x16xf32> to vector<2x8xf32>
    %240 = vector.shape_cast %239 : vector<2x8xf32> to vector<2x8x1xf32>
    %241 = vector.broadcast %240 : vector<2x8x1xf32> to vector<2x8x16xf32>
    %242 = arith.divf %238, %241 : vector<2x8x16xf32>
    %243 = vector.extract_strided_slice %214 {offsets = [0, 0, 4], sizes = [2, 16, 4], strides = [1, 1, 1]} : vector<2x16x32xf32> to vector<2x16x4xf32>
    "tpu.trace_start"() <{level = 10 : i32, message = "nlk,nkd->nld"}> : () -> ()
    %cst_86 = arith.constant dense<0.000000e+00> : vector<2x8x4xf32>
    %244 = tpu.matmul %242, %243, %cst_86 {dimension_numbers = #tpu.dot_dimension_numbers<[2], [1], [1], [2], [0, 0, 0, 1, 1, 2], [0], [0]>} : vector<2x8x16xf32>, vector<2x16x4xf32>, vector<2x8x4xf32> -> vector<2x8x4xf32>
    "tpu.trace_stop"() : () -> ()
    %245 = vector.extract_strided_slice %212 {offsets = [0, 0, 8], sizes = [2, 8, 4], strides = [1, 1, 1]} : vector<2x8x32xf32> to vector<2x8x4xf32>
    %246 = vector.extract_strided_slice %213 {offsets = [0, 0, 8], sizes = [2, 16, 4], strides = [1, 1, 1]} : vector<2x16x32xf32> to vector<2x16x4xf32>
    "tpu.trace_start"() <{level = 10 : i32, message = "nld,nkd->nlk"}> : () -> ()
    %cst_87 = arith.constant dense<0.000000e+00> : vector<2x8x16xf32>
    %247 = tpu.matmul %245, %246, %cst_87 {dimension_numbers = #tpu.dot_dimension_numbers<[2], [2], [1], [1], [0, 0, 0, 1, 1, 1], [0], [0]>} : vector<2x8x4xf32>, vector<2x16x4xf32>, vector<2x8x16xf32> -> vector<2x8x16xf32>
    "tpu.trace_stop"() : () -> ()
    %248 = arith.addf %247, %29 : vector<2x8x16xf32>
    %cst_88 = arith.constant dense<0xFF800000> : vector<2x8xf32>
    %249 = vector.multi_reduction <maximumf>, %248, %cst_88 [2] : vector<2x8x16xf32> to vector<2x8xf32>
    %250 = vector.shape_cast %249 : vector<2x8xf32> to vector<2x8x1xf32>
    %251 = vector.broadcast %250 : vector<2x8x1xf32> to vector<2x8x16xf32>
    %252 = arith.subf %248, %251 : vector<2x8x16xf32>
    %253 = math.exp %252 : vector<2x8x16xf32>
    %cst_89 = arith.constant dense<0.000000e+00> : vector<2x8xf32>
    %254 = vector.multi_reduction <add>, %253, %cst_89 [2] : vector<2x8x16xf32> to vector<2x8xf32>
    %255 = vector.shape_cast %254 : vector<2x8xf32> to vector<2x8x1xf32>
    %256 = vector.broadcast %255 : vector<2x8x1xf32> to vector<2x8x16xf32>
    %257 = arith.divf %253, %256 : vector<2x8x16xf32>
    %258 = vector.extract_strided_slice %214 {offsets = [0, 0, 8], sizes = [2, 16, 4], strides = [1, 1, 1]} : vector<2x16x32xf32> to vector<2x16x4xf32>
    "tpu.trace_start"() <{level = 10 : i32, message = "nlk,nkd->nld"}> : () -> ()
    %cst_90 = arith.constant dense<0.000000e+00> : vector<2x8x4xf32>
    %259 = tpu.matmul %257, %258, %cst_90 {dimension_numbers = #tpu.dot_dimension_numbers<[2], [1], [1], [2], [0, 0, 0, 1, 1, 2], [0], [0]>} : vector<2x8x16xf32>, vector<2x16x4xf32>, vector<2x8x4xf32> -> vector<2x8x4xf32>
    "tpu.trace_stop"() : () -> ()
    %260 = vector.extract_strided_slice %212 {offsets = [0, 0, 12], sizes = [2, 8, 4], strides = [1, 1, 1]} : vector<2x8x32xf32> to vector<2x8x4xf32>
    %261 = vector.extract_strided_slice %213 {offsets = [0, 0, 12], sizes = [2, 16, 4], strides = [1, 1, 1]} : vector<2x16x32xf32> to vector<2x16x4xf32>
    "tpu.trace_start"() <{level = 10 : i32, message = "nld,nkd->nlk"}> : () -> ()
    %cst_91 = arith.constant dense<0.000000e+00> : vector<2x8x16xf32>
    %262 = tpu.matmul %260, %261, %cst_91 {dimension_numbers = #tpu.dot_dimension_numbers<[2], [2], [1], [1], [0, 0, 0, 1, 1, 1], [0], [0]>} : vector<2x8x4xf32>, vector<2x16x4xf32>, vector<2x8x16xf32> -> vector<2x8x16xf32>
    "tpu.trace_stop"() : () -> ()
    %263 = arith.addf %262, %29 : vector<2x8x16xf32>
    %cst_92 = arith.constant dense<0xFF800000> : vector<2x8xf32>
    %264 = vector.multi_reduction <maximumf>, %263, %cst_92 [2] : vector<2x8x16xf32> to vector<2x8xf32>
    %265 = vector.shape_cast %264 : vector<2x8xf32> to vector<2x8x1xf32>
    %266 = vector.broadcast %265 : vector<2x8x1xf32> to vector<2x8x16xf32>
    %267 = arith.subf %263, %266 : vector<2x8x16xf32>
    %268 = math.exp %267 : vector<2x8x16xf32>
    %cst_93 = arith.constant dense<0.000000e+00> : vector<2x8xf32>
    %269 = vector.multi_reduction <add>, %268, %cst_93 [2] : vector<2x8x16xf32> to vector<2x8xf32>
    %270 = vector.shape_cast %269 : vector<2x8xf32> to vector<2x8x1xf32>
    %271 = vector.broadcast %270 : vector<2x8x1xf32> to vector<2x8x16xf32>
    %272 = arith.divf %268, %271 : vector<2x8x16xf32>
    %273 = vector.extract_strided_slice %214 {offsets = [0, 0, 12], sizes = [2, 16, 4], strides = [1, 1, 1]} : vector<2x16x32xf32> to vector<2x16x4xf32>
    "tpu.trace_start"() <{level = 10 : i32, message = "nlk,nkd->nld"}> : () -> ()
    %cst_94 = arith.constant dense<0.000000e+00> : vector<2x8x4xf32>
    %274 = tpu.matmul %272, %273, %cst_94 {dimension_numbers = #tpu.dot_dimension_numbers<[2], [1], [1], [2], [0, 0, 0, 1, 1, 2], [0], [0]>} : vector<2x8x16xf32>, vector<2x16x4xf32>, vector<2x8x4xf32> -> vector<2x8x4xf32>
    "tpu.trace_stop"() : () -> ()
    %275 = vector.extract_strided_slice %212 {offsets = [0, 0, 16], sizes = [2, 8, 4], strides = [1, 1, 1]} : vector<2x8x32xf32> to vector<2x8x4xf32>
    %276 = vector.extract_strided_slice %213 {offsets = [0, 0, 16], sizes = [2, 16, 4], strides = [1, 1, 1]} : vector<2x16x32xf32> to vector<2x16x4xf32>
    "tpu.trace_start"() <{level = 10 : i32, message = "nld,nkd->nlk"}> : () -> ()
    %cst_95 = arith.constant dense<0.000000e+00> : vector<2x8x16xf32>
    %277 = tpu.matmul %275, %276, %cst_95 {dimension_numbers = #tpu.dot_dimension_numbers<[2], [2], [1], [1], [0, 0, 0, 1, 1, 1], [0], [0]>} : vector<2x8x4xf32>, vector<2x16x4xf32>, vector<2x8x16xf32> -> vector<2x8x16xf32>
    "tpu.trace_stop"() : () -> ()
    %278 = arith.addf %277, %29 : vector<2x8x16xf32>
    %cst_96 = arith.constant dense<0xFF800000> : vector<2x8xf32>
    %279 = vector.multi_reduction <maximumf>, %278, %cst_96 [2] : vector<2x8x16xf32> to vector<2x8xf32>
    %280 = vector.shape_cast %279 : vector<2x8xf32> to vector<2x8x1xf32>
    %281 = vector.broadcast %280 : vector<2x8x1xf32> to vector<2x8x16xf32>
    %282 = arith.subf %278, %281 : vector<2x8x16xf32>
    %283 = math.exp %282 : vector<2x8x16xf32>
    %cst_97 = arith.constant dense<0.000000e+00> : vector<2x8xf32>
    %284 = vector.multi_reduction <add>, %283, %cst_97 [2] : vector<2x8x16xf32> to vector<2x8xf32>
    %285 = vector.shape_cast %284 : vector<2x8xf32> to vector<2x8x1xf32>
    %286 = vector.broadcast %285 : vector<2x8x1xf32> to vector<2x8x16xf32>
    %287 = arith.divf %283, %286 : vector<2x8x16xf32>
    %288 = vector.extract_strided_slice %214 {offsets = [0, 0, 16], sizes = [2, 16, 4], strides = [1, 1, 1]} : vector<2x16x32xf32> to vector<2x16x4xf32>
    "tpu.trace_start"() <{level = 10 : i32, message = "nlk,nkd->nld"}> : () -> ()
    %cst_98 = arith.constant dense<0.000000e+00> : vector<2x8x4xf32>
    %289 = tpu.matmul %287, %288, %cst_98 {dimension_numbers = #tpu.dot_dimension_numbers<[2], [1], [1], [2], [0, 0, 0, 1, 1, 2], [0], [0]>} : vector<2x8x16xf32>, vector<2x16x4xf32>, vector<2x8x4xf32> -> vector<2x8x4xf32>
    "tpu.trace_stop"() : () -> ()
    %290 = vector.extract_strided_slice %212 {offsets = [0, 0, 20], sizes = [2, 8, 4], strides = [1, 1, 1]} : vector<2x8x32xf32> to vector<2x8x4xf32>
    %291 = vector.extract_strided_slice %213 {offsets = [0, 0, 20], sizes = [2, 16, 4], strides = [1, 1, 1]} : vector<2x16x32xf32> to vector<2x16x4xf32>
    "tpu.trace_start"() <{level = 10 : i32, message = "nld,nkd->nlk"}> : () -> ()
    %cst_99 = arith.constant dense<0.000000e+00> : vector<2x8x16xf32>
    %292 = tpu.matmul %290, %291, %cst_99 {dimension_numbers = #tpu.dot_dimension_numbers<[2], [2], [1], [1], [0, 0, 0, 1, 1, 1], [0], [0]>} : vector<2x8x4xf32>, vector<2x16x4xf32>, vector<2x8x16xf32> -> vector<2x8x16xf32>
    "tpu.trace_stop"() : () -> ()
    %293 = arith.addf %292, %29 : vector<2x8x16xf32>
    %cst_100 = arith.constant dense<0xFF800000> : vector<2x8xf32>
    %294 = vector.multi_reduction <maximumf>, %293, %cst_100 [2] : vector<2x8x16xf32> to vector<2x8xf32>
    %295 = vector.shape_cast %294 : vector<2x8xf32> to vector<2x8x1xf32>
    %296 = vector.broadcast %295 : vector<2x8x1xf32> to vector<2x8x16xf32>
    %297 = arith.subf %293, %296 : vector<2x8x16xf32>
    %298 = math.exp %297 : vector<2x8x16xf32>
    %cst_101 = arith.constant dense<0.000000e+00> : vector<2x8xf32>
    %299 = vector.multi_reduction <add>, %298, %cst_101 [2] : vector<2x8x16xf32> to vector<2x8xf32>
    %300 = vector.shape_cast %299 : vector<2x8xf32> to vector<2x8x1xf32>
    %301 = vector.broadcast %300 : vector<2x8x1xf32> to vector<2x8x16xf32>
    %302 = arith.divf %298, %301 : vector<2x8x16xf32>
    %303 = vector.extract_strided_slice %214 {offsets = [0, 0, 20], sizes = [2, 16, 4], strides = [1, 1, 1]} : vector<2x16x32xf32> to vector<2x16x4xf32>
    "tpu.trace_start"() <{level = 10 : i32, message = "nlk,nkd->nld"}> : () -> ()
    %cst_102 = arith.constant dense<0.000000e+00> : vector<2x8x4xf32>
    %304 = tpu.matmul %302, %303, %cst_102 {dimension_numbers = #tpu.dot_dimension_numbers<[2], [1], [1], [2], [0, 0, 0, 1, 1, 2], [0], [0]>} : vector<2x8x16xf32>, vector<2x16x4xf32>, vector<2x8x4xf32> -> vector<2x8x4xf32>
    "tpu.trace_stop"() : () -> ()
    %305 = vector.extract_strided_slice %212 {offsets = [0, 0, 24], sizes = [2, 8, 4], strides = [1, 1, 1]} : vector<2x8x32xf32> to vector<2x8x4xf32>
    %306 = vector.extract_strided_slice %213 {offsets = [0, 0, 24], sizes = [2, 16, 4], strides = [1, 1, 1]} : vector<2x16x32xf32> to vector<2x16x4xf32>
    "tpu.trace_start"() <{level = 10 : i32, message = "nld,nkd->nlk"}> : () -> ()
    %cst_103 = arith.constant dense<0.000000e+00> : vector<2x8x16xf32>
    %307 = tpu.matmul %305, %306, %cst_103 {dimension_numbers = #tpu.dot_dimension_numbers<[2], [2], [1], [1], [0, 0, 0, 1, 1, 1], [0], [0]>} : vector<2x8x4xf32>, vector<2x16x4xf32>, vector<2x8x16xf32> -> vector<2x8x16xf32>
    "tpu.trace_stop"() : () -> ()
    %308 = arith.addf %307, %29 : vector<2x8x16xf32>
    %cst_104 = arith.constant dense<0xFF800000> : vector<2x8xf32>
    %309 = vector.multi_reduction <maximumf>, %308, %cst_104 [2] : vector<2x8x16xf32> to vector<2x8xf32>
    %310 = vector.shape_cast %309 : vector<2x8xf32> to vector<2x8x1xf32>
    %311 = vector.broadcast %310 : vector<2x8x1xf32> to vector<2x8x16xf32>
    %312 = arith.subf %308, %311 : vector<2x8x16xf32>
    %313 = math.exp %312 : vector<2x8x16xf32>
    %cst_105 = arith.constant dense<0.000000e+00> : vector<2x8xf32>
    %314 = vector.multi_reduction <add>, %313, %cst_105 [2] : vector<2x8x16xf32> to vector<2x8xf32>
    %315 = vector.shape_cast %314 : vector<2x8xf32> to vector<2x8x1xf32>
    %316 = vector.broadcast %315 : vector<2x8x1xf32> to vector<2x8x16xf32>
    %317 = arith.divf %313, %316 : vector<2x8x16xf32>
    %318 = vector.extract_strided_slice %214 {offsets = [0, 0, 24], sizes = [2, 16, 4], strides = [1, 1, 1]} : vector<2x16x32xf32> to vector<2x16x4xf32>
    "tpu.trace_start"() <{level = 10 : i32, message = "nlk,nkd->nld"}> : () -> ()
    %cst_106 = arith.constant dense<0.000000e+00> : vector<2x8x4xf32>
    %319 = tpu.matmul %317, %318, %cst_106 {dimension_numbers = #tpu.dot_dimension_numbers<[2], [1], [1], [2], [0, 0, 0, 1, 1, 2], [0], [0]>} : vector<2x8x16xf32>, vector<2x16x4xf32>, vector<2x8x4xf32> -> vector<2x8x4xf32>
    "tpu.trace_stop"() : () -> ()
    %320 = vector.extract_strided_slice %212 {offsets = [0, 0, 28], sizes = [2, 8, 4], strides = [1, 1, 1]} : vector<2x8x32xf32> to vector<2x8x4xf32>
    %321 = vector.extract_strided_slice %213 {offsets = [0, 0, 28], sizes = [2, 16, 4], strides = [1, 1, 1]} : vector<2x16x32xf32> to vector<2x16x4xf32>
    "tpu.trace_start"() <{level = 10 : i32, message = "nld,nkd->nlk"}> : () -> ()
    %cst_107 = arith.constant dense<0.000000e+00> : vector<2x8x16xf32>
    %322 = tpu.matmul %320, %321, %cst_107 {dimension_numbers = #tpu.dot_dimension_numbers<[2], [2], [1], [1], [0, 0, 0, 1, 1, 1], [0], [0]>} : vector<2x8x4xf32>, vector<2x16x4xf32>, vector<2x8x16xf32> -> vector<2x8x16xf32>
    "tpu.trace_stop"() : () -> ()
    %323 = arith.addf %322, %29 : vector<2x8x16xf32>
    %cst_108 = arith.constant dense<0xFF800000> : vector<2x8xf32>
    %324 = vector.multi_reduction <maximumf>, %323, %cst_108 [2] : vector<2x8x16xf32> to vector<2x8xf32>
    %325 = vector.shape_cast %324 : vector<2x8xf32> to vector<2x8x1xf32>
    %326 = vector.broadcast %325 : vector<2x8x1xf32> to vector<2x8x16xf32>
    %327 = arith.subf %323, %326 : vector<2x8x16xf32>
    %328 = math.exp %327 : vector<2x8x16xf32>
    %cst_109 = arith.constant dense<0.000000e+00> : vector<2x8xf32>
    %329 = vector.multi_reduction <add>, %328, %cst_109 [2] : vector<2x8x16xf32> to vector<2x8xf32>
    %330 = vector.shape_cast %329 : vector<2x8xf32> to vector<2x8x1xf32>
    %331 = vector.broadcast %330 : vector<2x8x1xf32> to vector<2x8x16xf32>
    %332 = arith.divf %328, %331 : vector<2x8x16xf32>
    %333 = vector.extract_strided_slice %214 {offsets = [0, 0, 28], sizes = [2, 16, 4], strides = [1, 1, 1]} : vector<2x16x32xf32> to vector<2x16x4xf32>
    "tpu.trace_start"() <{level = 10 : i32, message = "nlk,nkd->nld"}> : () -> ()
    %cst_110 = arith.constant dense<0.000000e+00> : vector<2x8x4xf32>
    %334 = tpu.matmul %332, %333, %cst_110 {dimension_numbers = #tpu.dot_dimension_numbers<[2], [1], [1], [2], [0, 0, 0, 1, 1, 2], [0], [0]>} : vector<2x8x16xf32>, vector<2x16x4xf32>, vector<2x8x4xf32> -> vector<2x8x4xf32>
    "tpu.trace_stop"() : () -> ()
    %335 = tpu.concatenate %229, %244, %259, %274, %289, %304, %319, %334 in 2 : vector<2x8x4xf32>, vector<2x8x4xf32>, vector<2x8x4xf32>, vector<2x8x4xf32>, vector<2x8x4xf32>, vector<2x8x4xf32>, vector<2x8x4xf32>, vector<2x8x4xf32> -> vector<2x8x32xf32>
    %336 = vector.shape_cast %335 : vector<2x8x32xf32> to vector<16x32xf32>
    %cst_111 = arith.constant dense<0.000000e+00> : vector<16x32xf32>
    %337 = tpu.matmul %336, %196, %cst_111 {dimension_numbers = #tpu.dot_dimension_numbers<[1], [0], [0], [1], [0, 0, 1, 1], [], []>} : vector<16x32xf32>, vector<32x32xf32>, vector<16x32xf32> -> vector<16x32xf32>
    %338 = vector.broadcast %197 : vector<1x32xf32> to vector<16x32xf32>
    %339 = arith.addf %337, %338 : vector<16x32xf32>
    %c0_112 = arith.constant 0 : index
    %c0_113 = arith.constant 0 : index
    %340 = vector.load %arg15[%c0_112, %c0_113] : memref<16x32xf32, #tpu.memory_space<vmem>>, vector<16x32xf32>
    %c0_114 = arith.constant 0 : index
    %c0_115 = arith.constant 0 : index
    %341 = vector.load %arg16[%c0_114, %c0_115] : memref<16x32xf32, #tpu.memory_space<vmem>>, vector<16x32xf32>
    %342 = arith.addf %193, %339 : vector<16x32xf32>
    %343 = vector.shape_cast %342 : vector<16x32xf32> to vector<1x16x32xf32>
    %cst_116 = arith.constant dense<0.000000e+00> : vector<1xf32>
    %344 = vector.multi_reduction <add>, %343, %cst_116 [1, 2] : vector<1x16x32xf32> to vector<1xf32>
    %345 = vector.shape_cast %344 : vector<1xf32> to vector<1x1x1xf32>
    %346 = vector.extract %345[0, 0, 0] : f32 from vector<1x1x1xf32>
    %cst_117 = arith.constant 0.001953125 : f32
    %347 = arith.mulf %346, %cst_117 : f32
    %348 = arith.mulf %342, %342 : vector<16x32xf32>
    %349 = vector.shape_cast %348 : vector<16x32xf32> to vector<1x16x32xf32>
    %cst_118 = arith.constant dense<0.000000e+00> : vector<1xf32>
    %350 = vector.multi_reduction <add>, %349, %cst_118 [1, 2] : vector<1x16x32xf32> to vector<1xf32>
    %351 = vector.shape_cast %350 : vector<1xf32> to vector<1x1x1xf32>
    %352 = vector.extract %351[0, 0, 0] : f32 from vector<1x1x1xf32>
    %cst_119 = arith.constant 0.001953125 : f32
    %353 = arith.mulf %352, %cst_119 : f32
    %354 = arith.mulf %347, %347 : f32
    %355 = arith.subf %353, %354 : f32
    %356 = vector.broadcast %347 : f32 to vector<16x32xf32>
    %357 = arith.subf %342, %356 : vector<16x32xf32>
    %cst_120 = arith.constant 9.99999974E-6 : f32
    %358 = arith.addf %355, %cst_120 : f32
    %359 = math.rsqrt %358 : f32
    %360 = vector.broadcast %359 : f32 to vector<16x32xf32>
    %361 = arith.mulf %357, %360 : vector<16x32xf32>
    %362 = arith.mulf %361, %340 : vector<16x32xf32>
    %363 = arith.addf %362, %341 : vector<16x32xf32>
    %c0_121 = arith.constant 0 : index
    %c0_122 = arith.constant 0 : index
    %364 = vector.load %arg17[%c0_121, %c0_122] : memref<32x64xf32, #tpu.memory_space<vmem>>, vector<32x64xf32>
    %cst_123 = arith.constant dense<0.000000e+00> : vector<16x64xf32>
    %365 = tpu.matmul %363, %364, %cst_123 {dimension_numbers = #tpu.dot_dimension_numbers<[1], [0], [0], [1], [0, 0, 1, 1], [], []>} : vector<16x32xf32>, vector<32x64xf32>, vector<16x64xf32> -> vector<16x64xf32>
    %c0_124 = arith.constant 0 : index
    %c0_125 = arith.constant 0 : index
    %366 = vector.load %arg18[%c0_124, %c0_125] : memref<1x64xf32, #tpu.memory_space<vmem>>, vector<1x64xf32>
    %367 = vector.broadcast %366 : vector<1x64xf32> to vector<16x64xf32>
    %368 = arith.addf %365, %367 : vector<16x64xf32>
    %cst_126 = arith.constant 0.000000e+00 : f32
    %369 = vector.broadcast %cst_126 : f32 to vector<16x64xf32>
    %370 = arith.maximumf %368, %369 : vector<16x64xf32>
    %c0_127 = arith.constant 0 : index
    %c0_128 = arith.constant 0 : index
    %371 = vector.load %arg19[%c0_127, %c0_128] : memref<64x32xf32, #tpu.memory_space<vmem>>, vector<64x32xf32>
    %cst_129 = arith.constant dense<0.000000e+00> : vector<16x32xf32>
    %372 = tpu.matmul %370, %371, %cst_129 {dimension_numbers = #tpu.dot_dimension_numbers<[1], [0], [0], [1], [0, 0, 1, 1], [], []>} : vector<16x64xf32>, vector<64x32xf32>, vector<16x32xf32> -> vector<16x32xf32>
    %c0_130 = arith.constant 0 : index
    %c0_131 = arith.constant 0 : index
    %373 = vector.load %arg20[%c0_130, %c0_131] : memref<1x32xf32, #tpu.memory_space<vmem>>, vector<1x32xf32>
    %374 = vector.broadcast %373 : vector<1x32xf32> to vector<16x32xf32>
    %375 = arith.addf %372, %374 : vector<16x32xf32>
    %c0_132 = arith.constant 0 : index
    %c0_133 = arith.constant 0 : index
    %376 = vector.load %arg21[%c0_132, %c0_133] : memref<16x32xf32, #tpu.memory_space<vmem>>, vector<16x32xf32>
    %c0_134 = arith.constant 0 : index
    %c0_135 = arith.constant 0 : index
    %377 = vector.load %arg22[%c0_134, %c0_135] : memref<16x32xf32, #tpu.memory_space<vmem>>, vector<16x32xf32>
    %378 = arith.addf %363, %375 : vector<16x32xf32>
    %379 = vector.shape_cast %378 : vector<16x32xf32> to vector<1x16x32xf32>
    %cst_136 = arith.constant dense<0.000000e+00> : vector<1xf32>
    %380 = vector.multi_reduction <add>, %379, %cst_136 [1, 2] : vector<1x16x32xf32> to vector<1xf32>
    %381 = vector.shape_cast %380 : vector<1xf32> to vector<1x1x1xf32>
    %382 = vector.extract %381[0, 0, 0] : f32 from vector<1x1x1xf32>
    %cst_137 = arith.constant 0.001953125 : f32
    %383 = arith.mulf %382, %cst_137 : f32
    %384 = arith.mulf %378, %378 : vector<16x32xf32>
    %385 = vector.shape_cast %384 : vector<16x32xf32> to vector<1x16x32xf32>
    %cst_138 = arith.constant dense<0.000000e+00> : vector<1xf32>
    %386 = vector.multi_reduction <add>, %385, %cst_138 [1, 2] : vector<1x16x32xf32> to vector<1xf32>
    %387 = vector.shape_cast %386 : vector<1xf32> to vector<1x1x1xf32>
    %388 = vector.extract %387[0, 0, 0] : f32 from vector<1x1x1xf32>
    %cst_139 = arith.constant 0.001953125 : f32
    %389 = arith.mulf %388, %cst_139 : f32
    %390 = arith.mulf %383, %383 : f32
    %391 = arith.subf %389, %390 : f32
    %392 = vector.broadcast %383 : f32 to vector<16x32xf32>
    %393 = arith.subf %378, %392 : vector<16x32xf32>
    %cst_140 = arith.constant 9.99999974E-6 : f32
    %394 = arith.addf %391, %cst_140 : f32
    %395 = math.rsqrt %394 : f32
    %396 = vector.broadcast %395 : f32 to vector<16x32xf32>
    %397 = arith.mulf %393, %396 : vector<16x32xf32>
    %398 = arith.mulf %397, %376 : vector<16x32xf32>
    %399 = arith.addf %398, %377 : vector<16x32xf32>
    %c0_141 = arith.constant 0 : index
    %c0_142 = arith.constant 0 : index
    %400 = vector.load %arg23[%c0_141, %c0_142] : memref<16x32xf32, #tpu.memory_space<vmem>>, vector<16x32xf32>
    tpu.vector_store %arg23[%c0_141, %c0_142], %399 {strides = array<i32>} : memref<16x32xf32, #tpu.memory_space<vmem>>, vector<16x32xf32>,
    return
  }
}

</mosaic_0001>

<bundles_post_ra>
// kernel: transformer_decoder_block.1
= control target key start
LH: loop header
LB: loop body
LE: loop exit
PB: predicated region body
PF: predicated region fallthrough
CT: control target
= control target key end

     0   :  { %vm173_vm0 = vcmask 261120   ;;  %v7864_v8 = vmov 0.0   ;;  %vm7865_vm1 = vmmov 0   ;;  %vm260_vm2 = vcmask 31744   ;;  %s7868_s27 = smov 64   ;;  %s7870_s29 = smov 124   ;;  %s9005_s5 = inlined_call_operand.vmem [shape: f32[32,96], index: 5, kind: input, shape index: {}]   ;;  %s9006_s0 = inlined_call_operand.vmem [shape: f32[16,32], index: 0, kind: input, shape index: {}]   ;;  %s9007_s6 = inlined_call_operand.vmem [shape: f32[1,96], index: 6, kind: input, shape index: {}]   ;;  %s9008_s3 = inlined_call_operand.vmem [shape: s32[2,8], index: 3, kind: input, shape index: {}]   ;;  %s9009_s2 = inlined_call_operand.vmem [shape: s32[8,8], index: 2, kind: input, shape index: {}]   ;;  %s9010_s7 = inlined_call_operand.vmem [shape: f32[32,32], index: 7, kind: input, shape index: {}]   ;;  %s9011_s8 = inlined_call_operand.vmem [shape: f32[1,32], index: 8, kind: input, shape index: {}]   ;;  %s9012_s11 = inlined_call_operand.vmem [shape: f32[32,96], index: 11, kind: input, shape index: {}]   ;;  %s9013_s1 = inlined_call_operand.vmem [shape: f32[32,32], index: 1, kind: input, shape index: {}]   ;;  %s9014_s12 = inlined_call_operand.vmem [shape: f32[1,96], index: 12, kind: input, shape index: {}]   ;;  %s9015_s9 = inlined_call_operand.vmem [shape: f32[16,32], index: 9, kind: input, shape index: {}]   ;;  %s9016_s10 = inlined_call_operand.vmem [shape: f32[16,32], index: 10, kind: input, shape index: {}]   ;;  %s9017_s4 = inlined_call_operand.vmem [shape: s32[2,16], index: 4, kind: input, shape index: {}]   ;;  %s9018_s13 = inlined_call_operand.vmem [shape: f32[32,32], index: 13, kind: input, shape index: {}]   ;;  %s9019_s14 = inlined_call_operand.vmem [shape: f32[1,32], index: 14, kind: input, shape index: {}]   ;;  %s9020_s17 = inlined_call_operand.vmem [shape: f32[32,64], index: 17, kind: input, shape index: {}]   ;;  %s9021_s19 = inlined_call_operand.vmem [shape: f32[64,32], index: 19, kind: input, shape index: {}]   ;;  %s9022_s15 = inlined_call_operand.vmem [shape: f32[16,32], index: 15, kind: input, shape index: {}]   ;;  %s9023_s16 = inlined_call_operand.vmem [shape: f32[16,32], index: 16, kind: input, shape index: {}]   ;;  %s9024_s18 = inlined_call_operand.vmem [shape: f32[1,64], index: 18, kind: input, shape index: {}]   ;;  %s9025_s20 = inlined_call_operand.vmem [shape: f32[1,32], index: 20, kind: input, shape index: {}]   ;;  %s9026_s21 = inlined_call_operand.vmem [shape: f32[16,32], index: 21, kind: input, shape index: {}]   ;;  %s9027_s22 = inlined_call_operand.vmem [shape: f32[16,32], index: 22, kind: input, shape index: {}]   ;;  %s9028_s23 = inlined_call_operand.vmem [shape: f32[16,32], index: 23, kind: output, shape index: {}]  }
   0x1   :  { %9065 = sst [smem:[#allocation2_spill]] %s9005_s5  ;;  %6889 = vmatprep.subr.mxu0 %v7864_v8  ;;  %6891 = vmatprep.mubr.msk.f32.mxu0 %vm7865_vm1, %v7864_v8  ;;  %v7867_v18 = vmov 1966171168   ;;  %v93_v20 = vlaneseq  ;;  %vm414_vm5 = vcmask 64512   ;;  %s7872_s5 = smov 88   ;;  %vm2959_vm6 = vcmask 97280   ;;  %vm8509_vm11 = vmpackc.low %vm260_vm2, %vm260_vm2 }
   0x2   :  { %9066 = sst [smem:[#allocation3_spill]] %s9006_s0  ;;  %s9073_s24 = sld [smem:[#allocation2_spill]]  ;;  %v91_v19 = vunpack.c.l.s4 %v7867_v18  ;;  %vm2962_vm7 = vcmask 130048   ;;  %vm2965_vm8 = vcmask 162816   ;;  %vm2971_vm9 = vcmask 228352  }
   0x3   :  { %9067 = sst [smem:[#allocation4_spill]] %s9007_s6  ;;  %s9074_s28 = sld [smem:[#allocation3_spill]]  ;;  %v94_v23 = vshrl.u32 %v93_v20, 7  ;;  %vm2968_vm10 = vcmask 195584   ;;  %vm6388_vm13 = vcmask 523264  }
   0x4   :  { %9068 = sst [smem:[#allocation5_spill]] %s9008_s3  ;;  %s9075_s30 = sld [smem:[#allocation4_spill]]  ;;  %v92_v22 = vunpack.c.0.s8 %v91_v19 }
   0x5   :  { %9069 = sst [smem:[#allocation6_spill]] %s9009_s2  ;;  %s9076_s0 = sld [smem:[#allocation5_spill]]  ;;  %v8084_v29 = vsub.s32 0, %v94_v23 }
   0x6   :  { %9070 = sst [smem:[#allocation7_spill]] %s9010_s7  ;;  %v8076_v24 = vsub.s32 %v92_v22, %v94_v23  ;;  %s7871_s3 = smov 60  }
   0x7   :  { %9071 = sst [smem:[#allocation8_spill]] %s9011_s8  ;;  %s9077_s8 = sld [smem:[#allocation6_spill]] }
   0x8   :  { %9072 = sst [smem:[#allocation9_spill]] %s9012_s11  ;;  %v157_v0 = vld [vmem:[%s9073_s24] sm:$0xff]  ;;  %v158_v1 = vld [vmem:[%s9073_s24 + $0x8] sm:$0xff]  ;;  %v159_v2 = vld [vmem:[%s9073_s24 + $0x10] sm:$0xff]  ;;  %s7869_s11 = smov 92  }
   0x9   :  { %v7340_v3 = vpack.c.bf16 %v158_v1, %v157_v0  ;;  %v160_v4 = vld [vmem:[%s9073_s24 + $0x18] sm:$0xff]  ;;  %v74_v5 = vld [vmem:[%s9074_s28] sm:$0xff]  ;;  %v75_v7 = vld [vmem:[%s9074_s28 + $0x8] sm:$0xff]  ;;  %s7866_s24 = smov 96   ;;  %s7873_s2 = smov 120  }
   0xa   :  { %v7344_v6 = vpack.c.bf16 %v160_v4, %v159_v2  ;;  %6876 = vmatprep.mubr.msk.f32.mxu1 %vm173_vm0, %v74_v5  ;;  %v6526_v9 = vld [vmem:[%s9075_s30] ss:$0 sm:$0xff]  ;;  %s7874_s30 = smov 56   ;;  %s9061_s25 = smov 84  }
   0xb   :  { %7341 = vmatprep.subr.bf16.mxu1 %v7340_v3  ;;  %v83_v21 = vld [vmem:[%s9076_s0] sm:$0x3]  ;;  %s9063_s7 = smov 116   ;;  %s7877_s0 = smov 52  }
   0xc   :  { %7343 = vmatpush3.bf16.msra.mxu1 %v7340_v3  ;;  %vm84_vm3 = vcmp.ne.s32.totalorder %v83_v21, 0  ;;  %s9045_s26 = smov 80   ;;  %s9047_s6 = smov 112  }
   0xd   :  { %7345 = vmatprep.subr.bf16.mxu1 %v7344_v6  ;;  %v85_v25 = vsel %vm84_vm3, -1e+30, %v7864_v8  ;;  %v80_v27 = vld [vmem:[%s9077_s8] sm:$0xff]  ;;  %s7880_s8 = smov 48  }
   0xe   :  { %v96_v26 = vrot.slane %v85_v25, %v8076_v24  ;;  %vm81_vm4 = vcmp.ne.s32.totalorder %v80_v27, 0 }
   0xf   :  { %v82_v33 = vsel %vm81_vm4, -1e+30, %v7864_v8 }
  0x10   :  { %7347 = vmatpush3.bf16.msra.mxu1 %v7344_v6  ;;  %v104_v28 = vrot.slane %v96_v26, %v8076_v24  ;;  %v97_v30 = vcombine.high %v96_v26, %v96_v26 }
  0x11   :  { %6879 = vmatprep.subr.mxu1 %v7864_v8 }
  0x12   :  { %v115_v31 = vrot.slane %v104_v28, %v8084_v29  ;;  %v111_v32 = vrot.slane %v97_v30, %v8076_v24 }
  0x13   :  { %6877 = vmatmul.mubr.msk.f32.vlgmr.msra.gmra.mrb[0].mxu1 %vm173_vm0, %v75_v7 }
  0x14   :  { %6881 = vmatprep.mubr.msk.f32.mxu1 %vm7865_vm1, %v7864_v8  ;;  %v8089_v34 = vadd.f32 %v115_v31, %v82_v33  ;;  %v119_v35 = vrot.slane %v111_v32, %v8084_v29 }
  0x16   :  { %v8093_v39 = vadd.f32 %v119_v35, %v82_v33 }
  0xe6   :  { %v6878_v10 = vpop.f32.mrb[0].mxu1 }
  0xe7   :  { %v246_v11 = vpop.f32.mrb[1].mxu1  ;;  %v8051_v13 = vadd.f32 %v6878_v10, %v6526_v9 }
  0xe8   :  { %v8047_v12 = vadd.f32 %v6526_v9, %v246_v11 }
  0xe9   :  { %v8066_v17 = vmul.f32 0.5, %v8051_v13 }
  0xea   :  { %258 = vrot.lane.b32.xlu0 %v8047_v12, %s7866_s24  ;;  %v8058_v15 = vmul.f32 0.5, %v8047_v12 }
  0xee   :  { %337 = vrot.lane.b32.xlu0 %v8051_v13, %s7866_s24 }
 0x15c   :  { %v259_v14 = vpop.permute.xlu0 %258 }
 0x15d   :  { %6880 = vmatpush3.xpose.msk.msra.mxu1 %vm260_vm2, %v259_v14 }
 0x15e   :  { %6884 = vmatprep.subr.mxu1 %v7864_v8 }
 0x160   :  { %v338_v16 = vpop.permute.xlu0 %337  ;;  %6882 = vmatmul.mubr.msk.f32.vlgmr.msra.gmra.mrb[2].mxu1 %vm260_vm2, %v8058_v15 }
 0x161   :  { %6885 = vmatpush3.xpose.msk.msra.mxu1 %vm260_vm2, %v338_v16  ;;  %6886 = vmatprep.mubr.msk.f32.mxu1 %vm7865_vm1, %v7864_v8 }
 0x162   :  { %6894 = vmatprep.subr.mxu1 %v7864_v8 }
 0x164   :  { %6887 = vmatmul.mubr.msk.f32.vlgmr.msra.gmra.mrb[4].mxu1 %vm260_vm2, %v8066_v17 }
 0x165   :  { %6896 = vmatprep.mubr.msk.f32.mxu1 %vm7865_vm1, %v7864_v8 }
 0x233   :  { %v332_v36 = vpop.f32.mrb[2].mxu1 }
 0x234   :  { %v333_v37 = vadd.f32 %v332_v36, %v8089_v34  ;;  %v6883_v38 = vpop.f32.mrb[3].mxu1 }
 0x236   :  { %v415_v40 = vsel %vm414_vm5, %v333_v37, -inf }
 0x237   :  { %416 = vmax.xlane.f32.xlu1 %v415_v40  ;;  %v410_v41 = vpop.f32.mrb[4].mxu1 }
 0x238   :  { %v411_v42 = vadd.f32 %v410_v41, %v8093_v39  ;;  %v6888_v43 = vpop.f32.mrb[5].mxu1 }
 0x23a   :  { %v418_v44 = vsel %vm414_vm5, %v411_v42, -inf }
 0x23b   :  { %419 = vmax.xlane.f32.xlu1 %v418_v44 }
 0x24c   :  { %437 = vrot.lane.b32.xlu1 %v8047_v12, %s7868_s27 }
 0x250   :  { %513 = vrot.lane.b32.xlu1 %v8051_v13, %s7868_s27  ;;  %s9041_s27 = smov 76  }
 0x254   :  { %591 = vrot.lane.b32.xlu1 %v8047_v12, %s7869_s11 }
 0x258   :  { %669 = vrot.lane.b32.xlu1 %v8051_v13, %s7869_s11 }
 0x2c4   :  { %v417_v45 = vpop.xlane.xlu1 %416 }
 0x2c5   :  { %v421_v46 = vsub.f32 %v333_v37, %v417_v45 }
 0x2c7   :  { %v423_v47 = vmul.f32 1.442695, %v421_v46 }
 0x2c8   :  { %v420_v48 = vpop.xlane.xlu1 %419 }
 0x2c9   :  { %7728 = vpow2.f32 %v423_v47  ;;  %v422_v49 = vsub.f32 %v411_v42, %v420_v48 }
 0x2cb   :  { %v425_v50 = vmul.f32 1.442695, %v422_v49 }
 0x2cc   :  { %v438_v51 = vpop.permute.xlu1 %437 }
 0x2cd   :  { %7730 = vpow2.f32 %v425_v50  ;;  %6890 = vmatpush3.msra.mxu0 %v438_v51 }
 0x2ce   :  { %6899 = vmatprep.subr.mxu0 %v7864_v8 }
 0x2d0   :  { %v514_v52 = vpop.permute.xlu1 %513 }
 0x2d1   :  { %6895 = vmatpush3.msra.mxu1 %v514_v52 }
 0x2d2   :  { %6904 = vmatprep.subr.mxu1 %v7864_v8 }
 0x2d3   :  { %v7729_v53 = vpop.eup %7728 }
 0x2d4   :  { %v427_v54 = vsel %vm414_vm5, %v7729_v53, 0.0  ;;  %v592_v57 = vpop.permute.xlu1 %591 }
 0x2d5   :  { %428 = vadd.xlane.f32.xlu0 %v427_v54 }
 0x2d7   :  { %v7731_v55 = vpop.eup %7730 }
 0x2d8   :  { %v430_v56 = vsel %vm414_vm5, %v7731_v55, 0.0  ;;  %v670_v58 = vpop.permute.xlu1 %669 }
 0x2d9   :  { %431 = vadd.xlane.f32.xlu1 %v430_v56 }
 0x2ea   :  { %667 = vrot.lane.b32.xlu1 %v8066_v17, %s7870_s29 }
 0x2eb   :  { %589 = vrot.lane.b32.xlu0 %v8058_v15, %s7870_s29 }
 0x362   :  { %v429_v59 = vpop.xlane.xlu0 %428 }
 0x363   :  { %7732 = vrcp.f32 %v429_v59 }
 0x366   :  { %v432_v60 = vpop.xlane.xlu1 %431  ;;  %v590_v1 = vpop.permute.xlu0 %589 }
 0x367   :  { %7734 = vrcp.f32 %v432_v60 }
 0x36a   :  { %v668_v2 = vpop.permute.xlu1 %667 }
 0x36d   :  { %v7733_v61 = vpop.eup %7732 }
 0x36e   :  { %v434_v62 = vmul.f32 %v7733_v61, %v7729_v53 }
 0x370   :  { %6892 = vmatmul.mubr.msk.f32.vlgmr.msra.gmra.mrb[0].mxu0 %vm414_vm5, %v434_v62 }
 0x371   :  { %v7735_v63 = vpop.eup %7734  ;;  %6900 = vmatpush3.xpose.msk.msra.mxu0 %vm260_vm2, %v592_v57  ;;  %6901 = vmatprep.mubr.msk.f32.mxu0 %vm7865_vm1, %v7864_v8 }
 0x372   :  { %v436_v0 = vmul.f32 %v7735_v63, %v7731_v55  ;;  %6909 = vmatprep.subr.mxu0 %v7864_v8 }
 0x374   :  { %6897 = vmatmul.mubr.msk.f32.vlgmr.msra.gmra.mrb[6].mxu1 %vm414_vm5, %v436_v0  ;;  %6902 = vmatmul.mubr.msk.f32.vlgmr.msra.gmra.mrb[2].mxu0 %vm260_vm2, %v590_v1 }
 0x375   :  { %6905 = vmatpush3.xpose.msk.msra.mxu1 %vm260_vm2, %v670_v58  ;;  %6906 = vmatprep.mubr.msk.f32.mxu1 %vm7865_vm1, %v7864_v8 }
 0x376   :  { %6914 = vmatprep.subr.mxu1 %v7864_v8  ;;  %6911 = vmatprep.mubr.msk.f32.mxu0 %vm7865_vm1, %v7864_v8 }
 0x378   :  { %6907 = vmatmul.mubr.msk.f32.vlgmr.msra.gmra.mrb[8].mxu1 %vm260_vm2, %v668_v2 }
 0x379   :  { %6916 = vmatprep.mubr.msk.f32.mxu1 %vm7865_vm1, %v7864_v8 }
 0x443   :  { %v8128_v3 = vpop.f32.mrb[0].mxu0 }
 0x444   :  { %v6893_v4 = vpop.f32.mrb[1].mxu0 }
 0x447   :  { %v8130_v5 = vpop.f32.mrb[6].mxu1  ;;  %v663_v6 = vpop.f32.mrb[2].mxu0 }
 0x448   :  { %v664_v7 = vadd.f32 %v663_v6, %v8089_v34  ;;  %v6898_v9 = vpop.f32.mrb[7].mxu1  ;;  %v6903_v10 = vpop.f32.mrb[3].mxu0 }
 0x44a   :  { %v745_v11 = vsel %vm414_vm5, %v664_v7, -inf }
 0x44b   :  { %746 = vmax.xlane.f32.xlu1 %v745_v11  ;;  %v741_v14 = vpop.f32.mrb[8].mxu1 }
 0x44c   :  { %v742_v16 = vadd.f32 %v741_v14, %v8093_v39  ;;  %v6908_v18 = vpop.f32.mrb[9].mxu1 }
 0x44e   :  { %v748_v19 = vsel %vm414_vm5, %v742_v16, -inf }
 0x44f   :  { %749 = vmax.xlane.f32.xlu0 %v748_v19 }
 0x45c   :  { %767 = vrot.lane.b32.xlu1 %v8047_v12, %s7871_s3 }
 0x460   :  { %921 = vrot.lane.b32.xlu1 %v8047_v12, %s7872_s5 }
 0x464   :  { %999 = vrot.lane.b32.xlu1 %v8051_v13, %s7872_s5 }
 0x465   :  { %843 = vrot.lane.b32.xlu0 %v8051_v13, %s7871_s3  ;;  %s9043_s3 = smov 108  }
 0x469   :  { %919 = vrot.lane.b32.xlu0 %v8058_v15, %s7873_s2 }
 0x4d8   :  { %v747_v20 = vpop.xlane.xlu1 %746 }
 0x4d9   :  { %v751_v21 = vsub.f32 %v664_v7, %v747_v20 }
 0x4db   :  { %v753_v22 = vmul.f32 1.442695, %v751_v21 }
 0x4dc   :  { %v768_v23 = vpop.permute.xlu1 %767  ;;  %v750_v25 = vpop.xlane.xlu0 %749 }
 0x4dd   :  { %7736 = vpow2.f32 %v753_v22  ;;  %v752_v26 = vsub.f32 %v742_v16, %v750_v25  ;;  %6910 = vmatpush3.msra.mxu0 %v768_v23 }
 0x4de   :  { %6919 = vmatprep.subr.mxu0 %v7864_v8 }
 0x4df   :  { %v755_v27 = vmul.f32 1.442695, %v752_v26 }
 0x4e0   :  { %v844_v28 = vpop.permute.xlu0 %843  ;;  %v922_v35 = vpop.permute.xlu1 %921 }
 0x4e1   :  { %7738 = vpow2.f32 %v755_v27  ;;  %6915 = vmatpush3.msra.mxu1 %v844_v28 }
 0x4e2   :  { %6924 = vmatprep.subr.mxu1 %v7864_v8 }
 0x4e4   :  { %v1000_v36 = vpop.permute.xlu1 %999  ;;  %v920_v44 = vpop.permute.xlu0 %919 }
 0x4e7   :  { %v7737_v30 = vpop.eup %7736 }
 0x4e8   :  { %v757_v31 = vsel %vm414_vm5, %v7737_v30, 0.0 }
 0x4e9   :  { %758 = vadd.xlane.f32.xlu1 %v757_v31 }
 0x4eb   :  { %v7739_v32 = vpop.eup %7738 }
 0x4ec   :  { %v760_v33 = vsel %vm414_vm5, %v7739_v32, 0.0 }
 0x4ed   :  { %761 = vadd.xlane.f32.xlu1 %v760_v33 }
 0x4fe   :  { %997 = vrot.lane.b32.xlu1 %v8066_v17, %s7873_s2 }
 0x576   :  { %v759_v37 = vpop.xlane.xlu1 %758 }
 0x577   :  { %7740 = vrcp.f32 %v759_v37 }
 0x57a   :  { %v762_v38 = vpop.xlane.xlu1 %761 }
 0x57b   :  { %7742 = vrcp.f32 %v762_v38 }
 0x57e   :  { %v998_v45 = vpop.permute.xlu1 %997 }
 0x581   :  { %v7741_v40 = vpop.eup %7740 }
 0x582   :  { %v764_v41 = vmul.f32 %v7741_v40, %v7737_v30 }
 0x584   :  { %6912 = vmatmul.mubr.msk.f32.vlgmr.msra.gmra.mrb[4].mxu0 %vm414_vm5, %v764_v41 }
 0x585   :  { %v7743_v42 = vpop.eup %7742  ;;  %6920 = vmatpush3.xpose.msk.msra.mxu0 %vm260_vm2, %v922_v35  ;;  %6921 = vmatprep.mubr.msk.f32.mxu0 %vm7865_vm1, %v7864_v8 }
 0x586   :  { %v766_v43 = vmul.f32 %v7743_v42, %v7739_v32  ;;  %6929 = vmatprep.subr.mxu0 %v7864_v8 }
 0x588   :  { %6917 = vmatmul.mubr.msk.f32.vlgmr.msra.gmra.mrb[10].mxu1 %vm414_vm5, %v766_v43  ;;  %6922 = vmatmul.mubr.msk.f32.vlgmr.msra.gmra.mrb[6].mxu0 %vm260_vm2, %v920_v44 }
 0x589   :  { %6925 = vmatpush3.xpose.msk.msra.mxu1 %vm260_vm2, %v1000_v36  ;;  %6926 = vmatprep.mubr.msk.f32.mxu1 %vm7865_vm1, %v7864_v8 }
 0x58a   :  { %6934 = vmatprep.subr.mxu1 %v7864_v8  ;;  %6931 = vmatprep.mubr.msk.f32.mxu0 %vm7865_vm1, %v7864_v8 }
 0x58c   :  { %6927 = vmatmul.mubr.msk.f32.vlgmr.msra.gmra.mrb[12].mxu1 %vm260_vm2, %v998_v45 }
 0x58d   :  { %6936 = vmatprep.mubr.msk.f32.mxu1 %vm7865_vm1, %v7864_v8 }
 0x657   :  { %v8166_v46 = vpop.f32.mrb[4].mxu0 }
 0x658   :  { %v6913_v47 = vpop.f32.mrb[5].mxu0 }
 0x65b   :  { %v8168_v48 = vpop.f32.mrb[10].mxu1  ;;  %v993_v49 = vpop.f32.mrb[6].mxu0 }
 0x65c   :  { %v994_v50 = vadd.f32 %v993_v49, %v8089_v34  ;;  %v6918_v51 = vpop.f32.mrb[11].mxu1  ;;  %v6923_v52 = vpop.f32.mrb[7].mxu0 }
 0x65e   :  { %v1075_v53 = vsel %vm414_vm5, %v994_v50, -inf }
 0x65f   :  { %1076 = vmax.xlane.f32.xlu0 %v1075_v53  ;;  %v1071_v54 = vpop.f32.mrb[12].mxu1 }
 0x660   :  { %v1072_v55 = vadd.f32 %v1071_v54, %v8093_v39  ;;  %v6928_v56 = vpop.f32.mrb[13].mxu1 }
 0x662   :  { %v1078_v57 = vsel %vm414_vm5, %v1072_v55, -inf }
 0x663   :  { %1079 = vmax.xlane.f32.xlu1 %v1078_v57 }
 0x674   :  { %1097 = vrot.lane.b32.xlu1 %v8047_v12, %s7874_s30 }
 0x675   :  { %1173 = vrot.lane.b32.xlu0 %v8051_v13, %s7874_s30  ;;  %s7883_s30 = smov 44  }
 0x678   :  { %1251 = vrot.lane.b32.xlu1 %v8047_v12, %s9061_s25 }
 0x67c   :  { %1329 = vrot.lane.b32.xlu1 %v8051_v13, %s9061_s25  ;;  %s9080_s25 = sld [smem:[#allocation9_spill]] }
 0x680   :  { %1327 = vrot.lane.b32.xlu1 %v8066_v17, %s9063_s7 }
 0x6ec   :  { %v1077_v58 = vpop.xlane.xlu0 %1076 }
 0x6ed   :  { %v1081_v59 = vsub.f32 %v994_v50, %v1077_v58 }
 0x6ef   :  { %v1083_v60 = vmul.f32 1.442695, %v1081_v59 }
 0x6f0   :  { %v1174_v61 = vpop.permute.xlu0 %1173  ;;  %v1080_v62 = vpop.xlane.xlu1 %1079 }
 0x6f1   :  { %7744 = vpow2.f32 %v1083_v60  ;;  %v1082_v63 = vsub.f32 %v1072_v55, %v1080_v62  ;;  %6935 = vmatpush3.msra.mxu1 %v1174_v61 }
 0x6f2   :  { %6944 = vmatprep.subr.mxu1 %v7864_v8 }
 0x6f3   :  { %v1085_v0 = vmul.f32 1.442695, %v1082_v63 }
 0x6f4   :  { %v1098_v1 = vpop.permute.xlu1 %1097 }
 0x6f5   :  { %7746 = vpow2.f32 %v1085_v0  ;;  %6930 = vmatpush3.msra.mxu0 %v1098_v1 }
 0x6f6   :  { %6939 = vmatprep.subr.mxu0 %v7864_v8 }
 0x6f8   :  { %v1252_v11 = vpop.permute.xlu1 %1251 }
 0x6fb   :  { %v7745_v2 = vpop.eup %7744 }
 0x6fc   :  { %v1087_v4 = vsel %vm414_vm5, %v7745_v2, 0.0  ;;  %v1330_v19 = vpop.permute.xlu1 %1329 }
 0x6fd   :  { %1088 = vadd.xlane.f32.xlu0 %v1087_v4 }
 0x6ff   :  { %v7747_v6 = vpop.eup %7746 }
 0x700   :  { %v1090_v7 = vsel %vm414_vm5, %v7747_v6, 0.0  ;;  %v1328_v22 = vpop.permute.xlu1 %1327 }
 0x701   :  { %1091 = vadd.xlane.f32.xlu0 %v1090_v7 }
 0x717   :  { %1249 = vrot.lane.b32.xlu0 %v8058_v15, %s9063_s7 }
 0x78a   :  { %v1089_v9 = vpop.xlane.xlu0 %1088 }
 0x78b   :  { %7748 = vrcp.f32 %v1089_v9 }
 0x78e   :  { %v1092_v10 = vpop.xlane.xlu0 %1091 }
 0x78f   :  { %7750 = vrcp.f32 %v1092_v10 }
 0x792   :  { %v1250_v21 = vpop.permute.xlu0 %1249 }
 0x795   :  { %v7749_v14 = vpop.eup %7748 }
 0x796   :  { %v1094_v16 = vmul.f32 %v7749_v14, %v7745_v2 }
 0x798   :  { %6932 = vmatmul.mubr.msk.f32.vlgmr.msra.gmra.mrb[8].mxu0 %vm414_vm5, %v1094_v16 }
 0x799   :  { %v7751_v18 = vpop.eup %7750  ;;  %6940 = vmatpush3.xpose.msk.msra.mxu0 %vm260_vm2, %v1252_v11  ;;  %6941 = vmatprep.mubr.msk.f32.mxu0 %vm7865_vm1, %v7864_v8 }
 0x79a   :  { %v1096_v20 = vmul.f32 %v7751_v18, %v7747_v6  ;;  %6949 = vmatprep.subr.mxu0 %v7864_v8 }
 0x79c   :  { %6937 = vmatmul.mubr.msk.f32.vlgmr.msra.gmra.mrb[14].mxu1 %vm414_vm5, %v1096_v20  ;;  %6942 = vmatmul.mubr.msk.f32.vlgmr.msra.gmra.mrb[10].mxu0 %vm260_vm2, %v1250_v21 }
 0x79d   :  { %6945 = vmatpush3.xpose.msk.msra.mxu1 %vm260_vm2, %v1330_v19  ;;  %6946 = vmatprep.mubr.msk.f32.mxu1 %vm7865_vm1, %v7864_v8 }
 0x79e   :  { %6954 = vmatprep.subr.mxu1 %v7864_v8  ;;  %6951 = vmatprep.mubr.msk.f32.mxu0 %vm7865_vm1, %v7864_v8 }
 0x7a0   :  { %6947 = vmatmul.mubr.msk.f32.vlgmr.msra.gmra.mrb[16].mxu1 %vm260_vm2, %v1328_v22 }
 0x7a1   :  { %6956 = vmatprep.mubr.msk.f32.mxu1 %vm7865_vm1, %v7864_v8 }
 0x86b   :  { %v8204_v23 = vpop.f32.mrb[8].mxu0 }
 0x86c   :  { %v6933_v25 = vpop.f32.mrb[9].mxu0 }
 0x86f   :  { %v8206_v26 = vpop.f32.mrb[14].mxu1  ;;  %v1323_v27 = vpop.f32.mrb[10].mxu0 }
 0x870   :  { %v1324_v28 = vadd.f32 %v1323_v27, %v8089_v34  ;;  %v6938_v30 = vpop.f32.mrb[15].mxu1  ;;  %v6943_v31 = vpop.f32.mrb[11].mxu0 }
 0x872   :  { %v1405_v32 = vsel %vm414_vm5, %v1324_v28, -inf }
 0x873   :  { %1406 = vmax.xlane.f32.xlu0 %v1405_v32  ;;  %v1401_v33 = vpop.f32.mrb[16].mxu1 }
 0x874   :  { %v1402_v35 = vadd.f32 %v1401_v33, %v8093_v39  ;;  %v6948_v36 = vpop.f32.mrb[17].mxu1 }
 0x876   :  { %v1408_v37 = vsel %vm414_vm5, %v1402_v35, -inf }
 0x877   :  { %1409 = vmax.xlane.f32.xlu1 %v1408_v37 }
 0x888   :  { %1427 = vrot.lane.b32.xlu1 %v8047_v12, %s7877_s0 }
 0x889   :  { %1503 = vrot.lane.b32.xlu0 %v8051_v13, %s7877_s0  ;;  %s9033_s0 = smov 72  }
 0x88c   :  { %1581 = vrot.lane.b32.xlu1 %v8047_v12, %s9045_s26 }
 0x890   :  { %1659 = vrot.lane.b32.xlu1 %v8051_v13, %s9045_s26  ;;  %s9053_s26 = smov 20  }
 0x894   :  { %1657 = vrot.lane.b32.xlu1 %v8066_v17, %s9047_s6 }
 0x900   :  { %v1407_v38 = vpop.xlane.xlu0 %1406 }
 0x901   :  { %v1411_v40 = vsub.f32 %v1324_v28, %v1407_v38 }
 0x903   :  { %v1413_v41 = vmul.f32 1.442695, %v1411_v40 }
 0x904   :  { %v1504_v42 = vpop.permute.xlu0 %1503  ;;  %v1410_v43 = vpop.xlane.xlu1 %1409 }
 0x905   :  { %7752 = vpow2.f32 %v1413_v41  ;;  %v1412_v44 = vsub.f32 %v1402_v35, %v1410_v43  ;;  %6955 = vmatpush3.msra.mxu1 %v1504_v42 }
 0x906   :  { %6964 = vmatprep.subr.mxu1 %v7864_v8 }
 0x907   :  { %v1415_v45 = vmul.f32 1.442695, %v1412_v44 }
 0x908   :  { %v1428_v47 = vpop.permute.xlu1 %1427 }
 0x909   :  { %7754 = vpow2.f32 %v1415_v45  ;;  %6950 = vmatpush3.msra.mxu0 %v1428_v47 }
 0x90a   :  { %6959 = vmatprep.subr.mxu0 %v7864_v8 }
 0x90c   :  { %v1582_v55 = vpop.permute.xlu1 %1581 }
 0x90f   :  { %v7753_v49 = vpop.eup %7752 }
 0x910   :  { %v1417_v50 = vsel %vm414_vm5, %v7753_v49, 0.0  ;;  %v1660_v59 = vpop.permute.xlu1 %1659 }
 0x911   :  { %1418 = vadd.xlane.f32.xlu0 %v1417_v50 }
 0x913   :  { %v7755_v51 = vpop.eup %7754 }
 0x914   :  { %v1420_v52 = vsel %vm414_vm5, %v7755_v51, 0.0  ;;  %v1658_v62 = vpop.permute.xlu1 %1657 }
 0x915   :  { %1421 = vadd.xlane.f32.xlu0 %v1420_v52 }
 0x92b   :  { %1579 = vrot.lane.b32.xlu0 %v8058_v15, %s9047_s6  ;;  %s9055_s6 = smov 24  }
 0x99e   :  { %v1419_v53 = vpop.xlane.xlu0 %1418 }
 0x99f   :  { %7756 = vrcp.f32 %v1419_v53 }
 0x9a2   :  { %v1422_v54 = vpop.xlane.xlu0 %1421 }
 0x9a3   :  { %7758 = vrcp.f32 %v1422_v54 }
 0x9a6   :  { %v1580_v61 = vpop.permute.xlu0 %1579 }
 0x9a9   :  { %v7757_v56 = vpop.eup %7756 }
 0x9aa   :  { %v1424_v57 = vmul.f32 %v7757_v56, %v7753_v49 }
 0x9ac   :  { %6952 = vmatmul.mubr.msk.f32.vlgmr.msra.gmra.mrb[12].mxu0 %vm414_vm5, %v1424_v57 }
 0x9ad   :  { %v7759_v58 = vpop.eup %7758  ;;  %6960 = vmatpush3.xpose.msk.msra.mxu0 %vm260_vm2, %v1582_v55  ;;  %6961 = vmatprep.mubr.msk.f32.mxu0 %vm7865_vm1, %v7864_v8 }
 0x9ae   :  { %v1426_v60 = vmul.f32 %v7759_v58, %v7755_v51  ;;  %6969 = vmatprep.subr.mxu0 %v7864_v8 }
 0x9b0   :  { %6957 = vmatmul.mubr.msk.f32.vlgmr.msra.gmra.mrb[18].mxu1 %vm414_vm5, %v1426_v60  ;;  %6962 = vmatmul.mubr.msk.f32.vlgmr.msra.gmra.mrb[14].mxu0 %vm260_vm2, %v1580_v61 }
 0x9b1   :  { %6965 = vmatpush3.xpose.msk.msra.mxu1 %vm260_vm2, %v1660_v59  ;;  %6966 = vmatprep.mubr.msk.f32.mxu1 %vm7865_vm1, %v7864_v8 }
 0x9b2   :  { %6974 = vmatprep.subr.mxu1 %v7864_v8  ;;  %6971 = vmatprep.mubr.msk.f32.mxu0 %vm7865_vm1, %v7864_v8 }
 0x9b4   :  { %6967 = vmatmul.mubr.msk.f32.vlgmr.msra.gmra.mrb[20].mxu1 %vm260_vm2, %v1658_v62 }
 0x9b5   :  { %6976 = vmatprep.mubr.msk.f32.mxu1 %vm7865_vm1, %v7864_v8 }
 0xa7f   :  { %v8242_v63 = vpop.f32.mrb[12].mxu0 }
 0xa80   :  { %v6953_v0 = vpop.f32.mrb[13].mxu0 }
 0xa83   :  { %v8244_v1 = vpop.f32.mrb[18].mxu1  ;;  %v1653_v2 = vpop.f32.mrb[14].mxu0 }
 0xa84   :  { %v1654_v4 = vadd.f32 %v1653_v2, %v8089_v34  ;;  %v6958_v6 = vpop.f32.mrb[19].mxu1  ;;  %v6963_v7 = vpop.f32.mrb[15].mxu0 }
 0xa86   :  { %v1735_v9 = vsel %vm414_vm5, %v1654_v4, -inf }
 0xa87   :  { %1736 = vmax.xlane.f32.xlu0 %v1735_v9  ;;  %v1731_v10 = vpop.f32.mrb[20].mxu1 }
 0xa88   :  { %v1732_v11 = vadd.f32 %v1731_v10, %v8093_v39  ;;  %v6968_v14 = vpop.f32.mrb[21].mxu1 }
 0xa8a   :  { %v1738_v16 = vsel %vm414_vm5, %v1732_v11, -inf }
 0xa8b   :  { %1739 = vmax.xlane.f32.xlu1 %v1738_v16 }
 0xa9c   :  { %1757 = vrot.lane.b32.xlu1 %v8047_v12, %s7880_s8 }
 0xa9d   :  { %1833 = vrot.lane.b32.xlu0 %v8051_v13, %s7880_s8  ;;  %s9035_s8 = smov 104  }
 0xaa0   :  { %1911 = vrot.lane.b32.xlu1 %v8047_v12, %s9041_s27 }
 0xaa4   :  { %1989 = vrot.lane.b32.xlu1 %v8051_v13, %s9041_s27  ;;  %s9051_s27 = smov 12  }
 0xaa8   :  { %1987 = vrot.lane.b32.xlu1 %v8066_v17, %s9043_s3 }
 0xb14   :  { %v1737_v18 = vpop.xlane.xlu0 %1736 }
 0xb15   :  { %v1741_v19 = vsub.f32 %v1654_v4, %v1737_v18 }
 0xb17   :  { %v1743_v20 = vmul.f32 1.442695, %v1741_v19 }
 0xb18   :  { %v1834_v21 = vpop.permute.xlu0 %1833  ;;  %v1740_v22 = vpop.xlane.xlu1 %1739 }
 0xb19   :  { %7760 = vpow2.f32 %v1743_v20  ;;  %v1742_v25 = vsub.f32 %v1732_v11, %v1740_v22  ;;  %6975 = vmatpush3.msra.mxu1 %v1834_v21 }
 0xb1a   :  { %6984 = vmatprep.subr.mxu1 %v7864_v8 }
 0xb1b   :  { %v1745_v27 = vmul.f32 1.442695, %v1742_v25 }
 0xb1c   :  { %v1758_v28 = vpop.permute.xlu1 %1757 }
 0xb1d   :  { %7762 = vpow2.f32 %v1745_v27  ;;  %6970 = vmatpush3.msra.mxu0 %v1758_v28 }
 0xb1e   :  { %6979 = vmatprep.subr.mxu0 %v7864_v8 }
 0xb20   :  { %v1912_v37 = vpop.permute.xlu1 %1911 }
 0xb23   :  { %v7761_v30 = vpop.eup %7760 }
 0xb24   :  { %v1747_v31 = vsel %vm414_vm5, %v7761_v30, 0.0  ;;  %v1990_v42 = vpop.permute.xlu1 %1989 }
 0xb25   :  { %1748 = vadd.xlane.f32.xlu0 %v1747_v31 }
 0xb27   :  { %v7763_v32 = vpop.eup %7762 }
 0xb28   :  { %v1750_v33 = vsel %vm414_vm5, %v7763_v32, 0.0  ;;  %v1988_v45 = vpop.permute.xlu1 %1987 }
 0xb29   :  { %1751 = vadd.xlane.f32.xlu0 %v1750_v33 }
 0xb3f   :  { %1909 = vrot.lane.b32.xlu0 %v8058_v15, %s9043_s3  ;;  %s9049_s3 = smov 16  }
 0xbb2   :  { %v1749_v35 = vpop.xlane.xlu0 %1748 }
 0xbb3   :  { %7764 = vrcp.f32 %v1749_v35 }
 0xbb6   :  { %v1752_v36 = vpop.xlane.xlu0 %1751 }
 0xbb7   :  { %7766 = vrcp.f32 %v1752_v36 }
 0xbba   :  { %v1910_v44 = vpop.permute.xlu0 %1909 }
 0xbbd   :  { %v7765_v38 = vpop.eup %7764 }
 0xbbe   :  { %v1754_v40 = vmul.f32 %v7765_v38, %v7761_v30 }
 0xbc0   :  { %6972 = vmatmul.mubr.msk.f32.vlgmr.msra.gmra.mrb[16].mxu0 %vm414_vm5, %v1754_v40 }
 0xbc1   :  { %v7767_v41 = vpop.eup %7766  ;;  %6980 = vmatpush3.xpose.msk.msra.mxu0 %vm260_vm2, %v1912_v37  ;;  %6981 = vmatprep.mubr.msk.f32.mxu0 %vm7865_vm1, %v7864_v8 }
 0xbc2   :  { %v1756_v43 = vmul.f32 %v7767_v41, %v7763_v32  ;;  %6989 = vmatprep.subr.mxu0 %v7864_v8 }
 0xbc4   :  { %6977 = vmatmul.mubr.msk.f32.vlgmr.msra.gmra.mrb[22].mxu1 %vm414_vm5, %v1756_v43  ;;  %6982 = vmatmul.mubr.msk.f32.vlgmr.msra.gmra.mrb[18].mxu0 %vm260_vm2, %v1910_v44 }
 0xbc5   :  { %6985 = vmatpush3.xpose.msk.msra.mxu1 %vm260_vm2, %v1990_v42  ;;  %6986 = vmatprep.mubr.msk.f32.mxu1 %vm7865_vm1, %v7864_v8 }
 0xbc6   :  { %6994 = vmatprep.subr.mxu1 %v7864_v8  ;;  %6991 = vmatprep.mubr.msk.f32.mxu0 %vm7865_vm1, %v7864_v8 }
 0xbc8   :  { %6987 = vmatmul.mubr.msk.f32.vlgmr.msra.gmra.mrb[24].mxu1 %vm260_vm2, %v1988_v45 }
 0xbc9   :  { %6996 = vmatprep.mubr.msk.f32.mxu1 %vm7865_vm1, %v7864_v8 }
 0xc93   :  { %v8280_v47 = vpop.f32.mrb[16].mxu0 }
 0xc94   :  { %v6973_v49 = vpop.f32.mrb[17].mxu0 }
 0xc97   :  { %v8282_v50 = vpop.f32.mrb[22].mxu1  ;;  %v1983_v51 = vpop.f32.mrb[18].mxu0 }
 0xc98   :  { %v1984_v52 = vadd.f32 %v1983_v51, %v8089_v34  ;;  %v6978_v53 = vpop.f32.mrb[23].mxu1  ;;  %v6983_v54 = vpop.f32.mrb[19].mxu0 }
 0xc9a   :  { %v2065_v55 = vsel %vm414_vm5, %v1984_v52, -inf }
 0xc9b   :  { %2066 = vmax.xlane.f32.xlu0 %v2065_v55  ;;  %v2061_v56 = vpop.f32.mrb[24].mxu1 }
 0xc9c   :  { %v2062_v57 = vadd.f32 %v2061_v56, %v8093_v39  ;;  %v6988_v58 = vpop.f32.mrb[25].mxu1 }
 0xc9e   :  { %v2068_v59 = vsel %vm414_vm5, %v2062_v57, -inf }
 0xc9f   :  { %2069 = vmax.xlane.f32.xlu1 %v2068_v59 }
 0xcb0   :  { %2087 = vrot.lane.b32.xlu1 %v8047_v12, %s7883_s30 }
 0xcb1   :  { %2163 = vrot.lane.b32.xlu0 %v8051_v13, %s7883_s30  ;;  %s7886_s30 = smov 40  }
 0xcb4   :  { %2241 = vrot.lane.b32.xlu1 %v8047_v12, %s9033_s0 }
 0xcb8   :  { %2319 = vrot.lane.b32.xlu1 %v8051_v13, %s9033_s0  ;;  %s9037_s0 = smov 68  }
 0xcbc   :  { %2317 = vrot.lane.b32.xlu1 %v8066_v17, %s9035_s8 }
 0xd28   :  { %v2067_v60 = vpop.xlane.xlu0 %2066 }
 0xd29   :  { %v2071_v61 = vsub.f32 %v1984_v52, %v2067_v60 }
 0xd2b   :  { %v2073_v62 = vmul.f32 1.442695, %v2071_v61 }
 0xd2c   :  { %v2164_v0 = vpop.permute.xlu0 %2163  ;;  %v2070_v2 = vpop.xlane.xlu1 %2069 }
 0xd2d   :  { %7768 = vpow2.f32 %v2073_v62  ;;  %v2072_v4 = vsub.f32 %v2062_v57, %v2070_v2  ;;  %6995 = vmatpush3.msra.mxu1 %v2164_v0 }
 0xd2e   :  { %7004 = vmatprep.subr.mxu1 %v7864_v8 }
 0xd2f   :  { %v2075_v6 = vmul.f32 1.442695, %v2072_v4 }
 0xd30   :  { %v2088_v7 = vpop.permute.xlu1 %2087 }
 0xd31   :  { %7770 = vpow2.f32 %v2075_v6  ;;  %6990 = vmatpush3.msra.mxu0 %v2088_v7 }
 0xd32   :  { %6999 = vmatprep.subr.mxu0 %v7864_v8 }
 0xd34   :  { %v2242_v19 = vpop.permute.xlu1 %2241 }
 0xd37   :  { %v7769_v9 = vpop.eup %7768 }
 0xd38   :  { %v2077_v10 = vsel %vm414_vm5, %v7769_v9, 0.0  ;;  %v2320_v25 = vpop.permute.xlu1 %2319 }
 0xd39   :  { %2078 = vadd.xlane.f32.xlu0 %v2077_v10 }
 0xd3b   :  { %v7771_v11 = vpop.eup %7770 }
 0xd3c   :  { %v2080_v14 = vsel %vm414_vm5, %v7771_v11, 0.0  ;;  %v2318_v30 = vpop.permute.xlu1 %2317 }
 0xd3d   :  { %2081 = vadd.xlane.f32.xlu0 %v2080_v14 }
 0xd53   :  { %2239 = vrot.lane.b32.xlu0 %v8058_v15, %s9035_s8  ;;  %s9039_s8 = smov 100  }
 0xdc6   :  { %v2079_v16 = vpop.xlane.xlu0 %2078 }
 0xdc7   :  { %7772 = vrcp.f32 %v2079_v16 }
 0xdca   :  { %v2082_v18 = vpop.xlane.xlu0 %2081 }
 0xdcb   :  { %7774 = vrcp.f32 %v2082_v18 }
 0xdce   :  { %v2240_v28 = vpop.permute.xlu0 %2239 }
 0xdd1   :  { %v7773_v20 = vpop.eup %7772 }
 0xdd2   :  { %v2084_v21 = vmul.f32 %v7773_v20, %v7769_v9 }
 0xdd4   :  { %6992 = vmatmul.mubr.msk.f32.vlgmr.msra.gmra.mrb[20].mxu0 %vm414_vm5, %v2084_v21 }
 0xdd5   :  { %v7775_v22 = vpop.eup %7774  ;;  %7000 = vmatpush3.xpose.msk.msra.mxu0 %vm260_vm2, %v2242_v19  ;;  %7001 = vmatprep.mubr.msk.f32.mxu0 %vm7865_vm1, %v7864_v8 }
 0xdd6   :  { %v2086_v27 = vmul.f32 %v7775_v22, %v7771_v11  ;;  %7009 = vmatprep.subr.mxu0 %v7864_v8 }
 0xdd8   :  { %6997 = vmatmul.mubr.msk.f32.vlgmr.msra.gmra.mrb[26].mxu1 %vm414_vm5, %v2086_v27  ;;  %7002 = vmatmul.mubr.msk.f32.vlgmr.msra.gmra.mrb[22].mxu0 %vm260_vm2, %v2240_v28 }
 0xdd9   :  { %7005 = vmatpush3.xpose.msk.msra.mxu1 %vm260_vm2, %v2320_v25  ;;  %7006 = vmatprep.mubr.msk.f32.mxu1 %vm7865_vm1, %v7864_v8 }
 0xdda   :  { %7014 = vmatprep.subr.mxu1 %v7864_v8  ;;  %7011 = vmatprep.mubr.msk.f32.mxu0 %vm7865_vm1, %v7864_v8 }
 0xddc   :  { %7007 = vmatmul.mubr.msk.f32.vlgmr.msra.gmra.mrb[28].mxu1 %vm260_vm2, %v2318_v30 }
 0xddd   :  { %7016 = vmatprep.mubr.msk.f32.mxu1 %vm7865_vm1, %v7864_v8 }
 0xea7   :  { %v8318_v31 = vpop.f32.mrb[20].mxu0 }
 0xea8   :  { %v6993_v32 = vpop.f32.mrb[21].mxu0 }
 0xeab   :  { %v8320_v33 = vpop.f32.mrb[26].mxu1  ;;  %v2313_v35 = vpop.f32.mrb[22].mxu0 }
 0xeac   :  { %v2314_v36 = vadd.f32 %v2313_v35, %v8089_v34  ;;  %v6998_v37 = vpop.f32.mrb[27].mxu1  ;;  %v7003_v38 = vpop.f32.mrb[23].mxu0 }
 0xeae   :  { %v2395_v40 = vsel %vm414_vm5, %v2314_v36, -inf }
 0xeaf   :  { %2396 = vmax.xlane.f32.xlu0 %v2395_v40  ;;  %v2391_v41 = vpop.f32.mrb[28].mxu1 }
 0xeb0   :  { %v2392_v42 = vadd.f32 %v2391_v41, %v8093_v39  ;;  %v7008_v43 = vpop.f32.mrb[29].mxu1 }
 0xeb2   :  { %v2398_v44 = vsel %vm414_vm5, %v2392_v42, -inf }
 0xeb3   :  { %2399 = vmax.xlane.f32.xlu1 %v2398_v44 }
 0xec4   :  { %2417 = vrot.lane.b32.xlu1 %v8047_v12, %s7886_s30 }
 0xec5   :  { %2493 = vrot.lane.b32.xlu0 %v8051_v13, %s7886_s30  ;;  %s7889_s30 = smov 36  }
 0xec8   :  { %2571 = vrot.lane.b32.xlu1 %v8047_v12, %s9037_s0 }
 0xecc   :  { %2649 = vrot.lane.b32.xlu1 %v8051_v13, %s9037_s0  ;;  %s9059_s0 = smov 4  }
 0xed0   :  { %2647 = vrot.lane.b32.xlu1 %v8066_v17, %s9039_s8 }
 0xf3c   :  { %v2397_v45 = vpop.xlane.xlu0 %2396 }
 0xf3d   :  { %v2401_v49 = vsub.f32 %v2314_v36, %v2397_v45 }
 0xf3f   :  { %v2403_v51 = vmul.f32 1.442695, %v2401_v49 }
 0xf40   :  { %v2494_v52 = vpop.permute.xlu0 %2493  ;;  %v2400_v53 = vpop.xlane.xlu1 %2399 }
 0xf41   :  { %7776 = vpow2.f32 %v2403_v51  ;;  %v2402_v54 = vsub.f32 %v2392_v42, %v2400_v53  ;;  %7015 = vmatpush3.msra.mxu1 %v2494_v52 }
 0xf42   :  { %7024 = vmatprep.subr.mxu1 %v7864_v8 }
 0xf43   :  { %v2405_v55 = vmul.f32 1.442695, %v2402_v54 }
 0xf44   :  { %v2418_v56 = vpop.permute.xlu1 %2417 }
 0xf45   :  { %7778 = vpow2.f32 %v2405_v55  ;;  %7010 = vmatpush3.msra.mxu0 %v2418_v56 }
 0xf46   :  { %7019 = vmatprep.subr.mxu0 %v7864_v8 }
 0xf48   :  { %v2572_v62 = vpop.permute.xlu1 %2571 }
 0xf4b   :  { %v7777_v57 = vpop.eup %7776 }
 0xf4c   :  { %v2407_v58 = vsel %vm414_vm5, %v7777_v57, 0.0  ;;  %v2650_v6 = vpop.permute.xlu1 %2649 }
 0xf4d   :  { %2408 = vadd.xlane.f32.xlu0 %v2407_v58 }
 0xf4f   :  { %v7779_v17 = vpop.eup %7778 }
 0xf50   :  { %v2410_v59 = vsel %vm414_vm5, %v7779_v17, 0.0  ;;  %v2648_v9 = vpop.permute.xlu1 %2647 }
 0xf51   :  { %2411 = vadd.xlane.f32.xlu0 %v2410_v59 }
 0xf67   :  { %2569 = vrot.lane.b32.xlu0 %v8058_v15, %s9039_s8  ;;  %s9057_s8 = smov 8  }
 0xfda   :  { %v2409_v60 = vpop.xlane.xlu0 %2408 }
 0xfdb   :  { %7780 = vrcp.f32 %v2409_v60 }
 0xfde   :  { %v2412_v61 = vpop.xlane.xlu0 %2411 }
 0xfdf   :  { %7782 = vrcp.f32 %v2412_v61 }
 0xfe2   :  { %v2570_v15 = vpop.permute.xlu0 %2569 }
 0xfe5   :  { %v7781_v0 = vpop.eup %7780 }
 0xfe6   :  { %v2414_v2 = vmul.f32 %v7781_v0, %v7777_v57 }
 0xfe8   :  { %7012 = vmatmul.mubr.msk.f32.vlgmr.msra.gmra.mrb[24].mxu0 %vm414_vm5, %v2414_v2 }
 0xfe9   :  { %v7783_v4 = vpop.eup %7782  ;;  %7020 = vmatpush3.xpose.msk.msra.mxu0 %vm260_vm2, %v2572_v62  ;;  %7021 = vmatprep.mubr.msk.f32.mxu0 %vm7865_vm1, %v7864_v8 }
 0xfea   :  { %v2416_v7 = vmul.f32 %v7783_v4, %v7779_v17  ;;  %7029 = vmatprep.subr.mxu0 %v7864_v8 }
 0xfec   :  { %7017 = vmatmul.mubr.msk.f32.vlgmr.msra.gmra.mrb[30].mxu1 %vm414_vm5, %v2416_v7  ;;  %7022 = vmatmul.mubr.msk.f32.vlgmr.msra.gmra.mrb[26].mxu0 %vm260_vm2, %v2570_v15 }
 0xfed   :  { %7025 = vmatpush3.xpose.msk.msra.mxu1 %vm260_vm2, %v2650_v6  ;;  %7026 = vmatprep.mubr.msk.f32.mxu1 %vm7865_vm1, %v7864_v8 }
 0xfee   :  { %7034 = vmatprep.subr.mxu1 %v7864_v8  ;;  %7031 = vmatprep.mubr.msk.f32.mxu0 %vm7865_vm1, %v7864_v8 }
 0xff0   :  { %7027 = vmatmul.mubr.msk.f32.vlgmr.msra.gmra.mrb[32].mxu1 %vm260_vm2, %v2648_v9 }
 0xff1   :  { %7036 = vmatprep.mubr.msk.f32.mxu1 %vm7865_vm1, %v7864_v8 }
0x10bb   :  { %v2489_v10 = vpop.f32.mrb[24].mxu0 }
0x10bc   :  { %v7013_v11 = vpop.f32.mrb[25].mxu0 }
0x10bf   :  { %v2565_v14 = vpop.f32.mrb[30].mxu1  ;;  %v2643_v16 = vpop.f32.mrb[26].mxu0 }
0x10c0   :  { %v2644_v18 = vadd.f32 %v2643_v16, %v8089_v34  ;;  %v7018_v19 = vpop.f32.mrb[31].mxu1  ;;  %v7023_v20 = vpop.f32.mrb[27].mxu0 }
0x10c2   :  { %v2725_v21 = vsel %vm414_vm5, %v2644_v18, -inf }
0x10c3   :  { %2726 = vmax.xlane.f32.xlu0 %v2725_v21  ;;  %v2721_v22 = vpop.f32.mrb[32].mxu1 }
0x10c4   :  { %v2722_v25 = vadd.f32 %v2721_v22, %v8093_v39  ;;  %v7028_v27 = vpop.f32.mrb[33].mxu1 }
0x10c6   :  { %v2728_v28 = vsel %vm414_vm5, %v2722_v25, -inf }
0x10c7   :  { %2729 = vmax.xlane.f32.xlu1 %v2728_v28 }
0x10d8   :  { %2747 = vrot.lane.b32.xlu1 %v8047_v12, %s7889_s30 }
0x10dc   :  { %2901 = vrot.lane.b32.xlu1 %v8166_v46, %s9059_s0 }
0x10e0   :  { %2903 = vrot.lane.b32.xlu1 %v8168_v48, %s9059_s0  ;;  %s9092_s0 = smov 68  }
0x10e4   :  { %2911 = vrot.lane.b32.xlu1 %v8206_v26, %s9057_s8 }
0x10e8   :  { %2919 = vrot.lane.b32.xlu1 %v8244_v1, %s9051_s27 }
0x10ec   :  { %2927 = vrot.lane.b32.xlu1 %v8282_v50, %s9049_s3 }
0x10f0   :  { %2935 = vrot.lane.b32.xlu1 %v8320_v33, %s9053_s26 }
0x10f4   :  { %2943 = vrot.lane.b32.xlu1 %v2565_v14, %s9055_s6 }
0x1150   :  { %v2727_v12 = vpop.xlane.xlu0 %2726 }
0x1151   :  { %v2731_v34 = vsub.f32 %v2644_v18, %v2727_v12  ;;  %v7862_v12 = vld [vmem:[%s9074_s28 + $0x8] sm:$0xff] }
0x1153   :  { %v2733_v39 = vmul.f32 1.442695, %v2731_v34 }
0x1154   :  { %v2730_v46 = vpop.xlane.xlu1 %2729 }
0x1155   :  { %7784 = vpow2.f32 %v2733_v39  ;;  %v2732_v48 = vsub.f32 %v2722_v25, %v2730_v46  ;;  %v7863_v39 = vld [vmem:[%s9074_s28] sm:$0xff]  ;;  %s9094_s28 = smov 8  }
0x1157   :  { %v2735_v26 = vmul.f32 1.442695, %v2732_v48 }
0x1158   :  { %v2748_v30 = vpop.permute.xlu1 %2747 }
0x1159   :  { %7786 = vpow2.f32 %v2735_v26  ;;  %7030 = vmatpush3.msra.mxu0 %v2748_v30 }
0x115c   :  { %v2902_v52 = vpop.permute.xlu1 %2901 }
0x115d   :  { %v2955_v61 = vsel %vm260_vm2, %v8128_v3, %v2902_v52 }
0x115f   :  { %v7785_v1 = vpop.eup %7784 }
0x1160   :  { %v2737_v50 = vsel %vm414_vm5, %v7785_v1, 0.0  ;;  %v2904_v53 = vpop.permute.xlu1 %2903 }
0x1161   :  { %2738 = vadd.xlane.f32.xlu0 %v2737_v50  ;;  %v2956_v6 = vsel %vm260_vm2, %v8130_v5, %v2904_v53 }
0x1163   :  { %v7787_v32 = vpop.eup %7786 }
0x1164   :  { %v2740_v33 = vsel %vm414_vm5, %v7787_v32, 0.0  ;;  %v2912_v55 = vpop.permute.xlu1 %2911 }
0x1165   :  { %2741 = vadd.xlane.f32.xlu0 %v2740_v33  ;;  %v2958_v15 = vsel %vm414_vm5, %v2956_v6, %v2912_v55  ;;  %v77_v6 = vld [vmem:[%s9013_s1 + $0x8] sm:$0xff] }
0x1168   :  { %v2920_v57 = vpop.permute.xlu1 %2919 }
0x1169   :  { %v2961_v11 = vsel %vm2959_vm6, %v2958_v15, %v2920_v57  ;;  %v6580_v15 = vld [vmem:[%s9014_s12] ss:$0 sm:$0xff] }
0x116c   :  { %v2928_v17 = vpop.permute.xlu1 %2927 }
0x116d   :  { %v2964_v16 = vsel %vm2962_vm7, %v2961_v11, %v2928_v17  ;;  %v7897_v11 = vmov 0.0|0.0  }
0x1170   :  { %v2936_v60 = vpop.permute.xlu1 %2935 }
0x1171   :  { %v2967_v18 = vsel %vm2965_vm8, %v2964_v16, %v2936_v60 }
0x1174   :  { %v2944_v3 = vpop.permute.xlu1 %2943 }
0x1175   :  { %v2970_v5 = vsel %vm2968_vm10, %v2967_v18, %v2944_v3  ;;  %v79_v3 = vld [vmem:[%s9013_s1 + $0x18] sm:$0xff] }
0x117b   :  { %2823 = vrot.lane.b32.xlu0 %v8051_v13, %s7889_s30 }
0x117f   :  { %2909 = vrot.lane.b32.xlu0 %v8204_v23, %s9057_s8  ;;  %s9093_s8 = smov 4  }
0x1183   :  { %2917 = vrot.lane.b32.xlu0 %v8242_v63, %s9051_s27  ;;  %s9078_s27 = sld [smem:[#allocation7_spill]] }
0x1187   :  { %2925 = vrot.lane.b32.xlu0 %v8280_v47, %s9049_s3  ;;  %s7896_s3 = smov 28  }
0x1189   :  { %v162_v47 = vld [vmem:[%s9078_s27] sm:$0xff]  ;;  %v164_v41 = vld [vmem:[%s9078_s27 + $0x10] sm:$0xff]  ;;  %v165_v42 = vld [vmem:[%s9078_s27 + $0x18] sm:$0xff] }
0x118a   :  { %v7352_v43 = vpack.c.bf16 %v165_v42, %v164_v41 }
0x118b   :  { %2933 = vrot.lane.b32.xlu0 %v8318_v31, %s9053_s26  ;;  %v163_v31 = vld [vmem:[%s9078_s27 + $0x8] sm:$0xff]  ;;  %s9079_s26 = sld [smem:[#allocation8_spill]] }
0x118c   :  { %v7348_v40 = vpack.c.bf16 %v163_v31, %v162_v47  ;;  %v76_v47 = vld [vmem:[%s9013_s1] sm:$0xff] }
0x118e   :  { %7349 = vmatprep.subr.bf16.mxu0 %v7348_v40 }
0x118f   :  { %2941 = vrot.lane.b32.xlu0 %v2489_v10, %s9055_s6 }
0x1191   :  { %v6577_v21 = vld [vmem:[%s9079_s26] ss:$0 sm:$0xff] }
0x11ee   :  { %v2739_v35 = vpop.xlane.xlu0 %2738 }
0x11ef   :  { %7788 = vrcp.f32 %v2739_v35 }
0x11f2   :  { %v2742_v36 = vpop.xlane.xlu0 %2741 }
0x11f3   :  { %7790 = vrcp.f32 %v2742_v36  ;;  %v3111_v36 = vld [vmem:[%s9080_s25] sm:$0xff] }
0x11f6   :  { %v2824_v37 = vpop.permute.xlu0 %2823 }
0x11f7   :  { %7035 = vmatpush3.msra.mxu1 %v2824_v37  ;;  %v3112_v37 = vld [vmem:[%s9080_s25 + $0x8] sm:$0xff] }
0x11f9   :  { %v7789_v13 = vpop.eup %7788 }
0x11fa   :  { %v2744_v38 = vmul.f32 %v7789_v13, %v7785_v1  ;;  %v2910_v54 = vpop.permute.xlu0 %2909  ;;  %v3113_v13 = vld [vmem:[%s9080_s25 + $0x10] sm:$0xff] }
0x11fb   :  { %v2957_v62 = vsel %vm414_vm5, %v2955_v61, %v2910_v54 }
0x11fc   :  { %7032 = vmatmul.mubr.msk.f32.vlgmr.msra.gmra.mrb[28].mxu0 %vm414_vm5, %v2744_v38  ;;  %v3114_v38 = vld [vmem:[%s9080_s25 + $0x18] sm:$0xff] }
0x11fd   :  { %v7791_v23 = vpop.eup %7790  ;;  %7351 = vmatpush3.bf16.msra.mxu0 %v7348_v40 }
0x11fe   :  { %v2746_v63 = vmul.f32 %v7791_v23, %v7787_v32  ;;  %7353 = vmatprep.subr.bf16.mxu0 %v7352_v43  ;;  %v2918_v56 = vpop.permute.xlu0 %2917  ;;  %v7573_v23 = vpack.i.bf16 %v3114_v38, %v3113_v13 }
0x11ff   :  { %v2960_v2 = vsel %vm2959_vm6, %v2957_v62, %v2918_v56 }
0x1200   :  { %7037 = vmatmul.mubr.msk.f32.vlgmr.msra.gmra.mrb[34].mxu1 %vm414_vm5, %v2746_v63  ;;  %v7568_v63 = vpack.i.bf16 %v3112_v37, %v3111_v36 }
0x1201   :  { %7355 = vmatpush3.bf16.msra.mxu0 %v7352_v43 }
0x1202   :  { %v2926_v58 = vpop.permute.xlu0 %2925 }
0x1203   :  { %v2963_v4 = vsel %vm2962_vm7, %v2960_v2, %v2926_v58 }
0x1206   :  { %v2934_v59 = vpop.permute.xlu0 %2933 }
0x1207   :  { %v2966_v7 = vsel %vm2965_vm8, %v2963_v4, %v2934_v59  ;;  %v7360_v59 = vpack.c.bf16 %v3114_v38, %v3113_v13 }
0x120a   :  { %v2942_v0 = vpop.permute.xlu0 %2941 }
0x120b   :  { %v2969_v9 = vsel %vm2968_vm10, %v2966_v7, %v2942_v0  ;;  %v78_v7 = vld [vmem:[%s9013_s1 + $0x10] sm:$0xff] }
0x12cf   :  { %v2819_v44 = vpop.f32.mrb[28].mxu0 }
0x12d0   :  { %2949 = vrot.lane.b32.xlu0 %v2819_v44, %s7896_s3  ;;  %v7033_v45 = vpop.f32.mrb[29].mxu0 }
0x12d1   :  { %v7356_v45 = vpack.c.bf16 %v3112_v37, %v3111_v36 }
0x12d3   :  { %v2895_v49 = vpop.f32.mrb[34].mxu1  ;;  %7357 = vmatprep.subr.bf16.mxu1 %v7356_v45 }
0x12d4   :  { %2951 = vrot.lane.b32.xlu1 %v2895_v49, %s7896_s3  ;;  %v7038_v51 = vpop.f32.mrb[35].mxu1  ;;  %7359 = vmatpush3.bf16.msra.mxu1 %v7356_v45 }
0x12d5   :  { %7361 = vmatprep.subr.bf16.mxu1 %v7360_v59 }
0x12d8   :  { %7363 = vmatpush3.bf16.msra.mxu1 %v7360_v59 }
0x12d9   :  { %7372 = vmatprep.subr.bf16.mxu1 %v7897_v11 }
0x1342   :  { %v2950_v10 = vpop.permute.xlu0 %2949 }
0x1343   :  { %v2972_v14 = vsel %vm2971_vm9, %v2969_v9, %v2950_v10 }
0x1344   :  { %7047 = vmatprep.mubr.msk.f32.mxu0 %vm173_vm0, %v2972_v14 }
0x1346   :  { %v2952_v19 = vpop.permute.xlu1 %2951 }
0x1347   :  { %v2973_v20 = vsel %vm2971_vm9, %v2970_v5, %v2952_v19  ;;  %v3061_v5 = vld [vmem:[%s9015_s9] sm:$0xff]  ;;  %v3062_v19 = vld [vmem:[%s9015_s9 + $0x8] sm:$0xff] }
0x1348   :  { %7048 = vmatmul.mubr.msk.f32.vlgmr.msra.gmra.mrb[30].mxu0 %vm173_vm0, %v2973_v20 }
0x1349   :  { %7069 = vmatprep.mubr.msk.f32.mxu0 %vm173_vm0, %v76_v47 }
0x141b   :  { %v7049_v22 = vpop.f32.mrb[30].mxu0 }
0x141c   :  { %v3058_v25 = vadd.f32 %v7049_v22, %v6577_v21  ;;  %v3052_v27 = vpop.f32.mrb[31].mxu0 }
0x141d   :  { %v3053_v28 = vadd.f32 %v6577_v21, %v3052_v27  ;;  %v3064_v27 = vld [vmem:[%s9016_s10 + $0x8] sm:$0xff] }
0x141e   :  { %v8428_v34 = vadd.f32 %v7862_v12, %v3058_v25  ;;  %v3063_v25 = vld [vmem:[%s9016_s10] sm:$0xff] }
0x141f   :  { %v8433_v46 = vadd.f32 %v7863_v39, %v3053_v28 }
0x1420   :  { %v3068_v48 = vsel %vm173_vm0, %v8428_v34, 0.0  ;;  %v3081_v26 = vmul.f32 %v8428_v34, %v8428_v34 }
0x1421   :  { %v3067_v30 = vsel %vm173_vm0, %v8433_v46, 0.0  ;;  %v3080_v1 = vmul.f32 %v8433_v46, %v8433_v46 }
0x1422   :  { %v3069_v50 = vadd.f32 %v3068_v48, %v3067_v30  ;;  %v3083_v32 = vsel %vm173_vm0, %v3081_v26, 0.0 }
0x1423   :  { %v3082_v33 = vsel %vm173_vm0, %v3080_v1, 0.0 }
0x1424   :  { %3070 = vadd.xlane.f32.xlu0 %v3069_v50  ;;  %v3084_v35 = vadd.f32 %v3083_v32, %v3082_v33 }
0x1426   :  { %3085 = vadd.xlane.f32.xlu1 %v3084_v35 }
0x1437   :  { %7574 = vrot.lane.b32.xlu1 %v7573_v23, %s7866_s24 }
0x143a   :  { %7569 = vrot.lane.b32.xlu0 %v7568_v63, %s7866_s24 }
0x143e   :  { %3224 = vrot.lane.b32.xlu0 %v6580_v15, %s7866_s24 }
0x14b1   :  { %v3071_v31 = vpop.xlane.xlu0 %3070 }
0x14b2   :  { %v3072_v40 = vrot.slane %v3071_v31, 4 }
0x14b3   :  { %v3086_v41 = vpop.xlane.xlu1 %3085 }
0x14b4   :  { %v3073_v42 = vadd.f32 %v3072_v40, %v3071_v31  ;;  %v3087_v43 = vrot.slane %v3086_v41, 4 }
0x14b5   :  { %v7570_v44 = vpop.permute.xlu0 %7569 }
0x14b6   :  { %v3088_v49 = vadd.f32 %v3087_v43, %v3086_v41  ;;  %v3074_v51 = vrot.slane %v3073_v42, 2  ;;  %v7572_v52 = vunpack.i.h.bf16 %v7570_v44  ;;  %v7571_v53 = vunpack.i.l.bf16 %v7570_v44  ;;  %v86_v43 = vld [vmem:[%s9017_s4] sm:$0x3]  ;;  %s9083_s4 = smov 116  }
0x14b7   :  { %v7575_v54 = vpop.permute.xlu1 %7574  ;;  %vm87_vm12 = vcmp.ne.s32.totalorder %v86_v43, 0 }
0x14b8   :  { %v3089_v55 = vrot.slane %v3088_v49, 2  ;;  %v3075_v56 = vadd.f32 %v3074_v51, %v3073_v42  ;;  %v7364_v57 = vpack.c.bf16 %v7572_v52, %v7571_v53  ;;  %v7577_v58 = vunpack.i.h.bf16 %v7575_v54 }
0x14b9   :  { %v7576_v17 = vunpack.i.l.bf16 %v7575_v54  ;;  %v88_v44 = vsel %vm87_vm12, -1e+30, %v7864_v8 }
0x14ba   :  { %v3076_v60 = vrot.slane %v3075_v56, 1  ;;  %v3090_v61 = vadd.f32 %v3089_v55, %v3088_v49  ;;  %7365 = vmatprep.subr.bf16.mxu0 %v7364_v57  ;;  %v131_v45 = vrot.slane %v88_v44, %v8076_v24 }
0x14bb   :  { %v7368_v62 = vpack.c.bf16 %v7577_v58, %v7576_v17  ;;  %7367 = vmatpush3.bf16.msra.mxu0 %v7364_v57 }
0x14bc   :  { %v3077_v0 = vadd.f32 %v3076_v60, %v3075_v56  ;;  %v3091_v2 = vrot.slane %v3090_v61, 1  ;;  %v132_v49 = vcombine.high %v131_v45, %v131_v45  ;;  %v139_v52 = vrot.slane %v131_v45, %v8076_v24 }
0x14bd   :  { %7369 = vmatprep.subr.bf16.mxu0 %v7368_v62 }
0x14be   :  { %7516 = vpush %v3077_v0  ;;  %v3092_v4 = vadd.f32 %v3091_v2, %v3090_v61  ;;  %v146_v51 = vrot.slane %v132_v49, %v8076_v24  ;;  %v8546_v54 = vrot.slane %v139_v52, %v8084_v29 }
0x14bf   :  { %7371 = vmatpush3.bf16.msra.mxu0 %v7368_v62 }
0x14c0   :  { %7518 = vpush %v3092_v4  ;;  %7376 = vmatprep.subr.bf16.mxu0 %v7897_v11  ;;  %v8543_v53 = vrot.slane %v146_v51, %v8084_v29 }
0x14c2   :  { %7070 = vmatmul.mubr.msk.f32.vlgmr.msra.gmra.mrb[32].mxu0 %vm173_vm0, %v77_v6 }
0x14c3   :  { %7072 = vmatprep.mubr.msk.f32.mxu0 %vm173_vm0, %v78_v7 }
0x14c6   :  { %7073 = vmatmul.mubr.msk.f32.gmra.mrb[34].mxu0 %vm173_vm0, %v79_v3 }
0x14c7   :  { %7086 = vmatprep.mubr.msk.f32.mxu0 %vm7865_vm1, %v7864_v8 }
0x14ef   :  { %s7517_s30 = spop %7516 }
0x14f0   :  { %s3079_s25 = smul.f32 0.001953125, %s7517_s30  ;;  %s9095_s30 = smov 12  }
0x14f1   :  { %s7519_s7 = spop %7518 }
0x14f2   :  { %s3095_s26 = smul.f32 %s3079_s25, %s3079_s25  ;;  %v3097_v14 = vstv %s3079_s25  ;;  %s9098_s25 = smov 24  }
0x14f3   :  { %s3094_s12 = smul.f32 0.001953125, %s7519_s7  ;;  %v3098_v16 = vsub.f32 %v8433_v46, %v3097_v14  ;;  %v3099_v18 = vsub.f32 %v8428_v34, %v3097_v14  ;;  %v3225_v46 = vpop.permute.xlu0 %3224  ;;  %s9096_s7 = smov 16  }
0x14f5   :  { %s3096_s6 = ssub.f32 %s3094_s12, %s3095_s26  ;;  %s9097_s26 = smov 20  }
0x14f7   :  { %s3100_s27 = sadd.f32 1e-05, %s3096_s6  ;;  %s9089_s6 = smov 104  }
0x14f9   :  { %v3101_v9 = vstv %s3100_s27  ;;  %s9090_s27 = smov 72  }
0x14fa   :  { %7792 = vrsqrt.f32 %v3101_v9 }
0x1504   :  { %v7793_v10 = vpop.eup %7792 }
0x1505   :  { %7520 = vpush %v7793_v10 }
0x1536   :  { %s7521_s1 = spop %7520 }
0x1537   :  { %v3104_v20 = vstv %s7521_s1  ;;  %s9091_s1 = smov 100  }
0x1538   :  { %v3105_v21 = vmul.f32 %v3104_v20, %v3098_v16  ;;  %v3106_v22 = vmul.f32 %v3104_v20, %v3099_v18 }
0x153a   :  { %v3107_v28 = vmul.f32 %v3105_v21, %v3061_v5  ;;  %v3108_v12 = vmul.f32 %v3106_v22, %v3062_v19 }
0x153c   :  { %v8497_v34 = vadd.f32 %v3107_v28, %v3063_v25  ;;  %v8499_v39 = vadd.f32 %v3108_v12, %v3064_v27 }
0x153e   :  { %7058 = vmatprep.mubr.msk.f32.mxu1 %vm173_vm0, %v8497_v34 }
0x153f   :  { %7059 = vmatmul.mubr.msk.f32.vlgmr.msra.gmra.mrb[36].mxu1 %vm173_vm0, %v8499_v39 }
0x1540   :  { %7079 = vmatprep.mubr.msk.f32.mxu1 %vm7865_vm1, %v7864_v8 }
0x1595   :  { %v7071_v48 = vpop.f32.mrb[32].mxu0 }
0x1596   :  { %v3311_v26 = vadd.f32 %v7071_v48, %v3225_v46  ;;  %v3305_v30 = vpop.f32.mrb[33].mxu0 }
0x1597   :  { %v3306_v1 = vadd.f32 %v3305_v30, %v3225_v46 }
0x1599   :  { %v7074_v32 = vpop.f32.mrb[34].mxu0  ;;  %v7373_v33 = vpack.c.bf16 %v3311_v26, %v3306_v1  ;;  %v8513_v35 = vpack.i.bf16 %v3311_v26, %v3306_v1 }
0x159a   :  { %v3321_v36 = vadd.f32 %v7074_v32, %v3225_v46  ;;  %v3315_v37 = vpop.f32.mrb[35].mxu0 }
0x159b   :  { %v3316_v13 = vadd.f32 %v3315_v37, %v3225_v46  ;;  %7375 = vmatpush3.bf16.xpose.msk.msra.mxu1 %vm8509_vm11, %v7373_v33 }
0x159c   :  { %7380 = vmatprep.subr.bf16.mxu1 %v7897_v11 }
0x159d   :  { %v7377_v38 = vpack.c.bf16 %v3321_v36, %v3316_v13  ;;  %v8518_v23 = vpack.i.bf16 %v3321_v36, %v3316_v13 }
0x159f   :  { %7379 = vmatpush3.bf16.xpose.msk.msra.mxu0 %vm8509_vm11, %v7377_v38 }
0x15a0   :  { %7386 = vmatprep.subr.bf16.mxu0 %v7897_v11 }
0x1612   :  { %v7060_v63 = vpop.f32.mrb[36].mxu1 }
0x1613   :  { %v3205_v47 = vadd.f32 %v7060_v63, %v6580_v15  ;;  %v3199_v31 = vpop.f32.mrb[37].mxu1 }
0x1614   :  { %v3200_v40 = vadd.f32 %v6580_v15, %v3199_v31 }
0x1615   :  { %v8523_v41 = vmul.f32 0.5, %v3205_v47 }
0x1616   :  { %v8525_v42 = vmul.f32 0.5, %v3200_v40 }
0x1617   :  { %7087 = vmatmul.mubr.msk.f32.vlgmr.msra.gmra.mrb[36].mxu0 %vm260_vm2, %v8523_v41 }
0x1618   :  { %7080 = vmatmul.mubr.msk.f32.vlgmr.msra.gmra.mrb[38].mxu1 %vm260_vm2, %v8525_v42  ;;  %7107 = vmatprep.mubr.msk.f32.mxu0 %vm7865_vm1, %v7864_v8 }
0x1619   :  { %7093 = vmatprep.mubr.msk.f32.mxu1 %vm7865_vm1, %v7864_v8 }
0x16ea   :  { %v3480_v55 = vpop.f32.mrb[36].mxu0 }
0x16eb   :  { %v3481_v56 = vadd.f32 %v3480_v55, %v8543_v53  ;;  %v3401_v57 = vpop.f32.mrb[38].mxu1  ;;  %v7088_v58 = vpop.f32.mrb[37].mxu0 }
0x16ec   :  { %v3402_v17 = vadd.f32 %v3401_v57, %v8546_v54  ;;  %v7081_v59 = vpop.f32.mrb[39].mxu1 }
0x16ed   :  { %v3487_v60 = vsel %vm2962_vm7, %v3481_v56, -inf }
0x16ee   :  { %3488 = vmax.xlane.f32.xlu0 %v3487_v60  ;;  %v3484_v61 = vsel %vm2962_vm7, %v3402_v17, -inf }
0x16ef   :  { %3485 = vmax.xlane.f32.xlu1 %v3484_v61 }
0x177b   :  { %v3489_v24 = vpop.xlane.xlu0 %3488 }
0x177c   :  { %v3491_v62 = vsub.f32 %v3481_v56, %v3489_v24  ;;  %v3486_v0 = vpop.xlane.xlu1 %3485 }
0x177d   :  { %v3490_v2 = vsub.f32 %v3402_v17, %v3486_v0 }
0x177e   :  { %v3494_v29 = vmul.f32 1.442695, %v3491_v62 }
0x177f   :  { %v3492_v4 = vmul.f32 1.442695, %v3490_v2 }
0x1780   :  { %7794 = vpow2.f32 %v3494_v29 }
0x1781   :  { %7796 = vpow2.f32 %v3492_v4 }
0x178a   :  { %v7795_v6 = vpop.eup %7794 }
0x178b   :  { %v7797_v7 = vpop.eup %7796  ;;  %v3499_v15 = vsel %vm2962_vm7, %v7795_v6, 0.0 }
0x178c   :  { %3500 = vadd.xlane.f32.xlu1 %v3499_v15  ;;  %v3496_v3 = vsel %vm2962_vm7, %v7797_v7, 0.0 }
0x178d   :  { %3497 = vadd.xlane.f32.xlu0 %v3496_v3 }
0x179d   :  { %7584 = vrot.lane.b32.xlu1 %v8518_v23, %s7866_s24 }
0x17a1   :  { %7589 = vrot.lane.b32.xlu1 %v8513_v35, %s7870_s29 }
0x17a3   :  { %7579 = vrot.lane.b32.xlu0 %v8513_v35, %s7866_s24  ;;  %s9084_s24 = smov 84  }
0x17a5   :  { %3664 = vrot.lane.b32.xlu1 %v8525_v42, %s7870_s29 }
0x17a7   :  { %7594 = vrot.lane.b32.xlu0 %v8518_v23, %s7870_s29 }
0x17ab   :  { %3746 = vrot.lane.b32.xlu0 %v8523_v41, %s7870_s29  ;;  %s9086_s29 = smov 80  }
0x1819   :  { %v3501_v9 = vpop.xlane.xlu1 %3500 }
0x181a   :  { %v3498_v10 = vpop.xlane.xlu0 %3497 }
0x181b   :  { %7798 = vrcp.f32 %v3498_v10 }
0x181c   :  { %7800 = vrcp.f32 %v3501_v9 }
0x181d   :  { %v7585_v14 = vpop.permute.xlu1 %7584 }
0x181e   :  { %v7580_v16 = vpop.permute.xlu0 %7579  ;;  %v7587_v25 = vunpack.i.h.bf16 %v7585_v14  ;;  %v7586_v27 = vunpack.i.l.bf16 %v7585_v14 }
0x181f   :  { %v7582_v18 = vunpack.i.h.bf16 %v7580_v16  ;;  %v7581_v5 = vunpack.i.l.bf16 %v7580_v16 }
0x1820   :  { %v7384_v26 = vpack.c.bf16 %v7587_v25, %v7586_v27 }
0x1821   :  { %v7381_v19 = vpack.c.bf16 %v7582_v18, %v7581_v5  ;;  %v7590_v20 = vpop.permute.xlu1 %7589 }
0x1822   :  { %v7592_v21 = vunpack.i.h.bf16 %v7590_v20  ;;  %v7591_v22 = vunpack.i.l.bf16 %v7590_v20  ;;  %v7595_v30 = vpop.permute.xlu0 %7594 }
0x1823   :  { %7382 = vmatpush3.bf16.msra.mxu1 %v7381_v19  ;;  %v7597_v32 = vunpack.i.h.bf16 %v7595_v30  ;;  %v7596_v33 = vunpack.i.l.bf16 %v7595_v30 }
0x1824   :  { %v7387_v28 = vpack.c.bf16 %v7592_v21, %v7591_v22  ;;  %7383 = vmatprep.subr.bf16.mxu1 %v7897_v11 }
0x1825   :  { %v7799_v12 = vpop.eup %7798  ;;  %v3665_v36 = vpop.permute.xlu1 %3664  ;;  %v7391_v37 = vpack.c.bf16 %v7597_v32, %v7596_v33 }
0x1826   :  { %v3503_v46 = vmul.f32 %v7799_v12, %v7797_v7  ;;  %7389 = vmatpush3.bf16.xpose.msk.msra.mxu0 %vm8509_vm11, %v7387_v28  ;;  %v7801_v48 = vpop.eup %7800  ;;  %v3747_v13 = vpop.permute.xlu0 %3746 }
0x1827   :  { %7394 = vmatprep.subr.bf16.mxu0 %v7897_v11  ;;  %v3505_v1 = vmul.f32 %v7801_v48, %v7795_v6 }
0x1828   :  { %7094 = vmatmul.mubr.msk.f32.vlgmr.msra.gmra.mrb[40].mxu1 %vm2962_vm7, %v3503_v46 }
0x1829   :  { %7385 = vmatpush3.bf16.msra.mxu1 %v7384_v26  ;;  %7100 = vmatprep.mubr.msk.f32.mxu1 %vm7865_vm1, %v7864_v8 }
0x182a   :  { %7390 = vmatprep.subr.bf16.mxu1 %v7897_v11 }
0x182c   :  { %7101 = vmatmul.mubr.msk.f32.vlgmr.msra.gmra.mrb[42].mxu1 %vm2962_vm7, %v3505_v1 }
0x182d   :  { %7108 = vmatmul.mubr.msk.f32.vlgmr.msra.gmra.mrb[38].mxu0 %vm260_vm2, %v3665_v36  ;;  %7114 = vmatprep.mubr.msk.f32.mxu1 %vm7865_vm1, %v7864_v8 }
0x182e   :  { %7121 = vmatprep.mubr.msk.f32.mxu0 %vm7865_vm1, %v7864_v8 }
0x1832   :  { %7393 = vmatpush3.bf16.xpose.msk.msra.mxu1 %vm8509_vm11, %v7391_v37 }
0x1833   :  { %7397 = vmatprep.subr.bf16.mxu1 %v7897_v11 }
0x1839   :  { %7115 = vmatmul.mubr.msk.f32.vlgmr.msra.gmra.mrb[44].mxu1 %vm260_vm2, %v3747_v13 }
0x183a   :  { %7128 = vmatprep.mubr.msk.f32.mxu1 %vm7865_vm1, %v7864_v8 }
0x18fb   :  { %v8586_v38 = vpop.f32.mrb[40].mxu1 }
0x18fc   :  { %v7095_v63 = vpop.f32.mrb[41].mxu1 }
0x18ff   :  { %v8588_v47 = vpop.f32.mrb[42].mxu1 }
0x1900   :  { %v7102_v31 = vpop.f32.mrb[43].mxu1  ;;  %v3742_v40 = vpop.f32.mrb[38].mxu0 }
0x1901   :  { %v3743_v43 = vadd.f32 %v3742_v40, %v8546_v54  ;;  %v7109_v44 = vpop.f32.mrb[39].mxu0 }
0x1903   :  { %v3828_v45 = vsel %vm2962_vm7, %v3743_v43, -inf }
0x1904   :  { %3829 = vmax.xlane.f32.xlu1 %v3828_v45 }
0x190c   :  { %v3824_v49 = vpop.f32.mrb[44].mxu1 }
0x190d   :  { %v3825_v51 = vadd.f32 %v3824_v49, %v8543_v53  ;;  %v7116_v52 = vpop.f32.mrb[45].mxu1 }
0x190f   :  { %v3831_v55 = vsel %vm2962_vm7, %v3825_v51, -inf }
0x1910   :  { %3832 = vmax.xlane.f32.xlu0 %v3831_v55 }
0x1915   :  { %7604 = vrot.lane.b32.xlu1 %v8518_v23, %s7869_s11 }
0x1919   :  { %7609 = vrot.lane.b32.xlu1 %v8513_v35, %s7873_s2 }
0x1991   :  { %v3830_v56 = vpop.xlane.xlu1 %3829 }
0x1992   :  { %v3834_v57 = vsub.f32 %v3743_v43, %v3830_v56 }
0x1994   :  { %v3836_v58 = vmul.f32 1.442695, %v3834_v57 }
0x1995   :  { %v7605_v17 = vpop.permute.xlu1 %7604 }
0x1996   :  { %7802 = vpow2.f32 %v3836_v58  ;;  %v7607_v59 = vunpack.i.h.bf16 %v7605_v17  ;;  %v7606_v60 = vunpack.i.l.bf16 %v7605_v17 }
0x1998   :  { %v7398_v61 = vpack.c.bf16 %v7607_v59, %v7606_v60 }
0x1999   :  { %v7610_v14 = vpop.permute.xlu1 %7609 }
0x199a   :  { %7399 = vmatpush3.bf16.msra.mxu1 %v7398_v61  ;;  %v7612_v18 = vunpack.i.h.bf16 %v7610_v14  ;;  %v7611_v5 = vunpack.i.l.bf16 %v7610_v14 }
0x199b   :  { %7404 = vmatprep.subr.bf16.mxu1 %v7897_v11 }
0x199c   :  { %v7401_v21 = vpack.c.bf16 %v7612_v18, %v7611_v5 }
0x199d   :  { %v3833_v24 = vpop.xlane.xlu0 %3832 }
0x199e   :  { %v3835_v62 = vsub.f32 %v3825_v51, %v3833_v24 }
0x19a0   :  { %v7803_v0 = vpop.eup %7802  ;;  %v3838_v2 = vmul.f32 1.442695, %v3835_v62 }
0x19a1   :  { %v3840_v29 = vsel %vm2962_vm7, %v7803_v0, 0.0 }
0x19a2   :  { %7804 = vpow2.f32 %v3838_v2  ;;  %3841 = vadd.xlane.f32.xlu0 %v3840_v29 }
0x19ac   :  { %v7805_v4 = vpop.eup %7804 }
0x19ad   :  { %v3843_v6 = vsel %vm2962_vm7, %v7805_v4, 0.0 }
0x19ae   :  { %3844 = vadd.xlane.f32.xlu1 %v3843_v6 }
0x19b8   :  { %7599 = vrot.lane.b32.xlu0 %v8513_v35, %s7869_s11  ;;  %s9085_s11 = smov 112  }
0x19bc   :  { %7614 = vrot.lane.b32.xlu0 %v8518_v23, %s7873_s2 }
0x19bf   :  { %4008 = vrot.lane.b32.xlu1 %v8525_v42, %s7873_s2 }
0x19c0   :  { %4090 = vrot.lane.b32.xlu0 %v8523_v41, %s7873_s2  ;;  %s9088_s2 = smov 76  }
0x1a2f   :  { %v3842_v7 = vpop.xlane.xlu0 %3841 }
0x1a30   :  { %7806 = vrcp.f32 %v3842_v7 }
0x1a33   :  { %v7600_v15 = vpop.permute.xlu0 %7599 }
0x1a34   :  { %v7602_v3 = vunpack.i.h.bf16 %v7600_v15  ;;  %v7601_v9 = vunpack.i.l.bf16 %v7600_v15 }
0x1a36   :  { %v7395_v10 = vpack.c.bf16 %v7602_v3, %v7601_v9 }
0x1a37   :  { %v7615_v22 = vpop.permute.xlu0 %7614 }
0x1a38   :  { %7396 = vmatpush3.bf16.msra.mxu0 %v7395_v10  ;;  %v7617_v25 = vunpack.i.h.bf16 %v7615_v22  ;;  %v7616_v27 = vunpack.i.l.bf16 %v7615_v22 }
0x1a39   :  { %7400 = vmatprep.subr.bf16.mxu0 %v7897_v11 }
0x1a3a   :  { %v7807_v16 = vpop.eup %7806  ;;  %v7405_v48 = vpack.c.bf16 %v7617_v25, %v7616_v27 }
0x1a3b   :  { %v3847_v19 = vmul.f32 %v7807_v16, %v7803_v0  ;;  %v3845_v20 = vpop.xlane.xlu1 %3844  ;;  %v4091_v26 = vpop.permute.xlu0 %4090 }
0x1a3c   :  { %7808 = vrcp.f32 %v3845_v20 }
0x1a3d   :  { %7122 = vmatmul.mubr.msk.f32.vlgmr.msra.gmra.mrb[40].mxu0 %vm2962_vm7, %v3847_v19 }
0x1a3e   :  { %7135 = vmatprep.mubr.msk.f32.mxu0 %vm7865_vm1, %v7864_v8 }
0x1a3f   :  { %v4009_v46 = vpop.permute.xlu1 %4008 }
0x1a41   :  { %7403 = vmatpush3.bf16.xpose.msk.msra.mxu0 %vm8509_vm11, %v7401_v21 }
0x1a42   :  { %7408 = vmatprep.subr.bf16.mxu0 %v7897_v11 }
0x1a46   :  { %v7809_v28 = vpop.eup %7808 }
0x1a47   :  { %v3849_v12 = vmul.f32 %v7809_v28, %v7805_v4 }
0x1a48   :  { %7136 = vmatmul.mubr.msk.f32.vlgmr.msra.gmra.mrb[42].mxu0 %vm260_vm2, %v4009_v46 }
0x1a49   :  { %7129 = vmatmul.mubr.msk.f32.vlgmr.msra.gmra.mrb[46].mxu1 %vm2962_vm7, %v3849_v12  ;;  %7149 = vmatprep.mubr.msk.f32.mxu0 %vm7865_vm1, %v7864_v8 }
0x1a4a   :  { %7407 = vmatpush3.bf16.xpose.msk.msra.mxu1 %vm8509_vm11, %v7405_v48  ;;  %7142 = vmatprep.mubr.msk.f32.mxu1 %vm7865_vm1, %v7864_v8 }
0x1a4b   :  { %7411 = vmatprep.subr.bf16.mxu1 %v7897_v11 }
0x1a51   :  { %7143 = vmatmul.mubr.msk.f32.vlgmr.msra.gmra.mrb[48].mxu1 %vm260_vm2, %v4091_v26 }
0x1a52   :  { %7156 = vmatprep.mubr.msk.f32.mxu1 %vm7865_vm1, %v7864_v8 }
0x1b10   :  { %v8628_v30 = vpop.f32.mrb[40].mxu0 }
0x1b11   :  { %v7123_v1 = vpop.f32.mrb[41].mxu0 }
0x1b1b   :  { %v4086_v32 = vpop.f32.mrb[42].mxu0 }
0x1b1c   :  { %v8630_v33 = vpop.f32.mrb[46].mxu1  ;;  %v4087_v36 = vadd.f32 %v4086_v32, %v8546_v54  ;;  %v7137_v37 = vpop.f32.mrb[43].mxu0 }
0x1b1d   :  { %v7130_v13 = vpop.f32.mrb[47].mxu1 }
0x1b1e   :  { %v4172_v63 = vsel %vm2962_vm7, %v4087_v36, -inf }
0x1b1f   :  { %4173 = vmax.xlane.f32.xlu1 %v4172_v63 }
0x1b24   :  { %v4168_v31 = vpop.f32.mrb[48].mxu1 }
0x1b25   :  { %v4169_v40 = vadd.f32 %v4168_v31, %v8543_v53  ;;  %v7144_v43 = vpop.f32.mrb[49].mxu1 }
0x1b27   :  { %v4175_v44 = vsel %vm2962_vm7, %v4169_v40, -inf }
0x1b28   :  { %4176 = vmax.xlane.f32.xlu0 %v4175_v44 }
0x1b30   :  { %7624 = vrot.lane.b32.xlu1 %v8518_v23, %s7872_s5 }
0x1b34   :  { %7629 = vrot.lane.b32.xlu1 %v8513_v35, %s9083_s4 }
0x1bac   :  { %v4174_v45 = vpop.xlane.xlu1 %4173 }
0x1bad   :  { %v4178_v49 = vsub.f32 %v4087_v36, %v4174_v45 }
0x1baf   :  { %v4180_v51 = vmul.f32 1.442695, %v4178_v49 }
0x1bb0   :  { %v7625_v52 = vpop.permute.xlu1 %7624 }
0x1bb1   :  { %7810 = vpow2.f32 %v4180_v51  ;;  %v7627_v55 = vunpack.i.h.bf16 %v7625_v52  ;;  %v7626_v56 = vunpack.i.l.bf16 %v7625_v52 }
0x1bb3   :  { %v7412_v57 = vpack.c.bf16 %v7627_v55, %v7626_v56 }
0x1bb4   :  { %v7630_v29 = vpop.permute.xlu1 %7629 }
0x1bb5   :  { %v4177_v58 = vpop.xlane.xlu0 %4176  ;;  %7413 = vmatpush3.bf16.msra.mxu1 %v7412_v57  ;;  %v7632_v9 = vunpack.i.h.bf16 %v7630_v29  ;;  %v7631_v10 = vunpack.i.l.bf16 %v7630_v29 }
0x1bb6   :  { %v4179_v17 = vsub.f32 %v4169_v40, %v4177_v58  ;;  %7418 = vmatprep.subr.bf16.mxu1 %v7897_v11 }
0x1bb7   :  { %v7415_v18 = vpack.c.bf16 %v7632_v9, %v7631_v10 }
0x1bb8   :  { %v4182_v59 = vmul.f32 1.442695, %v4179_v17 }
0x1bba   :  { %7812 = vpow2.f32 %v4182_v59 }
0x1bbb   :  { %v7811_v60 = vpop.eup %7810 }
0x1bbc   :  { %v4184_v61 = vsel %vm2962_vm7, %v7811_v60, 0.0 }
0x1bbd   :  { %4185 = vadd.xlane.f32.xlu0 %v4184_v61 }
0x1bc4   :  { %v7813_v24 = vpop.eup %7812 }
0x1bc5   :  { %v4187_v62 = vsel %vm2962_vm7, %v7813_v24, 0.0 }
0x1bc6   :  { %4188 = vadd.xlane.f32.xlu1 %v4187_v62 }
0x1bd3   :  { %7619 = vrot.lane.b32.xlu0 %v8513_v35, %s7872_s5  ;;  %s9087_s5 = smov 108  }
0x1bd7   :  { %4352 = vrot.lane.b32.xlu1 %v8525_v42, %s9083_s4  ;;  %7634 = vrot.lane.b32.xlu0 %v8518_v23, %s9083_s4 }
0x1bdb   :  { %4434 = vrot.lane.b32.xlu0 %v8523_v41, %s9083_s4 }
0x1c4a   :  { %v4186_v0 = vpop.xlane.xlu0 %4185 }
0x1c4b   :  { %7814 = vrcp.f32 %v4186_v0 }
0x1c4e   :  { %v7620_v2 = vpop.permute.xlu0 %7619 }
0x1c4f   :  { %v7622_v4 = vunpack.i.h.bf16 %v7620_v2  ;;  %v7621_v6 = vunpack.i.l.bf16 %v7620_v2 }
0x1c51   :  { %v7409_v7 = vpack.c.bf16 %v7622_v4, %v7621_v6 }
0x1c52   :  { %v7635_v16 = vpop.permute.xlu0 %7634 }
0x1c53   :  { %v4189_v15 = vpop.xlane.xlu1 %4188  ;;  %7410 = vmatpush3.bf16.msra.mxu0 %v7409_v7  ;;  %v7637_v5 = vunpack.i.h.bf16 %v7635_v16  ;;  %v7636_v19 = vunpack.i.l.bf16 %v7635_v16 }
0x1c54   :  { %7816 = vrcp.f32 %v4189_v15  ;;  %7414 = vmatprep.subr.bf16.mxu0 %v7897_v11 }
0x1c55   :  { %v7815_v3 = vpop.eup %7814  ;;  %v7419_v22 = vpack.c.bf16 %v7637_v5, %v7636_v19 }
0x1c56   :  { %v4191_v14 = vmul.f32 %v7815_v3, %v7811_v60  ;;  %v4435_v27 = vpop.permute.xlu0 %4434 }
0x1c57   :  { %v4353_v25 = vpop.permute.xlu1 %4352 }
0x1c58   :  { %7150 = vmatmul.mubr.msk.f32.vlgmr.msra.gmra.mrb[44].mxu0 %vm2962_vm7, %v4191_v14 }
0x1c59   :  { %7163 = vmatprep.mubr.msk.f32.mxu0 %vm7865_vm1, %v7864_v8 }
0x1c5c   :  { %7417 = vmatpush3.bf16.xpose.msk.msra.mxu0 %vm8509_vm11, %v7415_v18 }
0x1c5d   :  { %7422 = vmatprep.subr.bf16.mxu0 %v7897_v11 }
0x1c5e   :  { %v7817_v20 = vpop.eup %7816 }
0x1c5f   :  { %v4193_v21 = vmul.f32 %v7817_v20, %v7813_v24 }
0x1c61   :  { %7157 = vmatmul.mubr.msk.f32.vlgmr.msra.gmra.mrb[50].mxu1 %vm2962_vm7, %v4193_v21 }
0x1c62   :  { %7421 = vmatpush3.bf16.xpose.msk.msra.mxu1 %vm8509_vm11, %v7419_v22  ;;  %7170 = vmatprep.mubr.msk.f32.mxu1 %vm7865_vm1, %v7864_v8 }
0x1c63   :  { %7164 = vmatmul.mubr.msk.f32.vlgmr.msra.gmra.mrb[46].mxu0 %vm260_vm2, %v4353_v25  ;;  %7425 = vmatprep.subr.bf16.mxu1 %v7897_v11 }
0x1c64   :  { %7177 = vmatprep.mubr.msk.f32.mxu0 %vm7865_vm1, %v7864_v8 }
0x1c69   :  { %7171 = vmatmul.mubr.msk.f32.vlgmr.msra.gmra.mrb[52].mxu1 %vm260_vm2, %v4435_v27 }
0x1c6a   :  { %7184 = vmatprep.mubr.msk.f32.mxu1 %vm7865_vm1, %v7864_v8 }
0x1d2b   :  { %v8670_v28 = vpop.f32.mrb[44].mxu0 }
0x1d2c   :  { %v7151_v12 = vpop.f32.mrb[45].mxu0 }
0x1d34   :  { %v8672_v46 = vpop.f32.mrb[50].mxu1 }
0x1d35   :  { %v7158_v48 = vpop.f32.mrb[51].mxu1 }
0x1d36   :  { %v4430_v26 = vpop.f32.mrb[46].mxu0 }
0x1d37   :  { %v4431_v1 = vadd.f32 %v4430_v26, %v8546_v54  ;;  %v7165_v32 = vpop.f32.mrb[47].mxu0 }
0x1d39   :  { %v4516_v36 = vsel %vm2962_vm7, %v4431_v1, -inf }
0x1d3a   :  { %4517 = vmax.xlane.f32.xlu1 %v4516_v36 }
0x1d3c   :  { %v4512_v37 = vpop.f32.mrb[52].mxu1 }
0x1d3d   :  { %v4513_v13 = vadd.f32 %v4512_v37, %v8543_v53  ;;  %v7172_v63 = vpop.f32.mrb[53].mxu1 }
0x1d3f   :  { %v4519_v31 = vsel %vm2962_vm7, %v4513_v13, -inf }
0x1d40   :  { %4520 = vmax.xlane.f32.xlu0 %v4519_v31 }
0x1d4b   :  { %7644 = vrot.lane.b32.xlu1 %v8518_v23, %s9084_s24 }
0x1d4f   :  { %7649 = vrot.lane.b32.xlu1 %v8513_v35, %s9085_s11 }
0x1dc7   :  { %v4518_v40 = vpop.xlane.xlu1 %4517 }
0x1dc8   :  { %v4522_v43 = vsub.f32 %v4431_v1, %v4518_v40 }
0x1dca   :  { %v4524_v44 = vmul.f32 1.442695, %v4522_v43 }
0x1dcb   :  { %v7645_v45 = vpop.permute.xlu1 %7644 }
0x1dcc   :  { %7818 = vpow2.f32 %v4524_v44  ;;  %v7647_v49 = vunpack.i.h.bf16 %v7645_v45  ;;  %v7646_v51 = vunpack.i.l.bf16 %v7645_v45 }
0x1dcd   :  { %v4521_v52 = vpop.xlane.xlu0 %4520 }
0x1dce   :  { %v4523_v55 = vsub.f32 %v4513_v13, %v4521_v52  ;;  %v7426_v56 = vpack.c.bf16 %v7647_v49, %v7646_v51 }
0x1dcf   :  { %v7650_v24 = vpop.permute.xlu1 %7649 }
0x1dd0   :  { %v4526_v57 = vmul.f32 1.442695, %v4523_v55  ;;  %7427 = vmatpush3.bf16.msra.mxu1 %v7426_v56  ;;  %v7652_v7 = vunpack.i.h.bf16 %v7650_v24  ;;  %v7651_v15 = vunpack.i.l.bf16 %v7650_v24 }
0x1dd1   :  { %7432 = vmatprep.subr.bf16.mxu1 %v7897_v11 }
0x1dd2   :  { %7820 = vpow2.f32 %v4526_v57  ;;  %v7429_v16 = vpack.c.bf16 %v7652_v7, %v7651_v15 }
0x1dd6   :  { %v7819_v58 = vpop.eup %7818 }
0x1dd7   :  { %v4528_v17 = vsel %vm2962_vm7, %v7819_v58, 0.0 }
0x1dd8   :  { %4529 = vadd.xlane.f32.xlu0 %v4528_v17 }
0x1ddc   :  { %v7821_v59 = vpop.eup %7820 }
0x1ddd   :  { %v4531_v60 = vsel %vm2962_vm7, %v7821_v59, 0.0 }
0x1dde   :  { %4532 = vadd.xlane.f32.xlu1 %v4531_v60 }
0x1dee   :  { %7639 = vrot.lane.b32.xlu0 %v8513_v35, %s9084_s24 }
0x1def   :  { %4696 = vrot.lane.b32.xlu1 %v8525_v42, %s9085_s11 }
0x1df2   :  { %7654 = vrot.lane.b32.xlu0 %v8518_v23, %s9085_s11 }
0x1df6   :  { %4778 = vrot.lane.b32.xlu0 %v8523_v41, %s9085_s11 }
0x1e65   :  { %v4530_v61 = vpop.xlane.xlu0 %4529 }
0x1e66   :  { %7822 = vrcp.f32 %v4530_v61 }
0x1e69   :  { %v7640_v62 = vpop.permute.xlu0 %7639 }
0x1e6a   :  { %v7642_v0 = vunpack.i.h.bf16 %v7640_v62  ;;  %v7641_v2 = vunpack.i.l.bf16 %v7640_v62 }
0x1e6b   :  { %v4533_v29 = vpop.xlane.xlu1 %4532 }
0x1e6c   :  { %7824 = vrcp.f32 %v4533_v29  ;;  %v7423_v4 = vpack.c.bf16 %v7642_v0, %v7641_v2 }
0x1e6d   :  { %v7655_v9 = vpop.permute.xlu0 %7654 }
0x1e6e   :  { %7424 = vmatpush3.bf16.msra.mxu0 %v7423_v4  ;;  %v7657_v10 = vunpack.i.h.bf16 %v7655_v9  ;;  %v7656_v14 = vunpack.i.l.bf16 %v7655_v9 }
0x1e6f   :  { %7428 = vmatprep.subr.bf16.mxu0 %v7897_v11  ;;  %v4697_v20 = vpop.permute.xlu1 %4696 }
0x1e70   :  { %v7823_v6 = vpop.eup %7822  ;;  %v7433_v19 = vpack.c.bf16 %v7657_v10, %v7656_v14 }
0x1e71   :  { %v4535_v3 = vmul.f32 %v7823_v6, %v7819_v58  ;;  %v4779_v21 = vpop.permute.xlu0 %4778 }
0x1e73   :  { %7178 = vmatmul.mubr.msk.f32.vlgmr.msra.gmra.mrb[48].mxu0 %vm2962_vm7, %v4535_v3 }
0x1e74   :  { %7191 = vmatprep.mubr.msk.f32.mxu0 %vm7865_vm1, %v7864_v8 }
0x1e76   :  { %v7825_v18 = vpop.eup %7824 }
0x1e77   :  { %v4537_v5 = vmul.f32 %v7825_v18, %v7821_v59  ;;  %7431 = vmatpush3.bf16.xpose.msk.msra.mxu0 %vm8509_vm11, %v7429_v16 }
0x1e78   :  { %7436 = vmatprep.subr.bf16.mxu0 %v7897_v11 }
0x1e79   :  { %7185 = vmatmul.mubr.msk.f32.vlgmr.msra.gmra.mrb[54].mxu1 %vm2962_vm7, %v4537_v5 }
0x1e7a   :  { %7435 = vmatpush3.bf16.xpose.msk.msra.mxu1 %vm8509_vm11, %v7433_v19  ;;  %7198 = vmatprep.mubr.msk.f32.mxu1 %vm7865_vm1, %v7864_v8 }
0x1e7b   :  { %7439 = vmatprep.subr.bf16.mxu1 %v7897_v11 }
0x1e7e   :  { %7192 = vmatmul.mubr.msk.f32.vlgmr.msra.gmra.mrb[50].mxu0 %vm260_vm2, %v4697_v20 }
0x1e7f   :  { %7205 = vmatprep.mubr.msk.f32.mxu0 %vm7865_vm1, %v7864_v8 }
0x1e81   :  { %7199 = vmatmul.mubr.msk.f32.vlgmr.msra.gmra.mrb[56].mxu1 %vm260_vm2, %v4779_v21 }
0x1e82   :  { %7212 = vmatprep.mubr.msk.f32.mxu1 %vm7865_vm1, %v7864_v8 }
0x1f46   :  { %v8712_v22 = vpop.f32.mrb[48].mxu0 }
0x1f47   :  { %v7179_v25 = vpop.f32.mrb[49].mxu0 }
0x1f4c   :  { %v8714_v27 = vpop.f32.mrb[54].mxu1 }
0x1f4d   :  { %v7186_v12 = vpop.f32.mrb[55].mxu1 }
0x1f51   :  { %v4774_v48 = vpop.f32.mrb[50].mxu0 }
0x1f52   :  { %v4775_v26 = vadd.f32 %v4774_v48, %v8546_v54  ;;  %v7193_v1 = vpop.f32.mrb[51].mxu0 }
0x1f54   :  { %v4856_v32 = vpop.f32.mrb[56].mxu1  ;;  %v4860_v36 = vsel %vm2962_vm7, %v4775_v26, -inf }
0x1f55   :  { %v4857_v37 = vadd.f32 %v4856_v32, %v8543_v53  ;;  %v7200_v13 = vpop.f32.mrb[57].mxu1  ;;  %4861 = vmax.xlane.f32.xlu1 %v4860_v36 }
0x1f57   :  { %v4863_v63 = vsel %vm2962_vm7, %v4857_v37, -inf }
0x1f58   :  { %4864 = vmax.xlane.f32.xlu0 %v4863_v63 }
0x1f66   :  { %7664 = vrot.lane.b32.xlu1 %v8518_v23, %s9086_s29 }
0x1f6a   :  { %7669 = vrot.lane.b32.xlu1 %v8513_v35, %s9087_s5 }
0x1fe2   :  { %v4862_v31 = vpop.xlane.xlu1 %4861 }
0x1fe3   :  { %v4866_v40 = vsub.f32 %v4775_v26, %v4862_v31 }
0x1fe5   :  { %v4865_v43 = vpop.xlane.xlu0 %4864  ;;  %v4868_v44 = vmul.f32 1.442695, %v4866_v40 }
0x1fe6   :  { %v4867_v45 = vsub.f32 %v4857_v37, %v4865_v43  ;;  %v7665_v49 = vpop.permute.xlu1 %7664 }
0x1fe7   :  { %7826 = vpow2.f32 %v4868_v44  ;;  %v7667_v51 = vunpack.i.h.bf16 %v7665_v49  ;;  %v7666_v52 = vunpack.i.l.bf16 %v7665_v49 }
0x1fe8   :  { %v4870_v55 = vmul.f32 1.442695, %v4867_v45 }
0x1fe9   :  { %v7440_v56 = vpack.c.bf16 %v7667_v51, %v7666_v52 }
0x1fea   :  { %7828 = vpow2.f32 %v4870_v55  ;;  %v7670_v60 = vpop.permute.xlu1 %7669 }
0x1feb   :  { %7441 = vmatpush3.bf16.msra.mxu1 %v7440_v56  ;;  %v7672_v3 = vunpack.i.h.bf16 %v7670_v60  ;;  %v7671_v9 = vunpack.i.l.bf16 %v7670_v60 }
0x1fec   :  { %7446 = vmatprep.subr.bf16.mxu1 %v7897_v11 }
0x1fed   :  { %v7443_v5 = vpack.c.bf16 %v7672_v3, %v7671_v9 }
0x1ff1   :  { %v7827_v57 = vpop.eup %7826 }
0x1ff2   :  { %v4872_v58 = vsel %vm2962_vm7, %v7827_v57, 0.0 }
0x1ff3   :  { %4873 = vadd.xlane.f32.xlu0 %v4872_v58 }
0x1ff4   :  { %v7829_v17 = vpop.eup %7828 }
0x1ff5   :  { %v4875_v59 = vsel %vm2962_vm7, %v7829_v17, 0.0 }
0x1ff6   :  { %4876 = vadd.xlane.f32.xlu1 %v4875_v59 }
0x2007   :  { %5040 = vrot.lane.b32.xlu1 %v8525_v42, %s9087_s5 }
0x2009   :  { %7659 = vrot.lane.b32.xlu0 %v8513_v35, %s9086_s29 }
0x200d   :  { %7674 = vrot.lane.b32.xlu0 %v8518_v23, %s9087_s5 }
0x2011   :  { %5122 = vrot.lane.b32.xlu0 %v8523_v41, %s9087_s5 }
0x2080   :  { %v4874_v61 = vpop.xlane.xlu0 %4873 }
0x2081   :  { %7830 = vrcp.f32 %v4874_v61 }
0x2083   :  { %v4877_v24 = vpop.xlane.xlu1 %4876 }
0x2084   :  { %7832 = vrcp.f32 %v4877_v24  ;;  %v7660_v62 = vpop.permute.xlu0 %7659 }
0x2085   :  { %v7662_v0 = vunpack.i.h.bf16 %v7660_v62  ;;  %v7661_v2 = vunpack.i.l.bf16 %v7660_v62 }
0x2087   :  { %v7437_v29 = vpack.c.bf16 %v7662_v0, %v7661_v2  ;;  %v5041_v19 = vpop.permute.xlu1 %5040 }
0x2088   :  { %v7675_v4 = vpop.permute.xlu0 %7674 }
0x2089   :  { %7438 = vmatpush3.bf16.msra.mxu0 %v7437_v29  ;;  %v7677_v6 = vunpack.i.h.bf16 %v7675_v4  ;;  %v7676_v7 = vunpack.i.l.bf16 %v7675_v4 }
0x208a   :  { %7442 = vmatprep.subr.bf16.mxu0 %v7897_v11 }
0x208b   :  { %v7831_v15 = vpop.eup %7830  ;;  %v7447_v16 = vpack.c.bf16 %v7677_v6, %v7676_v7 }
0x208c   :  { %v4879_v10 = vmul.f32 %v7831_v15, %v7827_v57  ;;  %v5123_v20 = vpop.permute.xlu0 %5122 }
0x208e   :  { %v7833_v14 = vpop.eup %7832  ;;  %7206 = vmatmul.mubr.msk.f32.vlgmr.msra.gmra.mrb[52].mxu0 %vm2962_vm7, %v4879_v10 }
0x208f   :  { %v4881_v18 = vmul.f32 %v7833_v14, %v7829_v17  ;;  %7219 = vmatprep.mubr.msk.f32.mxu0 %vm7865_vm1, %v7864_v8 }
0x2091   :  { %7213 = vmatmul.mubr.msk.f32.vlgmr.msra.gmra.mrb[58].mxu1 %vm2962_vm7, %v4881_v18 }
0x2092   :  { %7449 = vmatpush3.bf16.xpose.msk.msra.mxu1 %vm8509_vm11, %v7447_v16  ;;  %7445 = vmatpush3.bf16.xpose.msk.msra.mxu0 %vm8509_vm11, %v7443_v5 }
0x2093   :  { %7226 = vmatprep.mubr.msk.f32.mxu1 %vm7865_vm1, %v7864_v8  ;;  %7453 = vmatprep.subr.bf16.mxu1 %v7897_v11 }
0x2094   :  { %7450 = vmatprep.subr.bf16.mxu0 %v7897_v11 }
0x2099   :  { %7227 = vmatmul.mubr.msk.f32.vlgmr.msra.gmra.mrb[60].mxu1 %vm260_vm2, %v5123_v20  ;;  %7220 = vmatmul.mubr.msk.f32.vlgmr.msra.gmra.mrb[54].mxu0 %vm260_vm2, %v5041_v19 }
0x209a   :  { %7240 = vmatprep.mubr.msk.f32.mxu1 %vm7865_vm1, %v7864_v8  ;;  %7233 = vmatprep.mubr.msk.f32.mxu0 %vm7865_vm1, %v7864_v8 }
0x2161   :  { %v8754_v21 = vpop.f32.mrb[52].mxu0 }
0x2162   :  { %v7207_v25 = vpop.f32.mrb[53].mxu0 }
0x2164   :  { %v8756_v12 = vpop.f32.mrb[58].mxu1 }
0x2165   :  { %v7214_v48 = vpop.f32.mrb[59].mxu1 }
0x216c   :  { %v5200_v26 = vpop.f32.mrb[60].mxu1  ;;  %v5118_v1 = vpop.f32.mrb[54].mxu0 }
0x216d   :  { %v5201_v32 = vadd.f32 %v5200_v26, %v8543_v53  ;;  %v7228_v36 = vpop.f32.mrb[61].mxu1  ;;  %v5119_v37 = vadd.f32 %v5118_v1, %v8546_v54  ;;  %v7221_v13 = vpop.f32.mrb[55].mxu0 }
0x216f   :  { %v5207_v63 = vsel %vm2962_vm7, %v5201_v32, -inf  ;;  %v5204_v31 = vsel %vm2962_vm7, %v5119_v37, -inf }
0x2170   :  { %5208 = vmax.xlane.f32.xlu0 %v5207_v63  ;;  %5205 = vmax.xlane.f32.xlu1 %v5204_v31 }
0x2181   :  { %7684 = vrot.lane.b32.xlu1 %v8518_v23, %s9088_s2 }
0x2185   :  { %7689 = vrot.lane.b32.xlu1 %v8513_v35, %s9089_s6 }
0x21fd   :  { %v5209_v40 = vpop.xlane.xlu0 %5208  ;;  %v5206_v43 = vpop.xlane.xlu1 %5205 }
0x21fe   :  { %v5211_v44 = vsub.f32 %v5201_v32, %v5209_v40  ;;  %v5210_v45 = vsub.f32 %v5119_v37, %v5206_v43 }
0x2200   :  { %v5214_v49 = vmul.f32 1.442695, %v5211_v44  ;;  %v5212_v51 = vmul.f32 1.442695, %v5210_v45 }
0x2201   :  { %v7685_v52 = vpop.permute.xlu1 %7684 }
0x2202   :  { %7834 = vpow2.f32 %v5214_v49  ;;  %v7687_v55 = vunpack.i.h.bf16 %v7685_v52  ;;  %v7686_v56 = vunpack.i.l.bf16 %v7685_v52 }
0x2203   :  { %7836 = vpow2.f32 %v5212_v51 }
0x2204   :  { %v7454_v57 = vpack.c.bf16 %v7687_v55, %v7686_v56 }
0x2205   :  { %v7690_v61 = vpop.permute.xlu1 %7689 }
0x2206   :  { %7455 = vmatpush3.bf16.msra.mxu1 %v7454_v57  ;;  %v7692_v16 = vunpack.i.h.bf16 %v7690_v61  ;;  %v7691_v18 = vunpack.i.l.bf16 %v7690_v61 }
0x2207   :  { %7460 = vmatprep.subr.bf16.mxu1 %v7897_v11 }
0x2208   :  { %v7457_v19 = vpack.c.bf16 %v7692_v16, %v7691_v18 }
0x220c   :  { %v7835_v58 = vpop.eup %7834 }
0x220d   :  { %v7837_v17 = vpop.eup %7836  ;;  %v5219_v59 = vsel %vm2962_vm7, %v7835_v58, 0.0 }
0x220e   :  { %5220 = vadd.xlane.f32.xlu1 %v5219_v59  ;;  %v5216_v60 = vsel %vm2962_vm7, %v7837_v17, 0.0 }
0x220f   :  { %5217 = vadd.xlane.f32.xlu0 %v5216_v60 }
0x221f   :  { %5384 = vrot.lane.b32.xlu1 %v8525_v42, %s9089_s6 }
0x2225   :  { %7679 = vrot.lane.b32.xlu0 %v8513_v35, %s9088_s2 }
0x2229   :  { %7694 = vrot.lane.b32.xlu0 %v8518_v23, %s9089_s6 }
0x222d   :  { %5466 = vrot.lane.b32.xlu0 %v8523_v41, %s9089_s6 }
0x229b   :  { %v5221_v24 = vpop.xlane.xlu1 %5220 }
0x229c   :  { %7838 = vrcp.f32 %v5221_v24  ;;  %v5218_v62 = vpop.xlane.xlu0 %5217 }
0x229d   :  { %7840 = vrcp.f32 %v5218_v62 }
0x229f   :  { %v5385_v25 = vpop.permute.xlu1 %5384 }
0x22a0   :  { %v7680_v0 = vpop.permute.xlu0 %7679 }
0x22a1   :  { %v7682_v2 = vunpack.i.h.bf16 %v7680_v0  ;;  %v7681_v29 = vunpack.i.l.bf16 %v7680_v0 }
0x22a3   :  { %v7451_v4 = vpack.c.bf16 %v7682_v2, %v7681_v29 }
0x22a4   :  { %v7695_v6 = vpop.permute.xlu0 %7694 }
0x22a5   :  { %v7697_v7 = vunpack.i.h.bf16 %v7695_v6  ;;  %v7696_v15 = vunpack.i.l.bf16 %v7695_v6  ;;  %7452 = vmatpush3.bf16.msra.mxu0 %v7451_v4 }
0x22a6   :  { %v7839_v3 = vpop.eup %7838  ;;  %7456 = vmatprep.subr.bf16.mxu0 %v7897_v11 }
0x22a7   :  { %v7841_v9 = vpop.eup %7840  ;;  %v5225_v10 = vmul.f32 %v7839_v3, %v7835_v58  ;;  %v7461_v14 = vpack.c.bf16 %v7697_v7, %v7696_v15 }
0x22a8   :  { %v5223_v5 = vmul.f32 %v7841_v9, %v7837_v17  ;;  %v5467_v20 = vpop.permute.xlu0 %5466 }
0x22a9   :  { %7241 = vmatmul.mubr.msk.f32.vlgmr.msra.gmra.mrb[62].mxu1 %vm2962_vm7, %v5225_v10 }
0x22aa   :  { %7463 = vmatpush3.bf16.xpose.msk.msra.mxu1 %vm8509_vm11, %v7461_v14  ;;  %7234 = vmatmul.mubr.msk.f32.vlgmr.msra.gmra.mrb[56].mxu0 %vm2962_vm7, %v5223_v5 }
0x22ab   :  { %7254 = vmatprep.mubr.msk.f32.mxu1 %vm7865_vm1, %v7864_v8  ;;  %7247 = vmatprep.mubr.msk.f32.mxu0 %vm7865_vm1, %v7864_v8 }
0x22ac   :  { %7467 = vmatprep.subr.bf16.mxu1 %v7897_v11 }
0x22ae   :  { %7459 = vmatpush3.bf16.xpose.msk.msra.mxu0 %vm8509_vm11, %v7457_v19 }
0x22af   :  { %7464 = vmatprep.subr.bf16.mxu0 %v7897_v11 }
0x22b1   :  { %7255 = vmatmul.mubr.msk.f32.vlgmr.msra.gmra.mrb[64].mxu1 %vm260_vm2, %v5467_v20 }
0x22b2   :  { %7268 = vmatprep.mubr.msk.f32.mxu1 %vm7865_vm1, %v7864_v8 }
0x22b5   :  { %7248 = vmatmul.mubr.msk.f32.vlgmr.msra.gmra.mrb[58].mxu0 %vm260_vm2, %v5385_v25 }
0x22b6   :  { %7261 = vmatprep.mubr.msk.f32.mxu0 %vm7865_vm1, %v7864_v8 }
0x237c   :  { %v8796_v48 = vpop.f32.mrb[62].mxu1 }
0x237d   :  { %v7242_v26 = vpop.f32.mrb[63].mxu1  ;;  %v8798_v1 = vpop.f32.mrb[56].mxu0 }
0x237e   :  { %v7235_v32 = vpop.f32.mrb[57].mxu0 }
0x2384   :  { %v5544_v36 = vpop.f32.mrb[64].mxu1 }
0x2385   :  { %v5545_v37 = vadd.f32 %v5544_v36, %v8543_v53  ;;  %v7256_v13 = vpop.f32.mrb[65].mxu1 }
0x2387   :  { %v5551_v63 = vsel %vm2962_vm7, %v5545_v37, -inf }
0x2388   :  { %5552 = vmax.xlane.f32.xlu0 %v5551_v63  ;;  %v5462_v31 = vpop.f32.mrb[58].mxu0 }
0x2389   :  { %v5463_v40 = vadd.f32 %v5462_v31, %v8546_v54  ;;  %v7249_v43 = vpop.f32.mrb[59].mxu0 }
0x238b   :  { %v5548_v44 = vsel %vm2962_vm7, %v5463_v40, -inf }
0x238c   :  { %5549 = vmax.xlane.f32.xlu1 %v5548_v44 }
0x239d   :  { %7704 = vrot.lane.b32.xlu1 %v8518_v23, %s9090_s27 }
0x23a1   :  { %7709 = vrot.lane.b32.xlu1 %v8513_v35, %s9091_s1 }
0x2415   :  { %v5553_v45 = vpop.xlane.xlu0 %5552 }
0x2416   :  { %v5555_v49 = vsub.f32 %v5545_v37, %v5553_v45 }
0x2418   :  { %v5558_v51 = vmul.f32 1.442695, %v5555_v49 }
0x2419   :  { %v5550_v52 = vpop.xlane.xlu1 %5549 }
0x241a   :  { %7842 = vpow2.f32 %v5558_v51  ;;  %v5554_v55 = vsub.f32 %v5463_v40, %v5550_v52 }
0x241c   :  { %v5556_v56 = vmul.f32 1.442695, %v5554_v55 }
0x241d   :  { %v7705_v57 = vpop.permute.xlu1 %7704 }
0x241e   :  { %7844 = vpow2.f32 %v5556_v56  ;;  %v7707_v58 = vunpack.i.h.bf16 %v7705_v57  ;;  %v7706_v17 = vunpack.i.l.bf16 %v7705_v57 }
0x2420   :  { %v7468_v59 = vpack.c.bf16 %v7707_v58, %v7706_v17 }
0x2421   :  { %v7710_v0 = vpop.permute.xlu1 %7709 }
0x2422   :  { %7469 = vmatpush3.bf16.msra.mxu1 %v7468_v59  ;;  %v7712_v18 = vunpack.i.h.bf16 %v7710_v0  ;;  %v7711_v5 = vunpack.i.l.bf16 %v7710_v0  ;;  %v3119_v0 = vld [vmem:[%s9018_s13 + $0x18] sm:$0xff] }
0x2423   :  { %7474 = vmatprep.subr.bf16.mxu1 %v7897_v11 }
0x2424   :  { %v7843_v60 = vpop.eup %7842  ;;  %v7471_v20 = vpack.c.bf16 %v7712_v18, %v7711_v5 }
0x2425   :  { %v5563_v61 = vsel %vm2962_vm7, %v7843_v60, 0.0 }
0x2426   :  { %5564 = vadd.xlane.f32.xlu1 %v5563_v61  ;;  %v3117_v61 = vld [vmem:[%s9018_s13 + $0x8] sm:$0xff] }
0x2428   :  { %v7845_v24 = vpop.eup %7844 }
0x2429   :  { %v5560_v62 = vsel %vm2962_vm7, %v7845_v24, 0.0 }
0x242a   :  { %5561 = vadd.xlane.f32.xlu0 %v5560_v62  ;;  %v3118_v62 = vld [vmem:[%s9018_s13 + $0x10] sm:$0xff] }
0x2437   :  { %5728 = vrot.lane.b32.xlu1 %v8525_v42, %s9091_s1 }
0x2440   :  { %7699 = vrot.lane.b32.xlu0 %v8513_v35, %s9090_s27 }
0x2444   :  { %7714 = vrot.lane.b32.xlu0 %v8518_v23, %s9091_s1 }
0x2448   :  { %5810 = vrot.lane.b32.xlu0 %v8523_v41, %s9091_s1 }
0x24b3   :  { %v5565_v2 = vpop.xlane.xlu1 %5564 }
0x24b4   :  { %7846 = vrcp.f32 %v5565_v2  ;;  %v7488_v2 = vpack.c.bf16 %v3119_v0, %v3118_v62  ;;  %v6281_v62 = vld [vmem:[%s9020_s17 + $0x10] sm:$0xff]  ;;  %v6282_v0 = vld [vmem:[%s9020_s17 + $0x18] sm:$0xff] }
0x24b7   :  { %v5562_v29 = vpop.xlane.xlu0 %5561  ;;  %v5729_v26 = vpop.permute.xlu1 %5728 }
0x24b8   :  { %7848 = vrcp.f32 %v5562_v29 }
0x24bb   :  { %v7700_v4 = vpop.permute.xlu0 %7699 }
0x24bc   :  { %v7702_v6 = vunpack.i.h.bf16 %v7700_v4  ;;  %v7701_v7 = vunpack.i.l.bf16 %v7700_v4 }
0x24be   :  { %v7847_v15 = vpop.eup %7846  ;;  %v7465_v3 = vpack.c.bf16 %v7702_v6, %v7701_v7 }
0x24bf   :  { %v5569_v42 = vmul.f32 %v7847_v15, %v7843_v60  ;;  %v7715_v9 = vpop.permute.xlu0 %7714  ;;  %v3116_v60 = vld [vmem:[%s9018_s13] sm:$0xff] }
0x24c0   :  { %v7717_v10 = vunpack.i.h.bf16 %v7715_v9  ;;  %v7716_v14 = vunpack.i.l.bf16 %v7715_v9  ;;  %7466 = vmatpush3.bf16.msra.mxu0 %v7465_v3 }
0x24c1   :  { %7269 = vmatmul.mubr.msk.f32.vlgmr.msra.gmra.mrb[66].mxu1 %vm2962_vm7, %v5569_v42  ;;  %7470 = vmatprep.subr.bf16.mxu0 %v7897_v11 }
0x24c2   :  { %v7849_v41 = vpop.eup %7848  ;;  %v7475_v16 = vpack.c.bf16 %v7717_v10, %v7716_v14  ;;  %7282 = vmatprep.mubr.msk.f32.mxu1 %vm7865_vm1, %v7864_v8 }
0x24c3   :  { %v5567_v19 = vmul.f32 %v7849_v41, %v7845_v24  ;;  %v5811_v25 = vpop.permute.xlu0 %5810  ;;  %v7484_v24 = vpack.c.bf16 %v3117_v61, %v3116_v60 }
0x24c4   :  { %7477 = vmatpush3.bf16.xpose.msk.msra.mxu1 %vm8509_vm11, %v7475_v16 }
0x24c5   :  { %7262 = vmatmul.mubr.msk.f32.vlgmr.msra.gmra.mrb[60].mxu0 %vm2962_vm7, %v5567_v19  ;;  %7481 = vmatprep.subr.bf16.mxu1 %v7897_v11 }
0x24c6   :  { %7275 = vmatprep.mubr.msk.f32.mxu0 %vm7865_vm1, %v7864_v8 }
0x24c9   :  { %7473 = vmatpush3.bf16.xpose.msk.msra.mxu0 %vm8509_vm11, %v7471_v20 }
0x24ca   :  { %7478 = vmatprep.subr.bf16.mxu0 %v7897_v11 }
0x24cb   :  { %7283 = vmatmul.mubr.msk.f32.vlgmr.msra.gmra.mrb[68].mxu1 %vm260_vm2, %v5811_v25 }
0x24cc   :  { %7296 = vmatprep.mubr.msk.f32.mxu1 %vm7865_vm1, %v7864_v8 }
0x24d0   :  { %7276 = vmatmul.mubr.msk.f32.vlgmr.msra.gmra.mrb[62].mxu0 %vm260_vm2, %v5729_v26 }
0x24d1   :  { %7289 = vmatprep.mubr.msk.f32.mxu0 %vm7865_vm1, %v7864_v8 }
0x2594   :  { %v5724_v32 = vpop.f32.mrb[66].mxu1 }
0x2595   :  { %v7270_v36 = vpop.f32.mrb[67].mxu1 }
0x2598   :  { %v5645_v37 = vpop.f32.mrb[60].mxu0 }
0x2599   :  { %v7263_v13 = vpop.f32.mrb[61].mxu0 }
0x259e   :  { %v5888_v50 = vpop.f32.mrb[68].mxu1 }
0x259f   :  { %v5889_v63 = vadd.f32 %v5888_v50, %v8543_v53  ;;  %v7284_v31 = vpop.f32.mrb[69].mxu1 }
0x25a1   :  { %v5895_v11 = vsel %vm2962_vm7, %v5889_v63, -inf }
0x25a2   :  { %5896 = vmax.xlane.f32.xlu0 %v5895_v11 }
0x25a3   :  { %v5806_v40 = vpop.f32.mrb[62].mxu0 }
0x25a4   :  { %v5807_v43 = vadd.f32 %v5806_v40, %v8546_v54  ;;  %v7277_v44 = vpop.f32.mrb[63].mxu0 }
0x25a6   :  { %v5892_v45 = vsel %vm2962_vm7, %v5807_v43, -inf }
0x25a7   :  { %5893 = vmax.xlane.f32.xlu1 %v5892_v45 }
0x262f   :  { %v5897_v49 = vpop.xlane.xlu0 %5896 }
0x2630   :  { %v5899_v8 = vsub.f32 %v5889_v63, %v5897_v49  ;;  %v6651_v49 = vld [vmem:[%s9019_s14] ss:$0 sm:$0xff] }
0x2632   :  { %v5902_v51 = vmul.f32 1.442695, %v5899_v8 }
0x2634   :  { %7850 = vpow2.f32 %v5902_v51  ;;  %v5894_v52 = vpop.xlane.xlu1 %5893 }
0x2635   :  { %v5898_v55 = vsub.f32 %v5807_v43, %v5894_v52 }
0x2637   :  { %v5900_v56 = vmul.f32 1.442695, %v5898_v55 }
0x2639   :  { %7852 = vpow2.f32 %v5900_v56 }
0x263e   :  { %v7851_v53 = vpop.eup %7850 }
0x263f   :  { %v5907_v57 = vsel %vm2962_vm7, %v7851_v53, 0.0 }
0x2640   :  { %5908 = vadd.xlane.f32.xlu1 %v5907_v57 }
0x2643   :  { %v7853_v58 = vpop.eup %7852 }
0x2644   :  { %v5904_v17 = vsel %vm2962_vm7, %v7853_v58, 0.0 }
0x2645   :  { %5905 = vadd.xlane.f32.xlu0 %v5904_v17 }
0x2651   :  { %7724 = vrot.lane.b32.xlu1 %v8518_v23, %s9092_s0 }
0x2655   :  { %6074 = vrot.lane.b32.xlu1 %v8628_v30, %s9093_s8 }
0x2659   :  { %6082 = vrot.lane.b32.xlu1 %v8670_v28, %s9094_s28 }
0x265b   :  { %7719 = vrot.lane.b32.xlu0 %v8513_v35, %s9092_s0 }
0x265d   :  { %6090 = vrot.lane.b32.xlu1 %v8712_v22, %s9095_s30 }
0x265f   :  { %6076 = vrot.lane.b32.xlu0 %v8630_v33, %s9093_s8 }
0x2661   :  { %6098 = vrot.lane.b32.xlu1 %v8754_v21, %s9096_s7 }
0x2663   :  { %6084 = vrot.lane.b32.xlu0 %v8672_v46, %s9094_s28 }
0x2665   :  { %6106 = vrot.lane.b32.xlu1 %v8798_v1, %s9097_s26 }
0x2667   :  { %6092 = vrot.lane.b32.xlu0 %v8714_v27, %s9095_s30 }
0x2669   :  { %6114 = vrot.lane.b32.xlu1 %v5645_v37, %s9098_s25 }
0x266b   :  { %6100 = vrot.lane.b32.xlu0 %v8756_v12, %s9096_s7 }
0x266f   :  { %6108 = vrot.lane.b32.xlu0 %v8796_v48, %s9097_s26 }
0x2673   :  { %6116 = vrot.lane.b32.xlu0 %v5724_v32, %s9098_s25 }
0x26cd   :  { %v5909_v35 = vpop.xlane.xlu1 %5908 }
0x26ce   :  { %7854 = vrcp.f32 %v5909_v35 }
0x26d1   :  { %v7725_v23 = vpop.permute.xlu1 %7724 }
0x26d2   :  { %v7727_v54 = vunpack.i.h.bf16 %v7725_v23  ;;  %v7726_v30 = vunpack.i.l.bf16 %v7725_v23  ;;  %v5906_v33 = vpop.xlane.xlu0 %5905 }
0x26d3   :  { %7856 = vrcp.f32 %v5906_v33 }
0x26d4   :  { %v7482_v28 = vpack.c.bf16 %v7727_v54, %v7726_v30 }
0x26d5   :  { %v6075_v3 = vpop.permute.xlu1 %6074 }
0x26d6   :  { %7483 = vmatpush3.bf16.msra.mxu1 %v7482_v28  ;;  %v7720_v46 = vpop.permute.xlu0 %7719  ;;  %v6128_v19 = vsel %vm260_vm2, %v8586_v38, %v6075_v3  ;;  %v6375_v3 = vld [vmem:[%s9021_s19 + $0x10] sm:$0xff] }
0x26d7   :  { %v7722_v22 = vunpack.i.h.bf16 %v7720_v46  ;;  %v7721_v27 = vunpack.i.l.bf16 %v7720_v46 }
0x26d8   :  { %v7855_v21 = vpop.eup %7854 }
0x26d9   :  { %v5913_v1 = vmul.f32 %v7855_v21, %v7851_v53  ;;  %v7479_v12 = vpack.c.bf16 %v7722_v22, %v7721_v27  ;;  %v6083_v9 = vpop.permute.xlu1 %6082 }
0x26da   :  { %v6077_v15 = vpop.permute.xlu0 %6076  ;;  %v6130_v25 = vsel %vm414_vm5, %v6128_v19, %v6083_v9  ;;  %v6376_v9 = vld [vmem:[%s9021_s19 + $0x18] sm:$0xff] }
0x26db   :  { %7480 = vmatpush3.bf16.msra.mxu0 %v7479_v12  ;;  %7297 = vmatmul.mubr.msk.f32.vlgmr.msra.gmra.mrb[70].mxu1 %vm2962_vm7, %v5913_v1  ;;  %v6129_v26 = vsel %vm260_vm2, %v8588_v47, %v6077_v15  ;;  %v6279_v1 = vld [vmem:[%s9020_s17] sm:$0xff]  ;;  %v6280_v12 = vld [vmem:[%s9020_s17 + $0x8] sm:$0xff] }
0x26dc   :  { %7485 = vmatprep.subr.bf16.mxu0 %v7484_v24  ;;  %v7492_v60 = vpack.c.bf16 %v6280_v12, %v6279_v1  ;;  %v6374_v15 = vld [vmem:[%s9021_s19 + $0x8] sm:$0xff] }
0x26dd   :  { %v7857_v48 = vpop.eup %7856  ;;  %v6091_v14 = vpop.permute.xlu1 %6090 }
0x26de   :  { %v5911_v59 = vmul.f32 %v7857_v48, %v7853_v58  ;;  %v6085_v42 = vpop.permute.xlu0 %6084  ;;  %v6132_v36 = vsel %vm2959_vm6, %v6130_v25, %v6091_v14  ;;  %7493 = vmatprep.subr.bf16.mxu1 %v7492_v60  ;;  %v6377_v14 = vld [vmem:[%s9021_s19 + $0x20] sm:$0xff] }
0x26df   :  { %v6131_v37 = vsel %vm414_vm5, %v6129_v26, %v6085_v42  ;;  %7495 = vmatpush3.bf16.msra.mxu1 %v7492_v60  ;;  %v6229_v26 = vld [vmem:[%s9022_s15] sm:$0xff] }
0x26e0   :  { %7290 = vmatmul.mubr.msk.f32.vlgmr.msra.gmra.mrb[64].mxu0 %vm2962_vm7, %v5911_v59 }
0x26e1   :  { %7487 = vmatpush3.bf16.msra.mxu0 %v7484_v24  ;;  %v6099_v16 = vpop.permute.xlu1 %6098 }
0x26e2   :  { %7489 = vmatprep.subr.bf16.mxu0 %v7488_v2  ;;  %v6093_v10 = vpop.permute.xlu0 %6092  ;;  %v6134_v13 = vsel %vm2962_vm7, %v6132_v36, %v6099_v16 }
0x26e3   :  { %v6133_v50 = vsel %vm2959_vm6, %v6131_v37, %v6093_v10  ;;  %v7504_v10 = vpack.c.bf16 %v6376_v9, %v6375_v3 }
0x26e5   :  { %7491 = vmatpush3.bf16.msra.mxu0 %v7488_v2  ;;  %v6107_v5 = vpop.permute.xlu1 %6106 }
0x26e6   :  { %v6101_v41 = vpop.permute.xlu0 %6100  ;;  %v6136_v63 = vsel %vm2965_vm8, %v6134_v13, %v6107_v5 }
0x26e7   :  { %v6135_v31 = vsel %vm2962_vm7, %v6133_v50, %v6101_v41  ;;  %v6378_v41 = vld [vmem:[%s9021_s19 + $0x28] sm:$0xff]  ;;  %v6231_v50 = vld [vmem:[%s9023_s16] sm:$0xff] }
0x26e8   :  { %v7508_v16 = vpack.c.bf16 %v6378_v41, %v6377_v14  ;;  %v6471_v14 = vld [vmem:[%s9026_s21 + $0x8] sm:$0xff] }
0x26e9   :  { %v6115_v32 = vpop.permute.xlu1 %6114 }
0x26ea   :  { %v6109_v18 = vpop.permute.xlu0 %6108  ;;  %v6138_v11 = vsel %vm2968_vm10, %v6136_v63, %v6115_v32  ;;  %v6230_v32 = vld [vmem:[%s9022_s15 + $0x8] sm:$0xff] }
0x26eb   :  { %v6137_v40 = vsel %vm2965_vm8, %v6135_v31, %v6109_v18  ;;  %v6232_v63 = vld [vmem:[%s9023_s16 + $0x8] sm:$0xff] }
0x26ee   :  { %v6117_v20 = vpop.permute.xlu0 %6116 }
0x26ef   :  { %v6139_v47 = vsel %vm2968_vm10, %v6137_v40, %v6117_v20 }
0x27ae   :  { %v6068_v29 = vpop.f32.mrb[70].mxu1 }
0x27af   :  { %6124 = vrot.lane.b32.xlu0 %v6068_v29, %s7896_s3  ;;  %v7298_v4 = vpop.f32.mrb[71].mxu1 }
0x27b0   :  { %v7496_v4 = vpack.c.bf16 %v6282_v0, %v6281_v62 }
0x27b2   :  { %7497 = vmatprep.subr.bf16.mxu1 %v7496_v4 }
0x27b3   :  { %v5989_v6 = vpop.f32.mrb[64].mxu0  ;;  %7499 = vmatpush3.bf16.msra.mxu1 %v7496_v4 }
0x27b4   :  { %6122 = vrot.lane.b32.xlu1 %v5989_v6, %s7896_s3  ;;  %v7291_v7 = vpop.f32.mrb[65].mxu0 }
0x27b5   :  { %v6373_v7 = vld [vmem:[%s9021_s19] sm:$0xff] }
0x27b6   :  { %v7500_v42 = vpack.c.bf16 %v6374_v15, %v6373_v7 }
0x27b8   :  { %7501 = vmatprep.subr.bf16.mxu0 %v7500_v42 }
0x2821   :  { %v6125_v38 = vpop.permute.xlu0 %6124 }
0x2822   :  { %v6141_v45 = vsel %vm2971_vm9, %v6139_v47, %v6125_v38  ;;  %v6380_v47 = vld [vmem:[%s9021_s19 + $0x38] sm:$0xff] }
0x2826   :  { %v6123_v43 = vpop.permute.xlu1 %6122 }
0x2827   :  { %v6140_v44 = vsel %vm2971_vm9, %v6138_v11, %v6123_v43  ;;  %v6379_v43 = vld [vmem:[%s9021_s19 + $0x30] sm:$0xff] }
0x2828   :  { %7307 = vmatprep.mubr.msk.f32.mxu0 %vm173_vm0, %v6140_v44  ;;  %v7512_v44 = vpack.c.bf16 %v6380_v47, %v6379_v43 }
0x2829   :  { %7308 = vmatmul.mubr.msk.f32.vlgmr.msra.gmra.mrb[66].mxu0 %vm173_vm0, %v6141_v45  ;;  %v6654_v45 = vld [vmem:[%s9024_s18] ss:$0 sm:$0xff] }
0x282a   :  { %7503 = vmatpush3.bf16.msra.mxu0 %v7500_v42 }
0x282b   :  { %7505 = vmatprep.subr.bf16.mxu0 %v7504_v10 }
0x282e   :  { %7507 = vmatpush3.bf16.msra.mxu0 %v7504_v10  ;;  %v6470_v10 = vld [vmem:[%s9026_s21] sm:$0xff] }
0x282f   :  { %7509 = vmatprep.subr.bf16.mxu0 %v7508_v16 }
0x2832   :  { %7511 = vmatpush3.bf16.msra.mxu0 %v7508_v16 }
0x2833   :  { %7513 = vmatprep.subr.bf16.mxu0 %v7512_v44 }
0x2836   :  { %7515 = vmatpush3.bf16.msra.mxu0 %v7512_v44 }
0x28fc   :  { %v7309_v8 = vpop.f32.mrb[66].mxu0 }
0x28fd   :  { %v6226_v51 = vadd.f32 %v7309_v8, %v6651_v49  ;;  %v6220_v52 = vpop.f32.mrb[67].mxu0 }
0x28fe   :  { %v6221_v55 = vadd.f32 %v6651_v49, %v6220_v52 }
0x28ff   :  { %v8908_v56 = vadd.f32 %v6226_v51, %v8499_v39 }
0x2900   :  { %v8911_v53 = vadd.f32 %v6221_v55, %v8497_v34 }
0x2901   :  { %v6236_v57 = vsel %vm173_vm0, %v8908_v56, 0.0  ;;  %v6249_v58 = vmul.f32 %v8908_v56, %v8908_v56 }
0x2902   :  { %v6235_v17 = vsel %vm173_vm0, %v8911_v53, 0.0  ;;  %v6248_v35 = vmul.f32 %v8911_v53, %v8911_v53 }
0x2903   :  { %v6237_v23 = vadd.f32 %v6236_v57, %v6235_v17  ;;  %v6251_v54 = vsel %vm173_vm0, %v6249_v58, 0.0 }
0x2904   :  { %v6250_v39 = vsel %vm173_vm0, %v6248_v35, 0.0 }
0x2905   :  { %6238 = vadd.xlane.f32.xlu1 %v6237_v23  ;;  %v6252_v34 = vadd.f32 %v6251_v54, %v6250_v39 }
0x2907   :  { %6253 = vadd.xlane.f32.xlu0 %v6252_v34 }
0x2992   :  { %v6239_v30 = vpop.xlane.xlu1 %6238 }
0x2993   :  { %v6240_v33 = vrot.slane %v6239_v30, 4 }
0x2994   :  { %v6254_v28 = vpop.xlane.xlu0 %6253 }
0x2995   :  { %v6241_v46 = vadd.f32 %v6240_v33, %v6239_v30  ;;  %v6255_v22 = vrot.slane %v6254_v28, 4 }
0x2997   :  { %v6242_v27 = vrot.slane %v6241_v46, 2  ;;  %v6256_v21 = vadd.f32 %v6255_v22, %v6254_v28 }
0x2999   :  { %v6257_v48 = vrot.slane %v6256_v21, 2  ;;  %v6243_v59 = vadd.f32 %v6242_v27, %v6241_v46 }
0x299b   :  { %v6244_v61 = vrot.slane %v6243_v59, 1  ;;  %v6258_v24 = vadd.f32 %v6257_v48, %v6256_v21 }
0x299d   :  { %v6245_v2 = vadd.f32 %v6244_v61, %v6243_v59  ;;  %v6259_v29 = vrot.slane %v6258_v24, 1 }
0x299f   :  { %7522 = vpush %v6245_v2  ;;  %v6260_v6 = vadd.f32 %v6259_v29, %v6258_v24 }
0x29a1   :  { %7524 = vpush %v6260_v6 }
0x29d0   :  { %s7523_s5 = spop %7522 }
0x29d1   :  { %s6247_s13 = smul.f32 0.001953125, %s7523_s5 }
0x29d2   :  { %s7525_s3 = spop %7524 }
0x29d3   :  { %s6263_s14 = smul.f32 %s6247_s13, %s6247_s13  ;;  %v6265_v19 = vstv %s6247_s13 }
0x29d4   :  { %s6262_s2 = smul.f32 0.001953125, %s7525_s3  ;;  %v6266_v20 = vsub.f32 %v8911_v53, %v6265_v19  ;;  %v6267_v25 = vsub.f32 %v8908_v56, %v6265_v19  ;;  %v6657_v53 = vld [vmem:[%s9025_s20] ss:$0 sm:$0xff]  ;;  %v6473_v19 = vld [vmem:[%s9027_s22 + $0x8] sm:$0xff] }
0x29d6   :  { %s6264_s6 = ssub.f32 %s6262_s2, %s6263_s14 }
0x29d8   :  { %s6268_s27 = sadd.f32 1e-05, %s6264_s6 }
0x29da   :  { %v6269_v18 = vstv %s6268_s27 }
0x29db   :  { %7858 = vrsqrt.f32 %v6269_v18 }
0x29e5   :  { %v7859_v5 = vpop.eup %7858 }
0x29e6   :  { %7526 = vpush %v7859_v5  ;;  %v6472_v5 = vld [vmem:[%s9027_s22] sm:$0xff] }
0x2a17   :  { %s7527_s1 = spop %7526 }
0x2a18   :  { %v6272_v36 = vstv %s7527_s1 }
0x2a19   :  { %v6273_v37 = vmul.f32 %v6272_v36, %v6266_v20  ;;  %v6274_v13 = vmul.f32 %v6272_v36, %v6267_v25 }
0x2a1b   :  { %v6275_v31 = vmul.f32 %v6273_v37, %v6229_v26  ;;  %v6276_v38 = vmul.f32 %v6274_v13, %v6230_v32 }
0x2a1d   :  { %v6277_v11 = vadd.f32 %v6275_v31, %v6231_v50  ;;  %v6278_v40 = vadd.f32 %v6276_v38, %v6232_v63 }
0x2a1f   :  { %7318 = vmatprep.mubr.msk.f32.mxu1 %vm173_vm0, %v6277_v11 }
0x2a20   :  { %7319 = vmatmul.mubr.msk.f32.vlgmr.msra.gmra.mrb[72].mxu1 %vm173_vm0, %v6278_v40 }
0x2af3   :  { %v7320_v49 = vpop.f32.mrb[72].mxu1 }
0x2af4   :  { %v6368_v8 = vadd.f32 %v7320_v49, %v6654_v45  ;;  %v6362_v51 = vpop.f32.mrb[73].mxu1 }
0x2af5   :  { %v6363_v52 = vadd.f32 %v6654_v45, %v6362_v51 }
0x2af6   :  { %v6372_v56 = vmax.f32 %v6368_v8, 0.0 }
0x2af7   :  { %v6371_v55 = vmax.f32 %v6363_v52, 0.0 }
0x2af9   :  { %7337 = vmatprep.mubr.msk.f32.mxu0 %vm6388_vm13, %v6371_v55 }
0x2afa   :  { %7338 = vmatmul.mubr.msk.f32.vlgmr.msra.gmra.mrb[68].mxu0 %vm6388_vm13, %v6372_v56 }
0x2bcd   :  { %v7339_v57 = vpop.f32.mrb[68].mxu0 }
0x2bce   :  { %v6467_v58 = vadd.f32 %v7339_v57, %v6657_v53  ;;  %v6461_v17 = vpop.f32.mrb[69].mxu0 }
0x2bcf   :  { %v6462_v35 = vadd.f32 %v6657_v53, %v6461_v17 }
0x2bd0   :  { %v6475_v23 = vadd.f32 %v6467_v58, %v6278_v40 }
0x2bd1   :  { %v6474_v54 = vadd.f32 %v6462_v35, %v6277_v11 }
0x2bd2   :  { %v6477_v39 = vsel %vm173_vm0, %v6475_v23, 0.0  ;;  %v6490_v34 = vmul.f32 %v6475_v23, %v6475_v23 }
0x2bd3   :  { %v6476_v30 = vsel %vm173_vm0, %v6474_v54, 0.0  ;;  %v6489_v33 = vmul.f32 %v6474_v54, %v6474_v54 }
0x2bd4   :  { %v6478_v28 = vadd.f32 %v6477_v39, %v6476_v30  ;;  %v6492_v46 = vsel %vm173_vm0, %v6490_v34, 0.0 }
0x2bd5   :  { %v6491_v22 = vsel %vm173_vm0, %v6489_v33, 0.0 }
0x2bd6   :  { %6479 = vadd.xlane.f32.xlu0 %v6478_v28  ;;  %v6493_v27 = vadd.f32 %v6492_v46, %v6491_v22 }
0x2bd8   :  { %6494 = vadd.xlane.f32.xlu1 %v6493_v27 }
0x2c63   :  { %v6480_v21 = vpop.xlane.xlu0 %6479 }
0x2c64   :  { %v6481_v1 = vrot.slane %v6480_v21, 4 }
0x2c65   :  { %v6495_v12 = vpop.xlane.xlu1 %6494 }
0x2c66   :  { %v6482_v48 = vadd.f32 %v6481_v1, %v6480_v21  ;;  %v6496_v59 = vrot.slane %v6495_v12, 4 }
0x2c68   :  { %v6483_v60 = vrot.slane %v6482_v48, 2  ;;  %v6497_v61 = vadd.f32 %v6496_v59, %v6495_v12 }
0x2c6a   :  { %v6484_v24 = vadd.f32 %v6483_v60, %v6482_v48  ;;  %v6498_v62 = vrot.slane %v6497_v61, 2 }
0x2c6c   :  { %v6499_v0 = vadd.f32 %v6498_v62, %v6497_v61  ;;  %v6485_v2 = vrot.slane %v6484_v24, 1 }
0x2c6e   :  { %v6486_v29 = vadd.f32 %v6485_v2, %v6484_v24  ;;  %v6500_v4 = vrot.slane %v6499_v0, 1 }
0x2c70   :  { %7528 = vpush %v6486_v29  ;;  %v6501_v6 = vadd.f32 %v6500_v4, %v6499_v0 }
0x2c72   :  { %7530 = vpush %v6501_v6 }
0x2ca1   :  { %s7529_s18 = spop %7528 }
0x2ca2   :  { %s6488_s19 = smul.f32 0.001953125, %s7529_s18 }
0x2ca3   :  { %s7531_s20 = spop %7530 }
0x2ca4   :  { %s6504_s29 = smul.f32 %s6488_s19, %s6488_s19  ;;  %v6506_v3 = vstv %s6488_s19 }
0x2ca5   :  { %s6503_s5 = smul.f32 0.001953125, %s7531_s20  ;;  %v6507_v42 = vsub.f32 %v6474_v54, %v6506_v3  ;;  %v6508_v9 = vsub.f32 %v6475_v23, %v6506_v3 }
0x2ca7   :  { %s6505_s13 = ssub.f32 %s6503_s5, %s6504_s29 }
0x2ca9   :  { %s6509_s3 = sadd.f32 1e-05, %s6505_s13 }
0x2cab   :  { %v6510_v7 = vstv %s6509_s3 }
0x2cac   :  { %7860 = vrsqrt.f32 %v6510_v7 }
0x2cb6   :  { %v7861_v15 = vpop.eup %7860 }
0x2cb7   :  { %7532 = vpush %v7861_v15 }
0x2ce8   :  { %s7533_s14 = spop %7532 }
0x2ce9   :  { %v6513_v41 = vstv %s7533_s14 }
0x2cea   :  { %v6514_v16 = vmul.f32 %v6513_v41, %v6507_v42  ;;  %v6515_v18 = vmul.f32 %v6513_v41, %v6508_v9 }
0x2cec   :  { %v6516_v20 = vmul.f32 %v6514_v16, %v6470_v10  ;;  %v6517_v25 = vmul.f32 %v6515_v18, %v6471_v14 }
0x2cee   :  { %v6518_v26 = vadd.f32 %v6516_v20, %v6472_v5  ;;  %v6519_v32 = vadd.f32 %v6517_v25, %v6473_v19 }
0x2cf0   :  { %6520 = vst.msk [vmem:[%s9028_s23] sm:$0xff] %vm173_vm0, %v6518_v26  ;;  %6521 = vst.msk [vmem:[%s9028_s23 + $0x8] sm:$0xff] %vm173_vm0, %v6519_v32 }

</bundles_post_ra>
